<compile_context>
chip_gen: v7x
topology: tpu7x:2x2x1
jax: 0.10.0
libtpu: 0.0.40
codegen_flags: <defaults>
</compile_context>

<pallas_src>
import numpy as np
import jax
import jax.numpy as jnp
from jax.experimental import pallas as pl
from jax.experimental.pallas import tpu as pltpu

BN_EPS = 1e-5


# ---------------------------------------------------------------------------
# Host-side (numpy) weight / matrix preparation -- run OUTSIDE jit
# ---------------------------------------------------------------------------
def _fold_bn_np(w, bn):
    """Fold inference-mode BatchNorm into the conv weight and a bias (numpy)."""
    w = np.asarray(w, np.float32)
    gamma = np.asarray(bn["gamma"], np.float32)
    beta = np.asarray(bn["beta"], np.float32)
    mean = np.asarray(bn["mean"], np.float32)
    var = np.asarray(bn["var"], np.float32)
    scale = gamma / np.sqrt(var + BN_EPS)
    return w * scale[None, None, None, :], beta - mean * scale


def _stride2_to_s1_np(w):
    """Rewrite a KxK stride-2 conv kernel as a ceil(K/2) stride-1 kernel acting on a
    2x2 space-to-depth input (channel order (py*2+px)*Cin + c)."""
    KH, KW, Cin, Cout = w.shape
    KH2, KW2 = (KH + 1) // 2, (KW + 1) // 2
    w_eff = np.zeros((KH2, KW2, 2, 2, Cin, Cout), w.dtype)
    for oy in range(KH2):
        for py in range(2):
            dy = 2 * oy + py
            if dy >= KH:
                continue
            for ox in range(KW2):
                for px in range(2):
                    dx = 2 * ox + px
                    if dx >= KW:
                        continue
                    w_eff[oy, ox, py, px] = w[dy, dx]
    return w_eff.reshape(KH2, KW2, 4 * Cin, Cout)


def _toeplitz_np(w, W, pad):
    """Block-Toeplitz matrices for a stride-1 conv along W.  w: (KH,KW,Cin,Cout).
    Returns (KH, W*Cin, Wo*Cout); the W zero-padding is folded into the matrix."""
    KH, KW, Cin, Cout = w.shape
    Wo = W + 2 * pad - KW + 1
    T = np.zeros((KH, W * Cin, Wo * Cout), np.float32)
    for xo in range(Wo):
        for dx in range(KW):
            xin = xo + dx - pad
            if 0 <= xin < W:
                T[:, xin * Cin:(xin + 1) * Cin, xo * Cout:(xo + 1) * Cout] = w[:, dx]
    return T


def _conv_ops_np(w, b, W, pad):
    """Concatenated Toeplitz (KH*W*Cin, Wo*Cout) bf16 + W-tiled bias (1, Wo*Cout) f32."""
    KH, KW, Cin, Cout = w.shape
    Wo = W + 2 * pad - KW + 1
    T = _toeplitz_np(w, W, pad).reshape(KH * W * Cin, Wo * Cout)
    btile = np.tile(np.asarray(b, np.float32), Wo).reshape(1, Wo * Cout)
    return jnp.asarray(T, jnp.bfloat16), jnp.asarray(btile, jnp.float32)


def _s2d_ops_np(H, W, C):
    """Even/odd row-selection (2, H/2, H) and lane-permutation (2, W*C, (W/2)*4C)
    matrices implementing 2x2 space-to-depth with channel order (py*2+px)*C + c."""
    H2, W2 = H // 2, W // 2
    eo = np.zeros((2, H2, H), np.float32)
    eo[0, np.arange(H2), 2 * np.arange(H2)] = 1.0
    eo[1, np.arange(H2), 2 * np.arange(H2) + 1] = 1.0
    pp = np.zeros((2, W * C, W2 * 4 * C), np.float32)
    eye = np.eye(C, dtype=np.float32)
    for py in range(2):
        for w2 in range(W2):
            for px in range(2):
                src = (2 * w2 + px) * C
                dst = w2 * 4 * C + (py * 2 + px) * C
                pp[py, src:src + C, dst:dst + C] = eye
    return jnp.asarray(eo, jnp.bfloat16), jnp.asarray(pp, jnp.bfloat16)


def _bilinear_matrix(in_size, out_size):
    """Row-interp matrix matching F.interpolate(mode='bilinear', align_corners=True)."""
    m = np.zeros((out_size, in_size), dtype=np.float32)
    if in_size == 1:
        m[:, 0] = 1.0
        return m
    src = np.arange(out_size) * (in_size - 1) / (out_size - 1)
    lo = np.floor(src).astype(np.int64)
    hi = np.minimum(lo + 1, in_size - 1)
    frac = (src - lo).astype(np.float32)
    rows = np.arange(out_size)
    m[rows, lo] += 1.0 - frac
    m[rows, hi] += frac
    return m


def _expand_cols(uwT, C):
    """Expand a (W, W2) column-interp matrix to (W*C, W2*C) acting on rows whose lane
    layout is w*C + c."""
    W, W2 = uwT.shape
    out = np.zeros((W * C, W2 * C), dtype=np.float32)
    for c in range(C):
        out[c::C, c::C] = uwT
    return out


# ---------------------------------------------------------------------------
# Static encoder plan (shared by prepare_params and the forward pass)
# ---------------------------------------------------------------------------
def _encoder_plan(H, W):
    return [
        dict(kind="conv", path=("conv0", 0), H=H, W=W, Cin=8, k=3, pad=1,
             relu=True, s2=False, cin_pad=3, out=None),
        dict(kind="conv", path=("conv0", 1), H=H, W=W, Cin=8, k=3, pad=1,
             relu=True, s2=False, cin_pad=None, out=0),
        dict(kind="s2d", H=H, W=W, C=8),
        dict(kind="conv", path=("conv1", 0), H=H // 2, W=W // 2, Cin=32, k=3, pad=1,
             relu=True, s2=True, cin_pad=None, out=None),
        dict(kind="conv", path=("conv1", 1), H=H // 2, W=W // 2, Cin=16, k=3, pad=1,
             relu=True, s2=False, cin_pad=None, out=None),
        dict(kind="conv", path=("conv1", 2), H=H // 2, W=W // 2, Cin=16, k=3, pad=1,
             relu=True, s2=False, cin_pad=None, out=1),
        dict(kind="s2d", H=H // 2, W=W // 2, C=16),
        dict(kind="conv", path=("conv2", 0), H=H // 4, W=W // 4, Cin=64, k=3, pad=1,
             relu=True, s2=True, cin_pad=None, out=None),
        dict(kind="conv", path=("conv2", 1), H=H // 4, W=W // 4, Cin=32, k=3, pad=1,
             relu=True, s2=False, cin_pad=None, out=None),
        dict(kind="conv", path=("conv2", 2), H=H // 4, W=W // 4, Cin=32, k=3, pad=1,
             relu=True, s2=False, cin_pad=None, out=None),
        dict(kind="conv", path=("toplayer", None), H=H // 4, W=W // 4, Cin=32, k=1,
             pad=0, relu=False, s2=False, cin_pad=None, out=2),
    ]


def prepare_params(params, H, W):
    """Fold BN, build Toeplitz / interp / permutation operands (numpy, outside jit)."""
    enc = []
    for st in _encoder_plan(H, W):
        if st["kind"] == "s2d":
            enc.append(list(_s2d_ops_np(st["H"], st["W"], st["C"])))
            continue
        name, idx = st["path"]
        p = params[name] if idx is None else params[name][idx]
        if name in ("conv0", "conv1", "conv2"):
            w, b = _fold_bn_np(p["w"], p["bn"])
        else:
            w, b = np.asarray(p["w"], np.float32), np.asarray(p["b"], np.float32)
        if st["s2"]:
            w = _stride2_to_s1_np(w)
        if st["cin_pad"] is not None:
            w_pad = np.zeros((w.shape[0], w.shape[1], st["Cin"], w.shape[3]), np.float32)
            w_pad[:, :, :st["cin_pad"], :] = w
            w = w_pad
        enc.append(list(_conv_ops_np(w, b, st["W"], st["pad"])))

    def level(Hc, Wc, C, Cs, lat_p, sm_p):
        H2, W2 = 2 * Hc, 2 * Wc
        uh = jnp.asarray(_bilinear_matrix(Hc, H2), jnp.float32)
        g = jnp.asarray(_expand_cols(_bilinear_matrix(Wc, W2).T, C), jnp.float32)
        lat_w = np.asarray(lat_p["w"], np.float32)                      # (1,1,Cs,C)
        lat_t = _toeplitz_np(lat_w, W2, 0).reshape(W2 * Cs, W2 * C)
        lat_b = np.tile(np.asarray(lat_p["b"], np.float32), W2).reshape(1, W2 * C)
        sm_t, sm_b = _conv_ops_np(np.asarray(sm_p["w"], np.float32),
                                  np.asarray(sm_p["b"], np.float32), W2, 1)
        return dict(uh=uh, g=g,
                    lat_t=jnp.asarray(lat_t, jnp.bfloat16),
                    lat_b=jnp.asarray(lat_b, jnp.float32),
                    sm_t=sm_t, sm_b=sm_b)

    return dict(
        enc=enc,
        lvl1=level(H // 4, W // 4, 32, 16, params["lat1"], params["smooth1"]),
        lvl0=level(H // 2, W // 2, 32, 8, params["lat0"], params["smooth0"]),
    )


def _nbytes(a):
    return int(np.prod(a.shape)) * jnp.dtype(a.dtype).itemsize


# ---------------------------------------------------------------------------
# In-kernel building blocks
# ---------------------------------------------------------------------------
def _conv_block(cur, scr, t_ref, b_ref, cfg):
    """One stride-1 conv (+bias, +optional ReLU) as a single im2col matmul.

    cur: (H, WC) value.  scr: (Ho, KH*WC) bf16 VMEM scratch.
    t_ref: (KH*WC, Wo*Cout) bf16 concatenated Toeplitz.  b_ref: (1, Wo*Cout) f32.
    Only the <=2*pad H-boundary rows of each dy-block are zeroed (per step; never
    gated on program_id -- the grid axis is 'parallel' / megacore-sharded).
    """
    H, WC, KH, pad, Ho = cfg["H"], cfg["WC"], cfg["KH"], cfg["pad"], cfg["Ho"]
    xb = cur.astype(jnp.bfloat16)
    for dy in range(KH):
        lo = dy - pad
        top = max(0, -lo)
        bot = max(0, Ho + lo - H)
        valid = Ho - top - bot
        c0 = dy * WC                                      # multiple of 128
        if top > 0:
            scr[0:top, c0:c0 + WC] = jnp.zeros((top, WC), jnp.bfloat16)
        if bot > 0:
            scr[Ho - bot:Ho, c0:c0 + WC] = jnp.zeros((bot, WC), jnp.bfloat16)
        scr[top:top + valid, c0:c0 + WC] = xb[top + lo:top + lo + valid, :]
    acc = jnp.dot(scr[...], t_ref[...], preferred_element_type=jnp.float32)
    acc = acc + b_ref[...]
    if cfg["relu"]:
        acc = jnp.maximum(acc, 0.0)
    return acc


def _s2d_block(cur, eo_ref, pp_ref):
    """In-kernel 2x2 space-to-depth: even/odd row selection + lane permutation as four
    tiny 0/1 matmuls (exact in bf16).  (H, W*C) -> (H/2, (W/2)*4C)."""
    xb = cur.astype(jnp.bfloat16)
    ev = jnp.dot(eo_ref[0], xb, preferred_element_type=jnp.float32).astype(jnp.bfloat16)
    od = jnp.dot(eo_ref[1], xb, preferred_element_type=jnp.float32).astype(jnp.bfloat16)
    return (jnp.dot(ev, pp_ref[0], preferred_element_type=jnp.float32) +
            jnp.dot(od, pp_ref[1], preferred_element_type=jnp.float32))


# ---------------------------------------------------------------------------
# Kernel 1: fused encoder (conv0 -> s2d -> conv1 -> s2d -> conv2 -> toplayer)
# ---------------------------------------------------------------------------
def _make_encoder_kernel(cfgs):
    def kernel(*refs):
        pos = 0
        x_ref = refs[pos]; pos += 1
        stage_ops = []
        for _ in cfgs:
            stage_ops.append((refs[pos], refs[pos + 1])); pos += 2
        out_refs = refs[pos:pos + 3]; pos += 3
        scr_refs = refs[pos:]

        cur = x_ref[0]                                    # (H, W*8) bf16
        si = 0
        for cfg, (a_ref, b_ref) in zip(cfgs, stage_ops):
            if cfg["kind"] == "conv":
                cur = _conv_block(cur, scr_refs[si], a_ref, b_ref, cfg)
                si += 1
                if cfg["out"] is not None:
                    o = out_refs[cfg["out"]]
                    o[0] = cur.astype(o.dtype)
            else:
                cur = _s2d_block(cur, a_ref, b_ref)
    return kernel


def _encoder_call(x2, H, W, enc_ops):
    N = x2.shape[0]
    plan = _encoder_plan(H, W)
    cfgs, ops, in_specs, scratch = [], [], [], []
    in_specs.append(pl.BlockSpec((1, H, W * 8), lambda n: (n, 0, 0)))
    flops = 0
    for st, op in zip(plan, enc_ops):
        if st["kind"] == "conv":
            T, b = op
            Ho = st["H"] + 2 * st["pad"] - st["k"] + 1
            cfgs.append(dict(kind="conv", H=st["H"], WC=st["W"] * st["Cin"],
                             KH=st["k"], pad=st["pad"], Ho=Ho,
                             relu=st["relu"], out=st["out"]))
            ops += [T, b]
            in_specs += [pl.BlockSpec(T.shape, lambda n: (0, 0)),
                         pl.BlockSpec(b.shape, lambda n: (0, 0))]
            scratch.append(pltpu.VMEM((Ho, st["k"] * st["W"] * st["Cin"]), jnp.bfloat16))
            flops += 2 * Ho * T.shape[0] * T.shape[1]
        else:
            eo, pp = op
            cfgs.append(dict(kind="s2d"))
            ops += [eo, pp]
            in_specs += [pl.BlockSpec(eo.shape, lambda n: (0, 0, 0)),
                         pl.BlockSpec(pp.shape, lambda n: (0, 0, 0))]
            wc = st["W"] * st["C"]
            flops += 2 * 2 * (st["H"] // 2) * st["H"] * wc + 2 * 2 * (st["H"] // 2) * wc * 2 * wc

    out_shape = (jax.ShapeDtypeStruct((N, H, W * 8), jnp.bfloat16),          # c0
                 jax.ShapeDtypeStruct((N, H // 2, (W // 2) * 16), jnp.bfloat16),   # c1
                 jax.ShapeDtypeStruct((N, H // 4, (W // 4) * 32), jnp.float32))    # feat2
    out_specs = (pl.BlockSpec((1, H, W * 8), lambda n: (n, 0, 0)),
                 pl.BlockSpec((1, H // 2, (W // 2) * 16), lambda n: (n, 0, 0)),
                 pl.BlockSpec((1, H // 4, (W // 4) * 32), lambda n: (n, 0, 0)))

    weight_bytes = sum(_nbytes(o) for o in ops)
    act_bytes = (N * H * W * 8 * 2 * 2                     # x2 in + c0 out (bf16)
                 + N * (H // 2) * (W // 2) * 16 * 2
                 + N * (H // 4) * (W // 4) * 32 * 4)
    return pl.pallas_call(
        _make_encoder_kernel(cfgs),
        out_shape=out_shape,
        grid=(N,),
        in_specs=in_specs,
        out_specs=out_specs,
        scratch_shapes=scratch,
        compiler_params=pltpu.CompilerParams(dimension_semantics=("parallel",)),
        cost_estimate=pl.CostEstimate(flops=int(N * flops), transcendentals=0,
                                      bytes_accessed=int(weight_bytes + act_bytes)),
    )(x2, *ops)


# ---------------------------------------------------------------------------
# Kernels 2/3: fused bilinear x2 upsample + lateral 1x1 + add + smooth 3x3
# ---------------------------------------------------------------------------
def _make_fpn_kernel(sm_cfg, emit_raw):
    def kernel(c_ref, s_ref, uh_ref, g_ref, lt_ref, lb_ref, smt_ref, smb_ref, *rest):
        if emit_raw:
            raw_ref, sm_ref, scr = rest
        else:
            sm_ref, scr = rest
        # bilinear x2 upsample (align_corners=True) in f32: rows then columns
        x = c_ref[0].astype(jnp.float32)                                        # (Hc, Wc*C)
        rows = jnp.dot(uh_ref[...], x, preferred_element_type=jnp.float32)      # (H2, Wc*C)
        up = jnp.dot(rows, g_ref[...], preferred_element_type=jnp.float32)      # (H2, W2*C)
        # lateral 1x1 conv on the skip feature (bf16 MXU, f32 acc)
        lat = jnp.dot(s_ref[0].astype(jnp.bfloat16), lt_ref[...],
                      preferred_element_type=jnp.float32)                       # (H2, W2*C)
        raw = up + lat + lb_ref[...]
        if emit_raw:
            raw_ref[0] = raw.astype(raw_ref.dtype)
        # fused smooth 3x3 conv (no ReLU)
        sm = _conv_block(raw, scr, smt_ref, smb_ref, sm_cfg)
        sm_ref[0] = sm.astype(sm_ref.dtype)
    return kernel


def _fpn_level_call(coarse, skip, Hc, Wc, C, Cs, Csm, lvl, emit_raw):
    N = coarse.shape[0]
    H2, W2 = 2 * Hc, 2 * Wc
    sm_cfg = dict(H=H2, WC=W2 * C, KH=3, pad=1, Ho=H2, relu=False)

    in_specs = [
        pl.BlockSpec((1, Hc, Wc * C), lambda n: (n, 0, 0)),
        pl.BlockSpec((1, H2, W2 * Cs), lambda n: (n, 0, 0)),
        pl.BlockSpec(lvl["uh"].shape, lambda n: (0, 0)),
        pl.BlockSpec(lvl["g"].shape, lambda n: (0, 0)),
        pl.BlockSpec(lvl["lat_t"].shape, lambda n: (0, 0)),
        pl.BlockSpec(lvl["lat_b"].shape, lambda n: (0, 0)),
        pl.BlockSpec(lvl["sm_t"].shape, lambda n: (0, 0)),
        pl.BlockSpec(lvl["sm_b"].shape, lambda n: (0, 0)),
    ]
    out_shape, out_specs = [], []
    if emit_raw:
        out_shape.append(jax.ShapeDtypeStruct((N, H2, W2 * C), jnp.bfloat16))
        out_specs.append(pl.BlockSpec((1, H2, W2 * C), lambda n: (n, 0, 0)))
    out_shape.append(jax.ShapeDtypeStruct((N, H2, W2 * Csm), jnp.float32))
    out_specs.append(pl.BlockSpec((1, H2, W2 * Csm), lambda n: (n, 0, 0)))

    weights = [lvl[k] for k in ("uh", "g", "lat_t", "lat_b", "sm_t", "sm_b")]
    flops = (2 * H2 * Hc * (Wc * C) + 2 * H2 * (Wc * C) * (W2 * C)
             + 2 * H2 * (W2 * Cs) * (W2 * C) + 2 * H2 * (3 * W2 * C) * (W2 * Csm))
    bytes_accessed = (sum(_nbytes(w) for w in weights) + _nbytes(coarse) + _nbytes(skip)
                      + N * H2 * W2 * (C * 2 * int(emit_raw) + Csm * 4))

    outs = pl.pallas_call(
        _make_fpn_kernel(sm_cfg, emit_raw),
        out_shape=tuple(out_shape),
        grid=(N,),
        in_specs=in_specs,
        out_specs=tuple(out_specs),
        scratch_shapes=[pltpu.VMEM((H2, 3 * W2 * C), jnp.bfloat16)],
        compiler_params=pltpu.CompilerParams(dimension_semantics=("parallel",)),
        cost_estimate=pl.CostEstimate(flops=int(N * flops), transcendentals=0,
                                      bytes_accessed=int(bytes_accessed)),
    )(coarse, skip, *weights)
    return outs if emit_raw else outs[0]


# ---------------------------------------------------------------------------
# FeatureNet forward (NCHW in / NCHW out, like the PyTorch module)
# ---------------------------------------------------------------------------
def feature_net_forward(prepared, x_nchw):
    N, Cin, H, W = x_nchw.shape
    assert Cin == 3 and H % 4 == 0 and W % 4 == 0
    x = jnp.transpose(x_nchw, (0, 2, 3, 1)).astype(jnp.bfloat16)
    x = jnp.pad(x, ((0, 0), (0, 0), (0, 0), (0, 8 - Cin)))      # 3 -> 8 channels (lane-dense)
    x2 = x.reshape(N, H, W * 8)

    # encoder + toplayer: one fused kernel
    c0, c1, feat2 = _encoder_call(x2, H, W, prepared["enc"])

    # FPN decoder: one fused kernel per level (upsample + lateral + add + smooth)
    feat1_raw, feat1 = _fpn_level_call(feat2, c1, H // 4, W // 4, 32, 16, 16,
                                       prepared["lvl1"], emit_raw=True)
    feat0 = _fpn_level_call(feat1_raw, c0, H // 2, W // 2, 32, 8, 8,
                            prepared["lvl0"], emit_raw=False)

    def to_nchw(t, h, w, c):
        return jnp.transpose(t.reshape(N, h, w, c), (0, 3, 1, 2))

    return [to_nchw(feat2, H // 4, W // 4, 32),
            to_nchw(feat1, H // 2, W // 2, 16),
            to_nchw(feat0, H, W, 8)]


# ---------------------------------------------------------------------------
# Parameter initialization (deterministic, synthetic)
# ---------------------------------------------------------------------------
def init_params(key):
    keys = iter(jax.random.split(key, 64))

    def conv_w(kh, kw, cin, cout):
        fan_in = kh * kw * cin
        return jax.random.normal(next(keys), (kh, kw, cin, cout),
                                 jnp.float32) / np.sqrt(fan_in)

    def bn(c):
        return dict(
            gamma=jax.random.uniform(next(keys), (c,), jnp.float32, 0.5, 1.5),
            beta=jax.random.normal(next(keys), (c,), jnp.float32) * 0.1,
            mean=jax.random.normal(next(keys), (c,), jnp.float32) * 0.1,
            var=jax.random.uniform(next(keys), (c,), jnp.float32, 0.5, 1.5),
        )

    def cbr(kh, kw, cin, cout):
        return dict(w=conv_w(kh, kw, cin, cout), bn=bn(cout))

    def conv_b(kh, kw, cin, cout):
        return dict(w=conv_w(kh, kw, cin, cout),
                    b=jax.random.normal(next(keys), (cout,), jnp.float32) * 0.1)

    return dict(
        conv0=[cbr(3, 3, 3, 8), cbr(3, 3, 8, 8)],
        conv1=[cbr(5, 5, 8, 16), cbr(3, 3, 16, 16), cbr(3, 3, 16, 16)],
        conv2=[cbr(5, 5, 16, 32), cbr(3, 3, 32, 32), cbr(3, 3, 32, 32)],
        toplayer=conv_b(1, 1, 32, 32),
        lat1=conv_b(1, 1, 16, 32),
        lat0=conv_b(1, 1, 8, 32),
        smooth1=conv_b(3, 3, 32, 16),
        smooth0=conv_b(3, 3, 32, 8),
    )


# ---------------------------------------------------------------------------
# Pure-JAX (XLA) reference of the same forward pass, all float32
# ---------------------------------------------------------------------------
def _conv_ref(x, w, stride, pad):
    return jax.lax.conv_general_dilated(
        x, w, window_strides=(stride, stride),
        padding=((pad, pad), (pad, pad)),
        dimension_numbers=("NHWC", "HWIO", "NHWC"))


def _cbr_ref(x, p, stride, pad):
    scale = p["bn"]["gamma"] / jnp.sqrt(p["bn"]["var"] + BN_EPS)
    bias = p["bn"]["beta"] - p["bn"]["mean"] * scale
    return jnp.maximum(_conv_ref(x, p["w"], stride, pad) * scale + bias, 0.0)


def _plain_ref(x, p, stride, pad):
    return _conv_ref(x, p["w"], stride, pad) + p["b"]


def _upsample_ref(x):
    N, H, W, C = x.shape
    uh = jnp.asarray(_bilinear_matrix(H, 2 * H))
    uw = jnp.asarray(_bilinear_matrix(W, 2 * W))
    x = jnp.einsum("ah,nhwc->nawc", uh, x)
    return jnp.einsum("bw,nawc->nabc", uw, x)


def feature_net_ref(params, x_nchw):
    x = jnp.transpose(x_nchw, (0, 2, 3, 1)).astype(jnp.float32)
    c0 = _cbr_ref(_cbr_ref(x, params["conv0"][0], 1, 1), params["conv0"][1], 1, 1)
    c1 = _cbr_ref(c0, params["conv1"][0], 2, 2)
    c1 = _cbr_ref(c1, params["conv1"][1], 1, 1)
    c1 = _cbr_ref(c1, params["conv1"][2], 1, 1)
    c2 = _cbr_ref(c1, params["conv2"][0], 2, 2)
    c2 = _cbr_ref(c2, params["conv2"][1], 1, 1)
    c2 = _cbr_ref(c2, params["conv2"][2], 1, 1)
    feat2 = _plain_ref(c2, params["toplayer"], 1, 0)
    feat1 = _upsample_ref(feat2) + _plain_ref(c1, params["lat1"], 1, 0)
    feat0 = _upsample_ref(feat1) + _plain_ref(c0, params["lat0"], 1, 0)
    feat1 = _plain_ref(feat1, params["smooth1"], 1, 1)
    feat0 = _plain_ref(feat0, params["smooth0"], 1, 1)
    to_nchw = lambda t: jnp.transpose(t, (0, 3, 1, 2))
    return [to_nchw(feat2), to_nchw(feat1), to_nchw(feat0)]


if __name__ == "__main__":
    key = jax.random.PRNGKey(0)
    pkey, xkey = jax.random.split(key)
    params = init_params(pkey)

    # small shapes consistent with the module: NCHW, 3 input channels
    H = W = 16
    x = jax.random.normal(xkey, (2, 3, H, W), jnp.float32)

    prepared = prepare_params(params, H, W)          # host-side weight prep (outside jit)
    feats = jax.block_until_ready(jax.jit(feature_net_forward)(prepared, x))

    assert feats[0].shape == (2, 32, 4, 4), feats[0].shape
    assert feats[1].shape == (2, 16, 8, 8), feats[1].shape
    assert feats[2].shape == (2, 8, 16, 16), feats[2].shape

    # compare against the pure-JAX reference (kernels use bf16 MXU operands -> loose tol)
    refs = jax.block_until_ready(jax.jit(feature_net_ref)(params, x))
    for f, r in zip(feats, refs):
        assert bool(jnp.all(jnp.isfinite(f)))
        rel = float(jnp.sqrt(jnp.sum((f - r) ** 2)) /
                    (jnp.sqrt(jnp.sum(r ** 2)) + 1e-12))
        assert rel < 8e-2, f"relative error too large: {rel}"

    print("KERNEL_OK")
</pallas_src>

<mosaic_0001>
module attributes {stable_mosaic.version = 11 : i64} {
  func.func @kernel(%arg0: i32, %arg1: memref<1x4x128xf32, #tpu.memory_space<vmem>>, %arg2: memref<1x8x128xbf16, #tpu.memory_space<vmem>>, %arg3: memref<8x4xf32, #tpu.memory_space<vmem>>, %arg4: memref<128x256xf32, #tpu.memory_space<vmem>>, %arg5: memref<128x256xbf16, #tpu.memory_space<vmem>>, %arg6: memref<1x256xf32, #tpu.memory_space<vmem>>, %arg7: memref<768x128xbf16, #tpu.memory_space<vmem>>, %arg8: memref<1x128xf32, #tpu.memory_space<vmem>>, %arg9: memref<1x8x256xbf16, #tpu.memory_space<vmem>>, %arg10: memref<1x8x128xf32, #tpu.memory_space<vmem>>, %arg11: memref<8x768xbf16, #tpu.memory_space<vmem>>) attributes {dimension_semantics = [#tpu.dimension_semantics<parallel>], iteration_bounds = array<i64: 2>, scalar_prefetch = 0 : i64, scratch_operands = 1 : i64, tpu.core_type = #tpu.core_type<tc>, window_params = [{transform_indices = @transform_0, window_bounds = array<i64: 1, 4, 128>}, {transform_indices = @transform_1, window_bounds = array<i64: 1, 8, 128>}, {pipeline_mode = #tpu.pipeline_mode<synchronous>, transform_indices = @transform_2, window_bounds = array<i64: 8, 4>}, {pipeline_mode = #tpu.pipeline_mode<synchronous>, transform_indices = @transform_3, window_bounds = array<i64: 128, 256>}, {pipeline_mode = #tpu.pipeline_mode<synchronous>, transform_indices = @transform_4, window_bounds = array<i64: 128, 256>}, {pipeline_mode = #tpu.pipeline_mode<synchronous>, transform_indices = @transform_5, window_bounds = array<i64: 1, 256>}, {pipeline_mode = #tpu.pipeline_mode<synchronous>, transform_indices = @transform_6, window_bounds = array<i64: 768, 128>}, {pipeline_mode = #tpu.pipeline_mode<synchronous>, transform_indices = @transform_7, window_bounds = array<i64: 1, 128>}, {transform_indices = @transform_8, window_bounds = array<i64: 1, 8, 256>}, {transform_indices = @transform_9, window_bounds = array<i64: 1, 8, 128>}]} {
    %c0 = arith.constant 0 : index
    %c0_0 = arith.constant 0 : index
    %c0_1 = arith.constant 0 : index
    %0 = vector.load %arg1[%c0, %c0_0, %c0_1] : memref<1x4x128xf32, #tpu.memory_space<vmem>>, vector<1x4x128xf32>
    %1 = vector.shape_cast %0 : vector<1x4x128xf32> to vector<4x128xf32>
    %c0_2 = arith.constant 0 : index
    %c0_3 = arith.constant 0 : index
    %2 = vector.load %arg3[%c0_2, %c0_3] : memref<8x4xf32, #tpu.memory_space<vmem>>, vector<8x4xf32>
    %cst = arith.constant dense<0.000000e+00> : vector<8x128xf32>
    %3 = tpu.matmul %2, %1, %cst {dimension_numbers = #tpu.dot_dimension_numbers<[1], [0], [0], [1], [0, 0, 1, 1], [], []>} : vector<8x4xf32>, vector<4x128xf32>, vector<8x128xf32> -> vector<8x128xf32>
    %c0_4 = arith.constant 0 : index
    %c0_5 = arith.constant 0 : index
    %4 = vector.load %arg4[%c0_4, %c0_5] : memref<128x256xf32, #tpu.memory_space<vmem>>, vector<128x256xf32>
    %cst_6 = arith.constant dense<0.000000e+00> : vector<8x256xf32>
    %5 = tpu.matmul %3, %4, %cst_6 {dimension_numbers = #tpu.dot_dimension_numbers<[1], [0], [0], [1], [0, 0, 1, 1], [], []>} : vector<8x128xf32>, vector<128x256xf32>, vector<8x256xf32> -> vector<8x256xf32>
    %c0_7 = arith.constant 0 : index
    %c0_8 = arith.constant 0 : index
    %c0_9 = arith.constant 0 : index
    %6 = vector.load %arg2[%c0_7, %c0_8, %c0_9] : memref<1x8x128xbf16, #tpu.memory_space<vmem>>, vector<1x8x128xbf16>
    %7 = vector.shape_cast %6 : vector<1x8x128xbf16> to vector<8x128xbf16>
    %c0_10 = arith.constant 0 : index
    %c0_11 = arith.constant 0 : index
    %8 = vector.load %arg5[%c0_10, %c0_11] : memref<128x256xbf16, #tpu.memory_space<vmem>>, vector<128x256xbf16>
    %cst_12 = arith.constant dense<0.000000e+00> : vector<8x256xf32>
    %9 = tpu.matmul %7, %8, %cst_12 {dimension_numbers = #tpu.dot_dimension_numbers<[1], [0], [0], [1], [0, 0, 1, 1], [], []>} : vector<8x128xbf16>, vector<128x256xbf16>, vector<8x256xf32> -> vector<8x256xf32>
    %10 = arith.addf %5, %9 : vector<8x256xf32>
    %c0_13 = arith.constant 0 : index
    %c0_14 = arith.constant 0 : index
    %11 = vector.load %arg6[%c0_13, %c0_14] : memref<1x256xf32, #tpu.memory_space<vmem>>, vector<1x256xf32>
    %12 = vector.broadcast %11 : vector<1x256xf32> to vector<8x256xf32>
    %13 = arith.addf %10, %12 : vector<8x256xf32>
    %14 = arith.truncf %13 : vector<8x256xf32> to vector<8x256xbf16>
    %c0_15 = arith.constant 0 : index
    %c0_16 = arith.constant 0 : index
    %c0_17 = arith.constant 0 : index
    %15 = vector.load %arg9[%c0_15, %c0_16, %c0_17] : memref<1x8x256xbf16, #tpu.memory_space<vmem>>, vector<1x8x256xbf16>
    %16 = vector.shape_cast %15 : vector<1x8x256xbf16> to vector<8x256xbf16>
    %17 = vector.shape_cast %14 : vector<8x256xbf16> to vector<1x8x256xbf16>
    tpu.vector_store %arg9[%c0_15, %c0_16, %c0_17], %17 {strides = array<i32>} : memref<1x8x256xbf16, #tpu.memory_space<vmem>>, vector<1x8x256xbf16>,
    %18 = arith.truncf %13 : vector<8x256xf32> to vector<8x256xbf16>
    %cst_18 = arith.constant 0.000000e+00 : bf16
    %19 = vector.broadcast %cst_18 : bf16 to vector<1x256xbf16>
    %c0_19 = arith.constant 0 : index
    %c0_20 = arith.constant 0 : index
    %20 = vector.load %arg11[%c0_19, %c0_20] : memref<8x768xbf16, #tpu.memory_space<vmem>>, vector<1x256xbf16>
    tpu.vector_store %arg11[%c0_19, %c0_20], %19 {strides = array<i32>} : memref<8x768xbf16, #tpu.memory_space<vmem>>, vector<1x256xbf16>,
    %21 = vector.extract_strided_slice %18 {offsets = [0, 0], sizes = [7, 256], strides = [1, 1]} : vector<8x256xbf16> to vector<7x256xbf16>
    %c1 = arith.constant 1 : index
    %c0_21 = arith.constant 0 : index
    %22 = vector.load %arg11[%c1, %c0_21] : memref<8x768xbf16, #tpu.memory_space<vmem>>, vector<7x256xbf16>
    tpu.vector_store %arg11[%c1, %c0_21], %21 {strides = array<i32>} : memref<8x768xbf16, #tpu.memory_space<vmem>>, vector<7x256xbf16>,
    %c0_22 = arith.constant 0 : index
    %c256 = arith.constant 256 : index
    %23 = vector.load %arg11[%c0_22, %c256] : memref<8x768xbf16, #tpu.memory_space<vmem>>, vector<8x256xbf16>
    tpu.vector_store %arg11[%c0_22, %c256], %18 {strides = array<i32>} : memref<8x768xbf16, #tpu.memory_space<vmem>>, vector<8x256xbf16>,
    %cst_23 = arith.constant 0.000000e+00 : bf16
    %24 = vector.broadcast %cst_23 : bf16 to vector<1x256xbf16>
    %c7 = arith.constant 7 : index
    %c512 = arith.constant 512 : index
    %25 = vector.load %arg11[%c7, %c512] : memref<8x768xbf16, #tpu.memory_space<vmem>>, vector<1x256xbf16>
    tpu.vector_store %arg11[%c7, %c512], %24 {strides = array<i32>} : memref<8x768xbf16, #tpu.memory_space<vmem>>, vector<1x256xbf16>,
    %26 = vector.extract_strided_slice %18 {offsets = [1, 0], sizes = [7, 256], strides = [1, 1]} : vector<8x256xbf16> to vector<7x256xbf16>
    %c0_24 = arith.constant 0 : index
    %c512_25 = arith.constant 512 : index
    %27 = vector.load %arg11[%c0_24, %c512_25] : memref<8x768xbf16, #tpu.memory_space<vmem>>, vector<7x256xbf16>
    tpu.vector_store %arg11[%c0_24, %c512_25], %26 {strides = array<i32>} : memref<8x768xbf16, #tpu.memory_space<vmem>>, vector<7x256xbf16>,
    %c0_26 = arith.constant 0 : index
    %c0_27 = arith.constant 0 : index
    %28 = vector.load %arg11[%c0_26, %c0_27] : memref<8x768xbf16, #tpu.memory_space<vmem>>, vector<8x768xbf16>
    %c0_28 = arith.constant 0 : index
    %c0_29 = arith.constant 0 : index
    %29 = vector.load %arg7[%c0_28, %c0_29] : memref<768x128xbf16, #tpu.memory_space<vmem>>, vector<768x128xbf16>
    %cst_30 = arith.constant dense<0.000000e+00> : vector<8x128xf32>
    %30 = tpu.matmul %28, %29, %cst_30 {dimension_numbers = #tpu.dot_dimension_numbers<[1], [0], [0], [1], [0, 0, 1, 1], [], []>} : vector<8x768xbf16>, vector<768x128xbf16>, vector<8x128xf32> -> vector<8x128xf32>
    %c0_31 = arith.constant 0 : index
    %c0_32 = arith.constant 0 : index
    %31 = vector.load %arg8[%c0_31, %c0_32] : memref<1x128xf32, #tpu.memory_space<vmem>>, vector<1x128xf32>
    %32 = vector.broadcast %31 : vector<1x128xf32> to vector<8x128xf32>
    %33 = arith.addf %30, %32 : vector<8x128xf32>
    %c0_33 = arith.constant 0 : index
    %c0_34 = arith.constant 0 : index
    %c0_35 = arith.constant 0 : index
    %34 = vector.load %arg10[%c0_33, %c0_34, %c0_35] : memref<1x8x128xf32, #tpu.memory_space<vmem>>, vector<1x8x128xf32>
    %35 = vector.shape_cast %34 : vector<1x8x128xf32> to vector<8x128xf32>
    %36 = vector.shape_cast %33 : vector<8x128xf32> to vector<1x8x128xf32>
    tpu.vector_store %arg10[%c0_33, %c0_34, %c0_35], %36 {strides = array<i32>} : memref<1x8x128xf32, #tpu.memory_space<vmem>>, vector<1x8x128xf32>,
    return
  }
  func.func @transform_0(%arg0: i32) -> (i32, i32, i32) {
    %c0_i32 = arith.constant 0 : i32
    %c0_i32_0 = arith.constant 0 : i32
    %c0_i32_1 = arith.constant 0 : i32
    return %arg0, %c0_i32, %c0_i32_0 : i32, i32, i32
  }
  func.func @transform_1(%arg0: i32) -> (i32, i32, i32) {
    %c0_i32 = arith.constant 0 : i32
    %c0_i32_0 = arith.constant 0 : i32
    %c0_i32_1 = arith.constant 0 : i32
    return %arg0, %c0_i32, %c0_i32_0 : i32, i32, i32
  }
  func.func @transform_2(%arg0: i32) -> (i32, i32) {
    %c0_i32 = arith.constant 0 : i32
    %c0_i32_0 = arith.constant 0 : i32
    %c0_i32_1 = arith.constant 0 : i32
    return %c0_i32, %c0_i32_0 : i32, i32
  }
  func.func @transform_3(%arg0: i32) -> (i32, i32) {
    %c0_i32 = arith.constant 0 : i32
    %c0_i32_0 = arith.constant 0 : i32
    %c0_i32_1 = arith.constant 0 : i32
    return %c0_i32, %c0_i32_0 : i32, i32
  }
  func.func @transform_4(%arg0: i32) -> (i32, i32) {
    %c0_i32 = arith.constant 0 : i32
    %c0_i32_0 = arith.constant 0 : i32
    %c0_i32_1 = arith.constant 0 : i32
    return %c0_i32, %c0_i32_0 : i32, i32
  }
  func.func @transform_5(%arg0: i32) -> (i32, i32) {
    %c0_i32 = arith.constant 0 : i32
    %c0_i32_0 = arith.constant 0 : i32
    %c0_i32_1 = arith.constant 0 : i32
    return %c0_i32, %c0_i32_0 : i32, i32
  }
  func.func @transform_6(%arg0: i32) -> (i32, i32) {
    %c0_i32 = arith.constant 0 : i32
    %c0_i32_0 = arith.constant 0 : i32
    %c0_i32_1 = arith.constant 0 : i32
    return %c0_i32, %c0_i32_0 : i32, i32
  }
  func.func @transform_7(%arg0: i32) -> (i32, i32) {
    %c0_i32 = arith.constant 0 : i32
    %c0_i32_0 = arith.constant 0 : i32
    %c0_i32_1 = arith.constant 0 : i32
    return %c0_i32, %c0_i32_0 : i32, i32
  }
  func.func @transform_8(%arg0: i32) -> (i32, i32, i32) {
    %c0_i32 = arith.constant 0 : i32
    %c0_i32_0 = arith.constant 0 : i32
    %c0_i32_1 = arith.constant 0 : i32
    return %arg0, %c0_i32, %c0_i32_0 : i32, i32, i32
  }
  func.func @transform_9(%arg0: i32) -> (i32, i32, i32) {
    %c0_i32 = arith.constant 0 : i32
    %c0_i32_0 = arith.constant 0 : i32
    %c0_i32_1 = arith.constant 0 : i32
    return %arg0, %c0_i32, %c0_i32_0 : i32, i32, i32
  }
}

module attributes {stable_mosaic.version = 11 : i64} {
  func.func @kernel(%arg0: i32, %arg1: memref<1x8x256xbf16, #tpu.memory_space<vmem>>, %arg2: memref<1x16x128xbf16, #tpu.memory_space<vmem>>, %arg3: memref<16x8xf32, #tpu.memory_space<vmem>>, %arg4: memref<256x512xf32, #tpu.memory_space<vmem>>, %arg5: memref<128x512xbf16, #tpu.memory_space<vmem>>, %arg6: memref<1x512xf32, #tpu.memory_space<vmem>>, %arg7: memref<1536x128xbf16, #tpu.memory_space<vmem>>, %arg8: memref<1x128xf32, #tpu.memory_space<vmem>>, %arg9: memref<1x16x128xf32, #tpu.memory_space<vmem>>, %arg10: memref<16x1536xbf16, #tpu.memory_space<vmem>>) attributes {dimension_semantics = [#tpu.dimension_semantics<parallel>], iteration_bounds = array<i64: 2>, scalar_prefetch = 0 : i64, scratch_operands = 1 : i64, tpu.core_type = #tpu.core_type<tc>, window_params = [{transform_indices = @transform_0, window_bounds = array<i64: 1, 8, 256>}, {transform_indices = @transform_1, window_bounds = array<i64: 1, 16, 128>}, {pipeline_mode = #tpu.pipeline_mode<synchronous>, transform_indices = @transform_2, window_bounds = array<i64: 16, 8>}, {pipeline_mode = #tpu.pipeline_mode<synchronous>, transform_indices = @transform_3, window_bounds = array<i64: 256, 512>}, {pipeline_mode = #tpu.pipeline_mode<synchronous>, transform_indices = @transform_4, window_bounds = array<i64: 128, 512>}, {pipeline_mode = #tpu.pipeline_mode<synchronous>, transform_indices = @transform_5, window_bounds = array<i64: 1, 512>}, {pipeline_mode = #tpu.pipeline_mode<synchronous>, transform_indices = @transform_6, window_bounds = array<i64: 1536, 128>}, {pipeline_mode = #tpu.pipeline_mode<synchronous>, transform_indices = @transform_7, window_bounds = array<i64: 1, 128>}, {transform_indices = @transform_8, window_bounds = array<i64: 1, 16, 128>}]} {
    %c0 = arith.constant 0 : index
    %c0_0 = arith.constant 0 : index
    %c0_1 = arith.constant 0 : index
    %0 = vector.load %arg1[%c0, %c0_0, %c0_1] : memref<1x8x256xbf16, #tpu.memory_space<vmem>>, vector<1x8x256xbf16>
    %1 = vector.shape_cast %0 : vector<1x8x256xbf16> to vector<8x256xbf16>
    %2 = arith.extf %1 : vector<8x256xbf16> to vector<8x256xf32>
    %c0_2 = arith.constant 0 : index
    %c0_3 = arith.constant 0 : index
    %3 = vector.load %arg3[%c0_2, %c0_3] : memref<16x8xf32, #tpu.memory_space<vmem>>, vector<16x8xf32>
    %cst = arith.constant dense<0.000000e+00> : vector<16x256xf32>
    %4 = tpu.matmul %3, %2, %cst {dimension_numbers = #tpu.dot_dimension_numbers<[1], [0], [0], [1], [0, 0, 1, 1], [], []>} : vector<16x8xf32>, vector<8x256xf32>, vector<16x256xf32> -> vector<16x256xf32>
    %c0_4 = arith.constant 0 : index
    %c0_5 = arith.constant 0 : index
    %5 = vector.load %arg4[%c0_4, %c0_5] : memref<256x512xf32, #tpu.memory_space<vmem>>, vector<256x512xf32>
    %cst_6 = arith.constant dense<0.000000e+00> : vector<16x512xf32>
    %6 = tpu.matmul %4, %5, %cst_6 {dimension_numbers = #tpu.dot_dimension_numbers<[1], [0], [0], [1], [0, 0, 1, 1], [], []>} : vector<16x256xf32>, vector<256x512xf32>, vector<16x512xf32> -> vector<16x512xf32>
    %c0_7 = arith.constant 0 : index
    %c0_8 = arith.constant 0 : index
    %c0_9 = arith.constant 0 : index
    %7 = vector.load %arg2[%c0_7, %c0_8, %c0_9] : memref<1x16x128xbf16, #tpu.memory_space<vmem>>, vector<1x16x128xbf16>
    %8 = vector.shape_cast %7 : vector<1x16x128xbf16> to vector<16x128xbf16>
    %c0_10 = arith.constant 0 : index
    %c0_11 = arith.constant 0 : index
    %9 = vector.load %arg5[%c0_10, %c0_11] : memref<128x512xbf16, #tpu.memory_space<vmem>>, vector<128x512xbf16>
    %cst_12 = arith.constant dense<0.000000e+00> : vector<16x512xf32>
    %10 = tpu.matmul %8, %9, %cst_12 {dimension_numbers = #tpu.dot_dimension_numbers<[1], [0], [0], [1], [0, 0, 1, 1], [], []>} : vector<16x128xbf16>, vector<128x512xbf16>, vector<16x512xf32> -> vector<16x512xf32>
    %11 = arith.addf %6, %10 : vector<16x512xf32>
    %c0_13 = arith.constant 0 : index
    %c0_14 = arith.constant 0 : index
    %12 = vector.load %arg6[%c0_13, %c0_14] : memref<1x512xf32, #tpu.memory_space<vmem>>, vector<1x512xf32>
    %13 = vector.broadcast %12 : vector<1x512xf32> to vector<16x512xf32>
    %14 = arith.addf %11, %13 : vector<16x512xf32>
    %15 = arith.truncf %14 : vector<16x512xf32> to vector<16x512xbf16>
    %cst_15 = arith.constant 0.000000e+00 : bf16
    %16 = vector.broadcast %cst_15 : bf16 to vector<1x512xbf16>
    %c0_16 = arith.constant 0 : index
    %c0_17 = arith.constant 0 : index
    %17 = vector.load %arg10[%c0_16, %c0_17] : memref<16x1536xbf16, #tpu.memory_space<vmem>>, vector<1x512xbf16>
    tpu.vector_store %arg10[%c0_16, %c0_17], %16 {strides = array<i32>} : memref<16x1536xbf16, #tpu.memory_space<vmem>>, vector<1x512xbf16>,
    %18 = vector.extract_strided_slice %15 {offsets = [0, 0], sizes = [15, 512], strides = [1, 1]} : vector<16x512xbf16> to vector<15x512xbf16>
    %c1 = arith.constant 1 : index
    %c0_18 = arith.constant 0 : index
    %19 = vector.load %arg10[%c1, %c0_18] : memref<16x1536xbf16, #tpu.memory_space<vmem>>, vector<15x512xbf16>
    tpu.vector_store %arg10[%c1, %c0_18], %18 {strides = array<i32>} : memref<16x1536xbf16, #tpu.memory_space<vmem>>, vector<15x512xbf16>,
    %c0_19 = arith.constant 0 : index
    %c512 = arith.constant 512 : index
    %20 = vector.load %arg10[%c0_19, %c512] : memref<16x1536xbf16, #tpu.memory_space<vmem>>, vector<16x512xbf16>
    tpu.vector_store %arg10[%c0_19, %c512], %15 {strides = array<i32>} : memref<16x1536xbf16, #tpu.memory_space<vmem>>, vector<16x512xbf16>,
    %cst_20 = arith.constant 0.000000e+00 : bf16
    %21 = vector.broadcast %cst_20 : bf16 to vector<1x512xbf16>
    %c15 = arith.constant 15 : index
    %c1024 = arith.constant 1024 : index
    %22 = vector.load %arg10[%c15, %c1024] : memref<16x1536xbf16, #tpu.memory_space<vmem>>, vector<1x512xbf16>
    tpu.vector_store %arg10[%c15, %c1024], %21 {strides = array<i32>} : memref<16x1536xbf16, #tpu.memory_space<vmem>>, vector<1x512xbf16>,
    %23 = vector.extract_strided_slice %15 {offsets = [1, 0], sizes = [15, 512], strides = [1, 1]} : vector<16x512xbf16> to vector<15x512xbf16>
    %c0_21 = arith.constant 0 : index
    %c1024_22 = arith.constant 1024 : index
    %24 = vector.load %arg10[%c0_21, %c1024_22] : memref<16x1536xbf16, #tpu.memory_space<vmem>>, vector<15x512xbf16>
    tpu.vector_store %arg10[%c0_21, %c1024_22], %23 {strides = array<i32>} : memref<16x1536xbf16, #tpu.memory_space<vmem>>, vector<15x512xbf16>,
    %c0_23 = arith.constant 0 : index
    %c0_24 = arith.constant 0 : index
    %25 = vector.load %arg10[%c0_23, %c0_24] : memref<16x1536xbf16, #tpu.memory_space<vmem>>, vector<16x1536xbf16>
    %c0_25 = arith.constant 0 : index
    %c0_26 = arith.constant 0 : index
    %26 = vector.load %arg7[%c0_25, %c0_26] : memref<1536x128xbf16, #tpu.memory_space<vmem>>, vector<1536x128xbf16>
    %cst_27 = arith.constant dense<0.000000e+00> : vector<16x128xf32>
    %27 = tpu.matmul %25, %26, %cst_27 {dimension_numbers = #tpu.dot_dimension_numbers<[1], [0], [0], [1], [0, 0, 1, 1], [], []>} : vector<16x1536xbf16>, vector<1536x128xbf16>, vector<16x128xf32> -> vector<16x128xf32>
    %c0_28 = arith.constant 0 : index
    %c0_29 = arith.constant 0 : index
    %28 = vector.load %arg8[%c0_28, %c0_29] : memref<1x128xf32, #tpu.memory_space<vmem>>, vector<1x128xf32>
    %29 = vector.broadcast %28 : vector<1x128xf32> to vector<16x128xf32>
    %30 = arith.addf %27, %29 : vector<16x128xf32>
    %c0_30 = arith.constant 0 : index
    %c0_31 = arith.constant 0 : index
    %c0_32 = arith.constant 0 : index
    %31 = vector.load %arg9[%c0_30, %c0_31, %c0_32] : memref<1x16x128xf32, #tpu.memory_space<vmem>>, vector<1x16x128xf32>
    %32 = vector.shape_cast %31 : vector<1x16x128xf32> to vector<16x128xf32>
    %33 = vector.shape_cast %30 : vector<16x128xf32> to vector<1x16x128xf32>
    tpu.vector_store %arg9[%c0_30, %c0_31, %c0_32], %33 {strides = array<i32>} : memref<1x16x128xf32, #tpu.memory_space<vmem>>, vector<1x16x128xf32>,
    return
  }
  func.func @transform_0(%arg0: i32) -> (i32, i32, i32) {
    %c0_i32 = arith.constant 0 : i32
    %c0_i32_0 = arith.constant 0 : i32
    %c0_i32_1 = arith.constant 0 : i32
    return %arg0, %c0_i32, %c0_i32_0 : i32, i32, i32
  }
  func.func @transform_1(%arg0: i32) -> (i32, i32, i32) {
    %c0_i32 = arith.constant 0 : i32
    %c0_i32_0 = arith.constant 0 : i32
    %c0_i32_1 = arith.constant 0 : i32
    return %arg0, %c0_i32, %c0_i32_0 : i32, i32, i32
  }
  func.func @transform_2(%arg0: i32) -> (i32, i32) {
    %c0_i32 = arith.constant 0 : i32
    %c0_i32_0 = arith.constant 0 : i32
    %c0_i32_1 = arith.constant 0 : i32
    return %c0_i32, %c0_i32_0 : i32, i32
  }
  func.func @transform_3(%arg0: i32) -> (i32, i32) {
    %c0_i32 = arith.constant 0 : i32
    %c0_i32_0 = arith.constant 0 : i32
    %c0_i32_1 = arith.constant 0 : i32
    return %c0_i32, %c0_i32_0 : i32, i32
  }
  func.func @transform_4(%arg0: i32) -> (i32, i32) {
    %c0_i32 = arith.constant 0 : i32
    %c0_i32_0 = arith.constant 0 : i32
    %c0_i32_1 = arith.constant 0 : i32
    return %c0_i32, %c0_i32_0 : i32, i32
  }
  func.func @transform_5(%arg0: i32) -> (i32, i32) {
    %c0_i32 = arith.constant 0 : i32
    %c0_i32_0 = arith.constant 0 : i32
    %c0_i32_1 = arith.constant 0 : i32
    return %c0_i32, %c0_i32_0 : i32, i32
  }
  func.func @transform_6(%arg0: i32) -> (i32, i32) {
    %c0_i32 = arith.constant 0 : i32
    %c0_i32_0 = arith.constant 0 : i32
    %c0_i32_1 = arith.constant 0 : i32
    return %c0_i32, %c0_i32_0 : i32, i32
  }
  func.func @transform_7(%arg0: i32) -> (i32, i32) {
    %c0_i32 = arith.constant 0 : i32
    %c0_i32_0 = arith.constant 0 : i32
    %c0_i32_1 = arith.constant 0 : i32
    return %c0_i32, %c0_i32_0 : i32, i32
  }
  func.func @transform_8(%arg0: i32) -> (i32, i32, i32) {
    %c0_i32 = arith.constant 0 : i32
    %c0_i32_0 = arith.constant 0 : i32
    %c0_i32_1 = arith.constant 0 : i32
    return %arg0, %c0_i32, %c0_i32_0 : i32, i32, i32
  }
}

module attributes {stable_mosaic.version = 11 : i64} {
  func.func @kernel(%arg0: i32, %arg1: memref<1x16x128xbf16, #tpu.memory_space<vmem>>, %arg2: memref<384x128xbf16, #tpu.memory_space<vmem>>, %arg3: memref<1x128xf32, #tpu.memory_space<vmem>>, %arg4: memref<384x128xbf16, #tpu.memory_space<vmem>>, %arg5: memref<1x128xf32, #tpu.memory_space<vmem>>, %arg6: memref<2x8x16xbf16, #tpu.memory_space<vmem>>, %arg7: memref<2x128x256xbf16, #tpu.memory_space<vmem>>, %arg8: memref<768x128xbf16, #tpu.memory_space<vmem>>, %arg9: memref<1x128xf32, #tpu.memory_space<vmem>>, %arg10: memref<384x128xbf16, #tpu.memory_space<vmem>>, %arg11: memref<1x128xf32, #tpu.memory_space<vmem>>, %arg12: memref<384x128xbf16, #tpu.memory_space<vmem>>, %arg13: memref<1x128xf32, #tpu.memory_space<vmem>>, %arg14: memref<2x4x8xbf16, #tpu.memory_space<vmem>>, %arg15: memref<2x128x256xbf16, #tpu.memory_space<vmem>>, %arg16: memref<768x128xbf16, #tpu.memory_space<vmem>>, %arg17: memref<1x128xf32, #tpu.memory_space<vmem>>, %arg18: memref<384x128xbf16, #tpu.memory_space<vmem>>, %arg19: memref<1x128xf32, #tpu.memory_space<vmem>>, %arg20: memref<384x128xbf16, #tpu.memory_space<vmem>>, %arg21: memref<1x128xf32, #tpu.memory_space<vmem>>, %arg22: memref<128x128xbf16, #tpu.memory_space<vmem>>, %arg23: memref<1x128xf32, #tpu.memory_space<vmem>>, %arg24: memref<1x16x128xbf16, #tpu.memory_space<vmem>>, %arg25: memref<1x8x128xbf16, #tpu.memory_space<vmem>>, %arg26: memref<1x4x128xf32, #tpu.memory_space<vmem>>, %arg27: memref<16x384xbf16, #tpu.memory_space<vmem>>, %arg28: memref<16x384xbf16, #tpu.memory_space<vmem>>, %arg29: memref<8x768xbf16, #tpu.memory_space<vmem>>, %arg30: memref<8x384xbf16, #tpu.memory_space<vmem>>, %arg31: memref<8x384xbf16, #tpu.memory_space<vmem>>, %arg32: memref<4x768xbf16, #tpu.memory_space<vmem>>, %arg33: memref<4x384xbf16, #tpu.memory_space<vmem>>, %arg34: memref<4x384xbf16, #tpu.memory_space<vmem>>, %arg35: memref<4x128xbf16, #tpu.memory_space<vmem>>) attributes {dimension_semantics = [#tpu.dimension_semantics<parallel>], iteration_bounds = array<i64: 2>, scalar_prefetch = 0 : i64, scratch_operands = 9 : i64, tpu.core_type = #tpu.core_type<tc>, window_params = [{transform_indices = @transform_0, window_bounds = array<i64: 1, 16, 128>}, {pipeline_mode = #tpu.pipeline_mode<synchronous>, transform_indices = @transform_1, window_bounds = array<i64: 384, 128>}, {pipeline_mode = #tpu.pipeline_mode<synchronous>, transform_indices = @transform_2, window_bounds = array<i64: 1, 128>}, {pipeline_mode = #tpu.pipeline_mode<synchronous>, transform_indices = @transform_3, window_bounds = array<i64: 384, 128>}, {pipeline_mode = #tpu.pipeline_mode<synchronous>, transform_indices = @transform_4, window_bounds = array<i64: 1, 128>}, {pipeline_mode = #tpu.pipeline_mode<synchronous>, transform_indices = @transform_5, window_bounds = array<i64: 2, 8, 16>}, {pipeline_mode = #tpu.pipeline_mode<synchronous>, transform_indices = @transform_6, window_bounds = array<i64: 2, 128, 256>}, {pipeline_mode = #tpu.pipeline_mode<synchronous>, transform_indices = @transform_7, window_bounds = array<i64: 768, 128>}, {pipeline_mode = #tpu.pipeline_mode<synchronous>, transform_indices = @transform_8, window_bounds = array<i64: 1, 128>}, {pipeline_mode = #tpu.pipeline_mode<synchronous>, transform_indices = @transform_9, window_bounds = array<i64: 384, 128>}, {pipeline_mode = #tpu.pipeline_mode<synchronous>, transform_indices = @transform_10, window_bounds = array<i64: 1, 128>}, {pipeline_mode = #tpu.pipeline_mode<synchronous>, transform_indices = @transform_11, window_bounds = array<i64: 384, 128>}, {pipeline_mode = #tpu.pipeline_mode<synchronous>, transform_indices = @transform_12, window_bounds = array<i64: 1, 128>}, {pipeline_mode = #tpu.pipeline_mode<synchronous>, transform_indices = @transform_13, window_bounds = array<i64: 2, 4, 8>}, {pipeline_mode = #tpu.pipeline_mode<synchronous>, transform_indices = @transform_14, window_bounds = array<i64: 2, 128, 256>}, {pipeline_mode = #tpu.pipeline_mode<synchronous>, transform_indices = @transform_15, window_bounds = array<i64: 768, 128>}, {pipeline_mode = #tpu.pipeline_mode<synchronous>, transform_indices = @transform_16, window_bounds = array<i64: 1, 128>}, {pipeline_mode = #tpu.pipeline_mode<synchronous>, transform_indices = @transform_17, window_bounds = array<i64: 384, 128>}, {pipeline_mode = #tpu.pipeline_mode<synchronous>, transform_indices = @transform_18, window_bounds = array<i64: 1, 128>}, {pipeline_mode = #tpu.pipeline_mode<synchronous>, transform_indices = @transform_19, window_bounds = array<i64: 384, 128>}, {pipeline_mode = #tpu.pipeline_mode<synchronous>, transform_indices = @transform_20, window_bounds = array<i64: 1, 128>}, {pipeline_mode = #tpu.pipeline_mode<synchronous>, transform_indices = @transform_21, window_bounds = array<i64: 128, 128>}, {pipeline_mode = #tpu.pipeline_mode<synchronous>, transform_indices = @transform_22, window_bounds = array<i64: 1, 128>}, {transform_indices = @transform_23, window_bounds = array<i64: 1, 16, 128>}, {transform_indices = @transform_24, window_bounds = array<i64: 1, 8, 128>}, {transform_indices = @transform_25, window_bounds = array<i64: 1, 4, 128>}]} {
    %c0 = arith.constant 0 : index
    %c0_0 = arith.constant 0 : index
    %c0_1 = arith.constant 0 : index
    %0 = vector.load %arg1[%c0, %c0_0, %c0_1] : memref<1x16x128xbf16, #tpu.memory_space<vmem>>, vector<1x16x128xbf16>
    %1 = vector.shape_cast %0 : vector<1x16x128xbf16> to vector<16x128xbf16>
    %cst = arith.constant 0.000000e+00 : bf16
    %2 = vector.broadcast %cst : bf16 to vector<1x128xbf16>
    %c0_2 = arith.constant 0 : index
    %c0_3 = arith.constant 0 : index
    %3 = vector.load %arg27[%c0_2, %c0_3] : memref<16x384xbf16, #tpu.memory_space<vmem>>, vector<1x128xbf16>
    tpu.vector_store %arg27[%c0_2, %c0_3], %2 {strides = array<i32>} : memref<16x384xbf16, #tpu.memory_space<vmem>>, vector<1x128xbf16>,
    %4 = vector.extract_strided_slice %1 {offsets = [0, 0], sizes = [15, 128], strides = [1, 1]} : vector<16x128xbf16> to vector<15x128xbf16>
    %c1 = arith.constant 1 : index
    %c0_4 = arith.constant 0 : index
    %5 = vector.load %arg27[%c1, %c0_4] : memref<16x384xbf16, #tpu.memory_space<vmem>>, vector<15x128xbf16>
    tpu.vector_store %arg27[%c1, %c0_4], %4 {strides = array<i32>} : memref<16x384xbf16, #tpu.memory_space<vmem>>, vector<15x128xbf16>,
    %c0_5 = arith.constant 0 : index
    %c128 = arith.constant 128 : index
    %6 = vector.load %arg27[%c0_5, %c128] : memref<16x384xbf16, #tpu.memory_space<vmem>>, vector<16x128xbf16>
    tpu.vector_store %arg27[%c0_5, %c128], %1 {strides = array<i32>} : memref<16x384xbf16, #tpu.memory_space<vmem>>, vector<16x128xbf16>,
    %cst_6 = arith.constant 0.000000e+00 : bf16
    %7 = vector.broadcast %cst_6 : bf16 to vector<1x128xbf16>
    %c15 = arith.constant 15 : index
    %c256 = arith.constant 256 : index
    %8 = vector.load %arg27[%c15, %c256] : memref<16x384xbf16, #tpu.memory_space<vmem>>, vector<1x128xbf16>
    tpu.vector_store %arg27[%c15, %c256], %7 {strides = array<i32>} : memref<16x384xbf16, #tpu.memory_space<vmem>>, vector<1x128xbf16>,
    %9 = vector.extract_strided_slice %1 {offsets = [1, 0], sizes = [15, 128], strides = [1, 1]} : vector<16x128xbf16> to vector<15x128xbf16>
    %c0_7 = arith.constant 0 : index
    %c256_8 = arith.constant 256 : index
    %10 = vector.load %arg27[%c0_7, %c256_8] : memref<16x384xbf16, #tpu.memory_space<vmem>>, vector<15x128xbf16>
    tpu.vector_store %arg27[%c0_7, %c256_8], %9 {strides = array<i32>} : memref<16x384xbf16, #tpu.memory_space<vmem>>, vector<15x128xbf16>,
    %c0_9 = arith.constant 0 : index
    %c0_10 = arith.constant 0 : index
    %11 = vector.load %arg27[%c0_9, %c0_10] : memref<16x384xbf16, #tpu.memory_space<vmem>>, vector<16x384xbf16>
    %c0_11 = arith.constant 0 : index
    %c0_12 = arith.constant 0 : index
    %12 = vector.load %arg2[%c0_11, %c0_12] : memref<384x128xbf16, #tpu.memory_space<vmem>>, vector<384x128xbf16>
    %cst_13 = arith.constant dense<0.000000e+00> : vector<16x128xf32>
    %13 = tpu.matmul %11, %12, %cst_13 {dimension_numbers = #tpu.dot_dimension_numbers<[1], [0], [0], [1], [0, 0, 1, 1], [], []>} : vector<16x384xbf16>, vector<384x128xbf16>, vector<16x128xf32> -> vector<16x128xf32>
    %c0_14 = arith.constant 0 : index
    %c0_15 = arith.constant 0 : index
    %14 = vector.load %arg3[%c0_14, %c0_15] : memref<1x128xf32, #tpu.memory_space<vmem>>, vector<1x128xf32>
    %15 = vector.broadcast %14 : vector<1x128xf32> to vector<16x128xf32>
    %16 = arith.addf %13, %15 : vector<16x128xf32>
    %cst_16 = arith.constant 0.000000e+00 : f32
    %17 = vector.broadcast %cst_16 : f32 to vector<16x128xf32>
    %18 = arith.maximumf %16, %17 : vector<16x128xf32>
    %19 = arith.truncf %18 : vector<16x128xf32> to vector<16x128xbf16>
    %cst_17 = arith.constant 0.000000e+00 : bf16
    %20 = vector.broadcast %cst_17 : bf16 to vector<1x128xbf16>
    %c0_18 = arith.constant 0 : index
    %c0_19 = arith.constant 0 : index
    %21 = vector.load %arg28[%c0_18, %c0_19] : memref<16x384xbf16, #tpu.memory_space<vmem>>, vector<1x128xbf16>
    tpu.vector_store %arg28[%c0_18, %c0_19], %20 {strides = array<i32>} : memref<16x384xbf16, #tpu.memory_space<vmem>>, vector<1x128xbf16>,
    %22 = vector.extract_strided_slice %19 {offsets = [0, 0], sizes = [15, 128], strides = [1, 1]} : vector<16x128xbf16> to vector<15x128xbf16>
    %c1_20 = arith.constant 1 : index
    %c0_21 = arith.constant 0 : index
    %23 = vector.load %arg28[%c1_20, %c0_21] : memref<16x384xbf16, #tpu.memory_space<vmem>>, vector<15x128xbf16>
    tpu.vector_store %arg28[%c1_20, %c0_21], %22 {strides = array<i32>} : memref<16x384xbf16, #tpu.memory_space<vmem>>, vector<15x128xbf16>,
    %c0_22 = arith.constant 0 : index
    %c128_23 = arith.constant 128 : index
    %24 = vector.load %arg28[%c0_22, %c128_23] : memref<16x384xbf16, #tpu.memory_space<vmem>>, vector<16x128xbf16>
    tpu.vector_store %arg28[%c0_22, %c128_23], %19 {strides = array<i32>} : memref<16x384xbf16, #tpu.memory_space<vmem>>, vector<16x128xbf16>,
    %cst_24 = arith.constant 0.000000e+00 : bf16
    %25 = vector.broadcast %cst_24 : bf16 to vector<1x128xbf16>
    %c15_25 = arith.constant 15 : index
    %c256_26 = arith.constant 256 : index
    %26 = vector.load %arg28[%c15_25, %c256_26] : memref<16x384xbf16, #tpu.memory_space<vmem>>, vector<1x128xbf16>
    tpu.vector_store %arg28[%c15_25, %c256_26], %25 {strides = array<i32>} : memref<16x384xbf16, #tpu.memory_space<vmem>>, vector<1x128xbf16>,
    %27 = vector.extract_strided_slice %19 {offsets = [1, 0], sizes = [15, 128], strides = [1, 1]} : vector<16x128xbf16> to vector<15x128xbf16>
    %c0_27 = arith.constant 0 : index
    %c256_28 = arith.constant 256 : index
    %28 = vector.load %arg28[%c0_27, %c256_28] : memref<16x384xbf16, #tpu.memory_space<vmem>>, vector<15x128xbf16>
    tpu.vector_store %arg28[%c0_27, %c256_28], %27 {strides = array<i32>} : memref<16x384xbf16, #tpu.memory_space<vmem>>, vector<15x128xbf16>,
    %c0_29 = arith.constant 0 : index
    %c0_30 = arith.constant 0 : index
    %29 = vector.load %arg28[%c0_29, %c0_30] : memref<16x384xbf16, #tpu.memory_space<vmem>>, vector<16x384xbf16>
    %c0_31 = arith.constant 0 : index
    %c0_32 = arith.constant 0 : index
    %30 = vector.load %arg4[%c0_31, %c0_32] : memref<384x128xbf16, #tpu.memory_space<vmem>>, vector<384x128xbf16>
    %cst_33 = arith.constant dense<0.000000e+00> : vector<16x128xf32>
    %31 = tpu.matmul %29, %30, %cst_33 {dimension_numbers = #tpu.dot_dimension_numbers<[1], [0], [0], [1], [0, 0, 1, 1], [], []>} : vector<16x384xbf16>, vector<384x128xbf16>, vector<16x128xf32> -> vector<16x128xf32>
    %c0_34 = arith.constant 0 : index
    %c0_35 = arith.constant 0 : index
    %32 = vector.load %arg5[%c0_34, %c0_35] : memref<1x128xf32, #tpu.memory_space<vmem>>, vector<1x128xf32>
    %33 = vector.broadcast %32 : vector<1x128xf32> to vector<16x128xf32>
    %34 = arith.addf %31, %33 : vector<16x128xf32>
    %cst_36 = arith.constant 0.000000e+00 : f32
    %35 = vector.broadcast %cst_36 : f32 to vector<16x128xf32>
    %36 = arith.maximumf %34, %35 : vector<16x128xf32>
    %37 = arith.truncf %36 : vector<16x128xf32> to vector<16x128xbf16>
    %c0_37 = arith.constant 0 : index
    %c0_38 = arith.constant 0 : index
    %c0_39 = arith.constant 0 : index
    %38 = vector.load %arg24[%c0_37, %c0_38, %c0_39] : memref<1x16x128xbf16, #tpu.memory_space<vmem>>, vector<1x16x128xbf16>
    %39 = vector.shape_cast %38 : vector<1x16x128xbf16> to vector<16x128xbf16>
    %40 = vector.shape_cast %37 : vector<16x128xbf16> to vector<1x16x128xbf16>
    tpu.vector_store %arg24[%c0_37, %c0_38, %c0_39], %40 {strides = array<i32>} : memref<1x16x128xbf16, #tpu.memory_space<vmem>>, vector<1x16x128xbf16>,
    %41 = arith.truncf %36 : vector<16x128xf32> to vector<16x128xbf16>
    %c0_40 = arith.constant 0 : index
    %c0_41 = arith.constant 0 : index
    %c0_42 = arith.constant 0 : index
    %42 = vector.load %arg6[%c0_40, %c0_41, %c0_42] : memref<2x8x16xbf16, #tpu.memory_space<vmem>>, vector<1x8x16xbf16>
    %43 = vector.shape_cast %42 : vector<1x8x16xbf16> to vector<8x16xbf16>
    %cst_43 = arith.constant dense<0.000000e+00> : vector<8x128xf32>
    %44 = tpu.matmul %43, %41, %cst_43 {dimension_numbers = #tpu.dot_dimension_numbers<[1], [0], [0], [1], [0, 0, 1, 1], [], []>} : vector<8x16xbf16>, vector<16x128xbf16>, vector<8x128xf32> -> vector<8x128xf32>
    %45 = arith.truncf %44 : vector<8x128xf32> to vector<8x128xbf16>
    %c1_44 = arith.constant 1 : index
    %c0_45 = arith.constant 0 : index
    %c0_46 = arith.constant 0 : index
    %46 = vector.load %arg6[%c1_44, %c0_45, %c0_46] : memref<2x8x16xbf16, #tpu.memory_space<vmem>>, vector<1x8x16xbf16>
    %47 = vector.shape_cast %46 : vector<1x8x16xbf16> to vector<8x16xbf16>
    %cst_47 = arith.constant dense<0.000000e+00> : vector<8x128xf32>
    %48 = tpu.matmul %47, %41, %cst_47 {dimension_numbers = #tpu.dot_dimension_numbers<[1], [0], [0], [1], [0, 0, 1, 1], [], []>} : vector<8x16xbf16>, vector<16x128xbf16>, vector<8x128xf32> -> vector<8x128xf32>
    %49 = arith.truncf %48 : vector<8x128xf32> to vector<8x128xbf16>
    %c0_48 = arith.constant 0 : index
    %c0_49 = arith.constant 0 : index
    %c0_50 = arith.constant 0 : index
    %50 = vector.load %arg7[%c0_48, %c0_49, %c0_50] : memref<2x128x256xbf16, #tpu.memory_space<vmem>>, vector<1x128x256xbf16>
    %51 = vector.shape_cast %50 : vector<1x128x256xbf16> to vector<128x256xbf16>
    %cst_51 = arith.constant dense<0.000000e+00> : vector<8x256xf32>
    %52 = tpu.matmul %45, %51, %cst_51 {dimension_numbers = #tpu.dot_dimension_numbers<[1], [0], [0], [1], [0, 0, 1, 1], [], []>} : vector<8x128xbf16>, vector<128x256xbf16>, vector<8x256xf32> -> vector<8x256xf32>
    %c1_52 = arith.constant 1 : index
    %c0_53 = arith.constant 0 : index
    %c0_54 = arith.constant 0 : index
    %53 = vector.load %arg7[%c1_52, %c0_53, %c0_54] : memref<2x128x256xbf16, #tpu.memory_space<vmem>>, vector<1x128x256xbf16>
    %54 = vector.shape_cast %53 : vector<1x128x256xbf16> to vector<128x256xbf16>
    %cst_55 = arith.constant dense<0.000000e+00> : vector<8x256xf32>
    %55 = tpu.matmul %49, %54, %cst_55 {dimension_numbers = #tpu.dot_dimension_numbers<[1], [0], [0], [1], [0, 0, 1, 1], [], []>} : vector<8x128xbf16>, vector<128x256xbf16>, vector<8x256xf32> -> vector<8x256xf32>
    %56 = arith.addf %52, %55 : vector<8x256xf32>
    %57 = arith.truncf %56 : vector<8x256xf32> to vector<8x256xbf16>
    %cst_56 = arith.constant 0.000000e+00 : bf16
    %58 = vector.broadcast %cst_56 : bf16 to vector<1x256xbf16>
    %c0_57 = arith.constant 0 : index
    %c0_58 = arith.constant 0 : index
    %59 = vector.load %arg29[%c0_57, %c0_58] : memref<8x768xbf16, #tpu.memory_space<vmem>>, vector<1x256xbf16>
    tpu.vector_store %arg29[%c0_57, %c0_58], %58 {strides = array<i32>} : memref<8x768xbf16, #tpu.memory_space<vmem>>, vector<1x256xbf16>,
    %60 = vector.extract_strided_slice %57 {offsets = [0, 0], sizes = [7, 256], strides = [1, 1]} : vector<8x256xbf16> to vector<7x256xbf16>
    %c1_59 = arith.constant 1 : index
    %c0_60 = arith.constant 0 : index
    %61 = vector.load %arg29[%c1_59, %c0_60] : memref<8x768xbf16, #tpu.memory_space<vmem>>, vector<7x256xbf16>
    tpu.vector_store %arg29[%c1_59, %c0_60], %60 {strides = array<i32>} : memref<8x768xbf16, #tpu.memory_space<vmem>>, vector<7x256xbf16>,
    %c0_61 = arith.constant 0 : index
    %c256_62 = arith.constant 256 : index
    %62 = vector.load %arg29[%c0_61, %c256_62] : memref<8x768xbf16, #tpu.memory_space<vmem>>, vector<8x256xbf16>
    tpu.vector_store %arg29[%c0_61, %c256_62], %57 {strides = array<i32>} : memref<8x768xbf16, #tpu.memory_space<vmem>>, vector<8x256xbf16>,
    %cst_63 = arith.constant 0.000000e+00 : bf16
    %63 = vector.broadcast %cst_63 : bf16 to vector<1x256xbf16>
    %c7 = arith.constant 7 : index
    %c512 = arith.constant 512 : index
    %64 = vector.load %arg29[%c7, %c512] : memref<8x768xbf16, #tpu.memory_space<vmem>>, vector<1x256xbf16>
    tpu.vector_store %arg29[%c7, %c512], %63 {strides = array<i32>} : memref<8x768xbf16, #tpu.memory_space<vmem>>, vector<1x256xbf16>,
    %65 = vector.extract_strided_slice %57 {offsets = [1, 0], sizes = [7, 256], strides = [1, 1]} : vector<8x256xbf16> to vector<7x256xbf16>
    %c0_64 = arith.constant 0 : index
    %c512_65 = arith.constant 512 : index
    %66 = vector.load %arg29[%c0_64, %c512_65] : memref<8x768xbf16, #tpu.memory_space<vmem>>, vector<7x256xbf16>
    tpu.vector_store %arg29[%c0_64, %c512_65], %65 {strides = array<i32>} : memref<8x768xbf16, #tpu.memory_space<vmem>>, vector<7x256xbf16>,
    %c0_66 = arith.constant 0 : index
    %c0_67 = arith.constant 0 : index
    %67 = vector.load %arg29[%c0_66, %c0_67] : memref<8x768xbf16, #tpu.memory_space<vmem>>, vector<8x768xbf16>
    %c0_68 = arith.constant 0 : index
    %c0_69 = arith.constant 0 : index
    %68 = vector.load %arg8[%c0_68, %c0_69] : memref<768x128xbf16, #tpu.memory_space<vmem>>, vector<768x128xbf16>
    %cst_70 = arith.constant dense<0.000000e+00> : vector<8x128xf32>
    %69 = tpu.matmul %67, %68, %cst_70 {dimension_numbers = #tpu.dot_dimension_numbers<[1], [0], [0], [1], [0, 0, 1, 1], [], []>} : vector<8x768xbf16>, vector<768x128xbf16>, vector<8x128xf32> -> vector<8x128xf32>
    %c0_71 = arith.constant 0 : index
    %c0_72 = arith.constant 0 : index
    %70 = vector.load %arg9[%c0_71, %c0_72] : memref<1x128xf32, #tpu.memory_space<vmem>>, vector<1x128xf32>
    %71 = vector.broadcast %70 : vector<1x128xf32> to vector<8x128xf32>
    %72 = arith.addf %69, %71 : vector<8x128xf32>
    %cst_73 = arith.constant 0.000000e+00 : f32
    %73 = vector.broadcast %cst_73 : f32 to vector<8x128xf32>
    %74 = arith.maximumf %72, %73 : vector<8x128xf32>
    %75 = arith.truncf %74 : vector<8x128xf32> to vector<8x128xbf16>
    %cst_74 = arith.constant 0.000000e+00 : bf16
    %76 = vector.broadcast %cst_74 : bf16 to vector<1x128xbf16>
    %c0_75 = arith.constant 0 : index
    %c0_76 = arith.constant 0 : index
    %77 = vector.load %arg30[%c0_75, %c0_76] : memref<8x384xbf16, #tpu.memory_space<vmem>>, vector<1x128xbf16>
    tpu.vector_store %arg30[%c0_75, %c0_76], %76 {strides = array<i32>} : memref<8x384xbf16, #tpu.memory_space<vmem>>, vector<1x128xbf16>,
    %78 = vector.extract_strided_slice %75 {offsets = [0, 0], sizes = [7, 128], strides = [1, 1]} : vector<8x128xbf16> to vector<7x128xbf16>
    %c1_77 = arith.constant 1 : index
    %c0_78 = arith.constant 0 : index
    %79 = vector.load %arg30[%c1_77, %c0_78] : memref<8x384xbf16, #tpu.memory_space<vmem>>, vector<7x128xbf16>
    tpu.vector_store %arg30[%c1_77, %c0_78], %78 {strides = array<i32>} : memref<8x384xbf16, #tpu.memory_space<vmem>>, vector<7x128xbf16>,
    %c0_79 = arith.constant 0 : index
    %c128_80 = arith.constant 128 : index
    %80 = vector.load %arg30[%c0_79, %c128_80] : memref<8x384xbf16, #tpu.memory_space<vmem>>, vector<8x128xbf16>
    tpu.vector_store %arg30[%c0_79, %c128_80], %75 {strides = array<i32>} : memref<8x384xbf16, #tpu.memory_space<vmem>>, vector<8x128xbf16>,
    %cst_81 = arith.constant 0.000000e+00 : bf16
    %81 = vector.broadcast %cst_81 : bf16 to vector<1x128xbf16>
    %c7_82 = arith.constant 7 : index
    %c256_83 = arith.constant 256 : index
    %82 = vector.load %arg30[%c7_82, %c256_83] : memref<8x384xbf16, #tpu.memory_space<vmem>>, vector<1x128xbf16>
    tpu.vector_store %arg30[%c7_82, %c256_83], %81 {strides = array<i32>} : memref<8x384xbf16, #tpu.memory_space<vmem>>, vector<1x128xbf16>,
    %83 = vector.extract_strided_slice %75 {offsets = [1, 0], sizes = [7, 128], strides = [1, 1]} : vector<8x128xbf16> to vector<7x128xbf16>
    %c0_84 = arith.constant 0 : index
    %c256_85 = arith.constant 256 : index
    %84 = vector.load %arg30[%c0_84, %c256_85] : memref<8x384xbf16, #tpu.memory_space<vmem>>, vector<7x128xbf16>
    tpu.vector_store %arg30[%c0_84, %c256_85], %83 {strides = array<i32>} : memref<8x384xbf16, #tpu.memory_space<vmem>>, vector<7x128xbf16>,
    %c0_86 = arith.constant 0 : index
    %c0_87 = arith.constant 0 : index
    %85 = vector.load %arg30[%c0_86, %c0_87] : memref<8x384xbf16, #tpu.memory_space<vmem>>, vector<8x384xbf16>
    %c0_88 = arith.constant 0 : index
    %c0_89 = arith.constant 0 : index
    %86 = vector.load %arg10[%c0_88, %c0_89] : memref<384x128xbf16, #tpu.memory_space<vmem>>, vector<384x128xbf16>
    %cst_90 = arith.constant dense<0.000000e+00> : vector<8x128xf32>
    %87 = tpu.matmul %85, %86, %cst_90 {dimension_numbers = #tpu.dot_dimension_numbers<[1], [0], [0], [1], [0, 0, 1, 1], [], []>} : vector<8x384xbf16>, vector<384x128xbf16>, vector<8x128xf32> -> vector<8x128xf32>
    %c0_91 = arith.constant 0 : index
    %c0_92 = arith.constant 0 : index
    %88 = vector.load %arg11[%c0_91, %c0_92] : memref<1x128xf32, #tpu.memory_space<vmem>>, vector<1x128xf32>
    %89 = vector.broadcast %88 : vector<1x128xf32> to vector<8x128xf32>
    %90 = arith.addf %87, %89 : vector<8x128xf32>
    %cst_93 = arith.constant 0.000000e+00 : f32
    %91 = vector.broadcast %cst_93 : f32 to vector<8x128xf32>
    %92 = arith.maximumf %90, %91 : vector<8x128xf32>
    %93 = arith.truncf %92 : vector<8x128xf32> to vector<8x128xbf16>
    %cst_94 = arith.constant 0.000000e+00 : bf16
    %94 = vector.broadcast %cst_94 : bf16 to vector<1x128xbf16>
    %c0_95 = arith.constant 0 : index
    %c0_96 = arith.constant 0 : index
    %95 = vector.load %arg31[%c0_95, %c0_96] : memref<8x384xbf16, #tpu.memory_space<vmem>>, vector<1x128xbf16>
    tpu.vector_store %arg31[%c0_95, %c0_96], %94 {strides = array<i32>} : memref<8x384xbf16, #tpu.memory_space<vmem>>, vector<1x128xbf16>,
    %96 = vector.extract_strided_slice %93 {offsets = [0, 0], sizes = [7, 128], strides = [1, 1]} : vector<8x128xbf16> to vector<7x128xbf16>
    %c1_97 = arith.constant 1 : index
    %c0_98 = arith.constant 0 : index
    %97 = vector.load %arg31[%c1_97, %c0_98] : memref<8x384xbf16, #tpu.memory_space<vmem>>, vector<7x128xbf16>
    tpu.vector_store %arg31[%c1_97, %c0_98], %96 {strides = array<i32>} : memref<8x384xbf16, #tpu.memory_space<vmem>>, vector<7x128xbf16>,
    %c0_99 = arith.constant 0 : index
    %c128_100 = arith.constant 128 : index
    %98 = vector.load %arg31[%c0_99, %c128_100] : memref<8x384xbf16, #tpu.memory_space<vmem>>, vector<8x128xbf16>
    tpu.vector_store %arg31[%c0_99, %c128_100], %93 {strides = array<i32>} : memref<8x384xbf16, #tpu.memory_space<vmem>>, vector<8x128xbf16>,
    %cst_101 = arith.constant 0.000000e+00 : bf16
    %99 = vector.broadcast %cst_101 : bf16 to vector<1x128xbf16>
    %c7_102 = arith.constant 7 : index
    %c256_103 = arith.constant 256 : index
    %100 = vector.load %arg31[%c7_102, %c256_103] : memref<8x384xbf16, #tpu.memory_space<vmem>>, vector<1x128xbf16>
    tpu.vector_store %arg31[%c7_102, %c256_103], %99 {strides = array<i32>} : memref<8x384xbf16, #tpu.memory_space<vmem>>, vector<1x128xbf16>,
    %101 = vector.extract_strided_slice %93 {offsets = [1, 0], sizes = [7, 128], strides = [1, 1]} : vector<8x128xbf16> to vector<7x128xbf16>
    %c0_104 = arith.constant 0 : index
    %c256_105 = arith.constant 256 : index
    %102 = vector.load %arg31[%c0_104, %c256_105] : memref<8x384xbf16, #tpu.memory_space<vmem>>, vector<7x128xbf16>
    tpu.vector_store %arg31[%c0_104, %c256_105], %101 {strides = array<i32>} : memref<8x384xbf16, #tpu.memory_space<vmem>>, vector<7x128xbf16>,
    %c0_106 = arith.constant 0 : index
    %c0_107 = arith.constant 0 : index
    %103 = vector.load %arg31[%c0_106, %c0_107] : memref<8x384xbf16, #tpu.memory_space<vmem>>, vector<8x384xbf16>
    %c0_108 = arith.constant 0 : index
    %c0_109 = arith.constant 0 : index
    %104 = vector.load %arg12[%c0_108, %c0_109] : memref<384x128xbf16, #tpu.memory_space<vmem>>, vector<384x128xbf16>
    %cst_110 = arith.constant dense<0.000000e+00> : vector<8x128xf32>
    %105 = tpu.matmul %103, %104, %cst_110 {dimension_numbers = #tpu.dot_dimension_numbers<[1], [0], [0], [1], [0, 0, 1, 1], [], []>} : vector<8x384xbf16>, vector<384x128xbf16>, vector<8x128xf32> -> vector<8x128xf32>
    %c0_111 = arith.constant 0 : index
    %c0_112 = arith.constant 0 : index
    %106 = vector.load %arg13[%c0_111, %c0_112] : memref<1x128xf32, #tpu.memory_space<vmem>>, vector<1x128xf32>
    %107 = vector.broadcast %106 : vector<1x128xf32> to vector<8x128xf32>
    %108 = arith.addf %105, %107 : vector<8x128xf32>
    %cst_113 = arith.constant 0.000000e+00 : f32
    %109 = vector.broadcast %cst_113 : f32 to vector<8x128xf32>
    %110 = arith.maximumf %108, %109 : vector<8x128xf32>
    %111 = arith.truncf %110 : vector<8x128xf32> to vector<8x128xbf16>
    %c0_114 = arith.constant 0 : index
    %c0_115 = arith.constant 0 : index
    %c0_116 = arith.constant 0 : index
    %112 = vector.load %arg25[%c0_114, %c0_115, %c0_116] : memref<1x8x128xbf16, #tpu.memory_space<vmem>>, vector<1x8x128xbf16>
    %113 = vector.shape_cast %112 : vector<1x8x128xbf16> to vector<8x128xbf16>
    %114 = vector.shape_cast %111 : vector<8x128xbf16> to vector<1x8x128xbf16>
    tpu.vector_store %arg25[%c0_114, %c0_115, %c0_116], %114 {strides = array<i32>} : memref<1x8x128xbf16, #tpu.memory_space<vmem>>, vector<1x8x128xbf16>,
    %115 = arith.truncf %110 : vector<8x128xf32> to vector<8x128xbf16>
    %c0_117 = arith.constant 0 : index
    %c0_118 = arith.constant 0 : index
    %c0_119 = arith.constant 0 : index
    %116 = vector.load %arg14[%c0_117, %c0_118, %c0_119] : memref<2x4x8xbf16, #tpu.memory_space<vmem>>, vector<1x4x8xbf16>
    %117 = vector.shape_cast %116 : vector<1x4x8xbf16> to vector<4x8xbf16>
    %cst_120 = arith.constant dense<0.000000e+00> : vector<4x128xf32>
    %118 = tpu.matmul %117, %115, %cst_120 {dimension_numbers = #tpu.dot_dimension_numbers<[1], [0], [0], [1], [0, 0, 1, 1], [], []>} : vector<4x8xbf16>, vector<8x128xbf16>, vector<4x128xf32> -> vector<4x128xf32>
    %119 = arith.truncf %118 : vector<4x128xf32> to vector<4x128xbf16>
    %c1_121 = arith.constant 1 : index
    %c0_122 = arith.constant 0 : index
    %c0_123 = arith.constant 0 : index
    %120 = vector.load %arg14[%c1_121, %c0_122, %c0_123] : memref<2x4x8xbf16, #tpu.memory_space<vmem>>, vector<1x4x8xbf16>
    %121 = vector.shape_cast %120 : vector<1x4x8xbf16> to vector<4x8xbf16>
    %cst_124 = arith.constant dense<0.000000e+00> : vector<4x128xf32>
    %122 = tpu.matmul %121, %115, %cst_124 {dimension_numbers = #tpu.dot_dimension_numbers<[1], [0], [0], [1], [0, 0, 1, 1], [], []>} : vector<4x8xbf16>, vector<8x128xbf16>, vector<4x128xf32> -> vector<4x128xf32>
    %123 = arith.truncf %122 : vector<4x128xf32> to vector<4x128xbf16>
    %c0_125 = arith.constant 0 : index
    %c0_126 = arith.constant 0 : index
    %c0_127 = arith.constant 0 : index
    %124 = vector.load %arg15[%c0_125, %c0_126, %c0_127] : memref<2x128x256xbf16, #tpu.memory_space<vmem>>, vector<1x128x256xbf16>
    %125 = vector.shape_cast %124 : vector<1x128x256xbf16> to vector<128x256xbf16>
    %cst_128 = arith.constant dense<0.000000e+00> : vector<4x256xf32>
    %126 = tpu.matmul %119, %125, %cst_128 {dimension_numbers = #tpu.dot_dimension_numbers<[1], [0], [0], [1], [0, 0, 1, 1], [], []>} : vector<4x128xbf16>, vector<128x256xbf16>, vector<4x256xf32> -> vector<4x256xf32>
    %c1_129 = arith.constant 1 : index
    %c0_130 = arith.constant 0 : index
    %c0_131 = arith.constant 0 : index
    %127 = vector.load %arg15[%c1_129, %c0_130, %c0_131] : memref<2x128x256xbf16, #tpu.memory_space<vmem>>, vector<1x128x256xbf16>
    %128 = vector.shape_cast %127 : vector<1x128x256xbf16> to vector<128x256xbf16>
    %cst_132 = arith.constant dense<0.000000e+00> : vector<4x256xf32>
    %129 = tpu.matmul %123, %128, %cst_132 {dimension_numbers = #tpu.dot_dimension_numbers<[1], [0], [0], [1], [0, 0, 1, 1], [], []>} : vector<4x128xbf16>, vector<128x256xbf16>, vector<4x256xf32> -> vector<4x256xf32>
    %130 = arith.addf %126, %129 : vector<4x256xf32>
    %131 = arith.truncf %130 : vector<4x256xf32> to vector<4x256xbf16>
    %cst_133 = arith.constant 0.000000e+00 : bf16
    %132 = vector.broadcast %cst_133 : bf16 to vector<1x256xbf16>
    %c0_134 = arith.constant 0 : index
    %c0_135 = arith.constant 0 : index
    %133 = vector.load %arg32[%c0_134, %c0_135] : memref<4x768xbf16, #tpu.memory_space<vmem>>, vector<1x256xbf16>
    tpu.vector_store %arg32[%c0_134, %c0_135], %132 {strides = array<i32>} : memref<4x768xbf16, #tpu.memory_space<vmem>>, vector<1x256xbf16>,
    %134 = vector.extract_strided_slice %131 {offsets = [0, 0], sizes = [3, 256], strides = [1, 1]} : vector<4x256xbf16> to vector<3x256xbf16>
    %c1_136 = arith.constant 1 : index
    %c0_137 = arith.constant 0 : index
    %135 = vector.load %arg32[%c1_136, %c0_137] : memref<4x768xbf16, #tpu.memory_space<vmem>>, vector<3x256xbf16>
    tpu.vector_store %arg32[%c1_136, %c0_137], %134 {strides = array<i32>} : memref<4x768xbf16, #tpu.memory_space<vmem>>, vector<3x256xbf16>,
    %c0_138 = arith.constant 0 : index
    %c256_139 = arith.constant 256 : index
    %136 = vector.load %arg32[%c0_138, %c256_139] : memref<4x768xbf16, #tpu.memory_space<vmem>>, vector<4x256xbf16>
    tpu.vector_store %arg32[%c0_138, %c256_139], %131 {strides = array<i32>} : memref<4x768xbf16, #tpu.memory_space<vmem>>, vector<4x256xbf16>,
    %cst_140 = arith.constant 0.000000e+00 : bf16
    %137 = vector.broadcast %cst_140 : bf16 to vector<1x256xbf16>
    %c3 = arith.constant 3 : index
    %c512_141 = arith.constant 512 : index
    %138 = vector.load %arg32[%c3, %c512_141] : memref<4x768xbf16, #tpu.memory_space<vmem>>, vector<1x256xbf16>
    tpu.vector_store %arg32[%c3, %c512_141], %137 {strides = array<i32>} : memref<4x768xbf16, #tpu.memory_space<vmem>>, vector<1x256xbf16>,
    %139 = vector.extract_strided_slice %131 {offsets = [1, 0], sizes = [3, 256], strides = [1, 1]} : vector<4x256xbf16> to vector<3x256xbf16>
    %c0_142 = arith.constant 0 : index
    %c512_143 = arith.constant 512 : index
    %140 = vector.load %arg32[%c0_142, %c512_143] : memref<4x768xbf16, #tpu.memory_space<vmem>>, vector<3x256xbf16>
    tpu.vector_store %arg32[%c0_142, %c512_143], %139 {strides = array<i32>} : memref<4x768xbf16, #tpu.memory_space<vmem>>, vector<3x256xbf16>,
    %c0_144 = arith.constant 0 : index
    %c0_145 = arith.constant 0 : index
    %141 = vector.load %arg32[%c0_144, %c0_145] : memref<4x768xbf16, #tpu.memory_space<vmem>>, vector<4x768xbf16>
    %c0_146 = arith.constant 0 : index
    %c0_147 = arith.constant 0 : index
    %142 = vector.load %arg16[%c0_146, %c0_147] : memref<768x128xbf16, #tpu.memory_space<vmem>>, vector<768x128xbf16>
    %cst_148 = arith.constant dense<0.000000e+00> : vector<4x128xf32>
    %143 = tpu.matmul %141, %142, %cst_148 {dimension_numbers = #tpu.dot_dimension_numbers<[1], [0], [0], [1], [0, 0, 1, 1], [], []>} : vector<4x768xbf16>, vector<768x128xbf16>, vector<4x128xf32> -> vector<4x128xf32>
    %c0_149 = arith.constant 0 : index
    %c0_150 = arith.constant 0 : index
    %144 = vector.load %arg17[%c0_149, %c0_150] : memref<1x128xf32, #tpu.memory_space<vmem>>, vector<1x128xf32>
    %145 = vector.broadcast %144 : vector<1x128xf32> to vector<4x128xf32>
    %146 = arith.addf %143, %145 : vector<4x128xf32>
    %cst_151 = arith.constant 0.000000e+00 : f32
    %147 = vector.broadcast %cst_151 : f32 to vector<4x128xf32>
    %148 = arith.maximumf %146, %147 : vector<4x128xf32>
    %149 = arith.truncf %148 : vector<4x128xf32> to vector<4x128xbf16>
    %cst_152 = arith.constant 0.000000e+00 : bf16
    %150 = vector.broadcast %cst_152 : bf16 to vector<1x128xbf16>
    %c0_153 = arith.constant 0 : index
    %c0_154 = arith.constant 0 : index
    %151 = vector.load %arg33[%c0_153, %c0_154] : memref<4x384xbf16, #tpu.memory_space<vmem>>, vector<1x128xbf16>
    tpu.vector_store %arg33[%c0_153, %c0_154], %150 {strides = array<i32>} : memref<4x384xbf16, #tpu.memory_space<vmem>>, vector<1x128xbf16>,
    %152 = vector.extract_strided_slice %149 {offsets = [0, 0], sizes = [3, 128], strides = [1, 1]} : vector<4x128xbf16> to vector<3x128xbf16>
    %c1_155 = arith.constant 1 : index
    %c0_156 = arith.constant 0 : index
    %153 = vector.load %arg33[%c1_155, %c0_156] : memref<4x384xbf16, #tpu.memory_space<vmem>>, vector<3x128xbf16>
    tpu.vector_store %arg33[%c1_155, %c0_156], %152 {strides = array<i32>} : memref<4x384xbf16, #tpu.memory_space<vmem>>, vector<3x128xbf16>,
    %c0_157 = arith.constant 0 : index
    %c128_158 = arith.constant 128 : index
    %154 = vector.load %arg33[%c0_157, %c128_158] : memref<4x384xbf16, #tpu.memory_space<vmem>>, vector<4x128xbf16>
    tpu.vector_store %arg33[%c0_157, %c128_158], %149 {strides = array<i32>} : memref<4x384xbf16, #tpu.memory_space<vmem>>, vector<4x128xbf16>,
    %cst_159 = arith.constant 0.000000e+00 : bf16
    %155 = vector.broadcast %cst_159 : bf16 to vector<1x128xbf16>
    %c3_160 = arith.constant 3 : index
    %c256_161 = arith.constant 256 : index
    %156 = vector.load %arg33[%c3_160, %c256_161] : memref<4x384xbf16, #tpu.memory_space<vmem>>, vector<1x128xbf16>
    tpu.vector_store %arg33[%c3_160, %c256_161], %155 {strides = array<i32>} : memref<4x384xbf16, #tpu.memory_space<vmem>>, vector<1x128xbf16>,
    %157 = vector.extract_strided_slice %149 {offsets = [1, 0], sizes = [3, 128], strides = [1, 1]} : vector<4x128xbf16> to vector<3x128xbf16>
    %c0_162 = arith.constant 0 : index
    %c256_163 = arith.constant 256 : index
    %158 = vector.load %arg33[%c0_162, %c256_163] : memref<4x384xbf16, #tpu.memory_space<vmem>>, vector<3x128xbf16>
    tpu.vector_store %arg33[%c0_162, %c256_163], %157 {strides = array<i32>} : memref<4x384xbf16, #tpu.memory_space<vmem>>, vector<3x128xbf16>,
    %c0_164 = arith.constant 0 : index
    %c0_165 = arith.constant 0 : index
    %159 = vector.load %arg33[%c0_164, %c0_165] : memref<4x384xbf16, #tpu.memory_space<vmem>>, vector<4x384xbf16>
    %c0_166 = arith.constant 0 : index
    %c0_167 = arith.constant 0 : index
    %160 = vector.load %arg18[%c0_166, %c0_167] : memref<384x128xbf16, #tpu.memory_space<vmem>>, vector<384x128xbf16>
    %cst_168 = arith.constant dense<0.000000e+00> : vector<4x128xf32>
    %161 = tpu.matmul %159, %160, %cst_168 {dimension_numbers = #tpu.dot_dimension_numbers<[1], [0], [0], [1], [0, 0, 1, 1], [], []>} : vector<4x384xbf16>, vector<384x128xbf16>, vector<4x128xf32> -> vector<4x128xf32>
    %c0_169 = arith.constant 0 : index
    %c0_170 = arith.constant 0 : index
    %162 = vector.load %arg19[%c0_169, %c0_170] : memref<1x128xf32, #tpu.memory_space<vmem>>, vector<1x128xf32>
    %163 = vector.broadcast %162 : vector<1x128xf32> to vector<4x128xf32>
    %164 = arith.addf %161, %163 : vector<4x128xf32>
    %cst_171 = arith.constant 0.000000e+00 : f32
    %165 = vector.broadcast %cst_171 : f32 to vector<4x128xf32>
    %166 = arith.maximumf %164, %165 : vector<4x128xf32>
    %167 = arith.truncf %166 : vector<4x128xf32> to vector<4x128xbf16>
    %cst_172 = arith.constant 0.000000e+00 : bf16
    %168 = vector.broadcast %cst_172 : bf16 to vector<1x128xbf16>
    %c0_173 = arith.constant 0 : index
    %c0_174 = arith.constant 0 : index
    %169 = vector.load %arg34[%c0_173, %c0_174] : memref<4x384xbf16, #tpu.memory_space<vmem>>, vector<1x128xbf16>
    tpu.vector_store %arg34[%c0_173, %c0_174], %168 {strides = array<i32>} : memref<4x384xbf16, #tpu.memory_space<vmem>>, vector<1x128xbf16>,
    %170 = vector.extract_strided_slice %167 {offsets = [0, 0], sizes = [3, 128], strides = [1, 1]} : vector<4x128xbf16> to vector<3x128xbf16>
    %c1_175 = arith.constant 1 : index
    %c0_176 = arith.constant 0 : index
    %171 = vector.load %arg34[%c1_175, %c0_176] : memref<4x384xbf16, #tpu.memory_space<vmem>>, vector<3x128xbf16>
    tpu.vector_store %arg34[%c1_175, %c0_176], %170 {strides = array<i32>} : memref<4x384xbf16, #tpu.memory_space<vmem>>, vector<3x128xbf16>,
    %c0_177 = arith.constant 0 : index
    %c128_178 = arith.constant 128 : index
    %172 = vector.load %arg34[%c0_177, %c128_178] : memref<4x384xbf16, #tpu.memory_space<vmem>>, vector<4x128xbf16>
    tpu.vector_store %arg34[%c0_177, %c128_178], %167 {strides = array<i32>} : memref<4x384xbf16, #tpu.memory_space<vmem>>, vector<4x128xbf16>,
    %cst_179 = arith.constant 0.000000e+00 : bf16
    %173 = vector.broadcast %cst_179 : bf16 to vector<1x128xbf16>
    %c3_180 = arith.constant 3 : index
    %c256_181 = arith.constant 256 : index
    %174 = vector.load %arg34[%c3_180, %c256_181] : memref<4x384xbf16, #tpu.memory_space<vmem>>, vector<1x128xbf16>
    tpu.vector_store %arg34[%c3_180, %c256_181], %173 {strides = array<i32>} : memref<4x384xbf16, #tpu.memory_space<vmem>>, vector<1x128xbf16>,
    %175 = vector.extract_strided_slice %167 {offsets = [1, 0], sizes = [3, 128], strides = [1, 1]} : vector<4x128xbf16> to vector<3x128xbf16>
    %c0_182 = arith.constant 0 : index
    %c256_183 = arith.constant 256 : index
    %176 = vector.load %arg34[%c0_182, %c256_183] : memref<4x384xbf16, #tpu.memory_space<vmem>>, vector<3x128xbf16>
    tpu.vector_store %arg34[%c0_182, %c256_183], %175 {strides = array<i32>} : memref<4x384xbf16, #tpu.memory_space<vmem>>, vector<3x128xbf16>,
    %c0_184 = arith.constant 0 : index
    %c0_185 = arith.constant 0 : index
    %177 = vector.load %arg34[%c0_184, %c0_185] : memref<4x384xbf16, #tpu.memory_space<vmem>>, vector<4x384xbf16>
    %c0_186 = arith.constant 0 : index
    %c0_187 = arith.constant 0 : index
    %178 = vector.load %arg20[%c0_186, %c0_187] : memref<384x128xbf16, #tpu.memory_space<vmem>>, vector<384x128xbf16>
    %cst_188 = arith.constant dense<0.000000e+00> : vector<4x128xf32>
    %179 = tpu.matmul %177, %178, %cst_188 {dimension_numbers = #tpu.dot_dimension_numbers<[1], [0], [0], [1], [0, 0, 1, 1], [], []>} : vector<4x384xbf16>, vector<384x128xbf16>, vector<4x128xf32> -> vector<4x128xf32>
    %c0_189 = arith.constant 0 : index
    %c0_190 = arith.constant 0 : index
    %180 = vector.load %arg21[%c0_189, %c0_190] : memref<1x128xf32, #tpu.memory_space<vmem>>, vector<1x128xf32>
    %181 = vector.broadcast %180 : vector<1x128xf32> to vector<4x128xf32>
    %182 = arith.addf %179, %181 : vector<4x128xf32>
    %cst_191 = arith.constant 0.000000e+00 : f32
    %183 = vector.broadcast %cst_191 : f32 to vector<4x128xf32>
    %184 = arith.maximumf %182, %183 : vector<4x128xf32>
    %185 = arith.truncf %184 : vector<4x128xf32> to vector<4x128xbf16>
    %c0_192 = arith.constant 0 : index
    %c0_193 = arith.constant 0 : index
    %186 = vector.load %arg35[%c0_192, %c0_193] : memref<4x128xbf16, #tpu.memory_space<vmem>>, vector<4x128xbf16>
    tpu.vector_store %arg35[%c0_192, %c0_193], %185 {strides = array<i32>} : memref<4x128xbf16, #tpu.memory_space<vmem>>, vector<4x128xbf16>,
    %c0_194 = arith.constant 0 : index
    %c0_195 = arith.constant 0 : index
    %187 = vector.load %arg35[%c0_194, %c0_195] : memref<4x128xbf16, #tpu.memory_space<vmem>>, vector<4x128xbf16>
    %c0_196 = arith.constant 0 : index
    %c0_197 = arith.constant 0 : index
    %188 = vector.load %arg22[%c0_196, %c0_197] : memref<128x128xbf16, #tpu.memory_space<vmem>>, vector<128x128xbf16>
    %cst_198 = arith.constant dense<0.000000e+00> : vector<4x128xf32>
    %189 = tpu.matmul %187, %188, %cst_198 {dimension_numbers = #tpu.dot_dimension_numbers<[1], [0], [0], [1], [0, 0, 1, 1], [], []>} : vector<4x128xbf16>, vector<128x128xbf16>, vector<4x128xf32> -> vector<4x128xf32>
    %c0_199 = arith.constant 0 : index
    %c0_200 = arith.constant 0 : index
    %190 = vector.load %arg23[%c0_199, %c0_200] : memref<1x128xf32, #tpu.memory_space<vmem>>, vector<1x128xf32>
    %191 = vector.broadcast %190 : vector<1x128xf32> to vector<4x128xf32>
    %192 = arith.addf %189, %191 : vector<4x128xf32>
    %c0_201 = arith.constant 0 : index
    %c0_202 = arith.constant 0 : index
    %c0_203 = arith.constant 0 : index
    %193 = vector.load %arg26[%c0_201, %c0_202, %c0_203] : memref<1x4x128xf32, #tpu.memory_space<vmem>>, vector<1x4x128xf32>
    %194 = vector.shape_cast %193 : vector<1x4x128xf32> to vector<4x128xf32>
    %195 = vector.shape_cast %192 : vector<4x128xf32> to vector<1x4x128xf32>
    tpu.vector_store %arg26[%c0_201, %c0_202, %c0_203], %195 {strides = array<i32>} : memref<1x4x128xf32, #tpu.memory_space<vmem>>, vector<1x4x128xf32>,
    return
  }
  func.func @transform_0(%arg0: i32) -> (i32, i32, i32) {
    %c0_i32 = arith.constant 0 : i32
    %c0_i32_0 = arith.constant 0 : i32
    %c0_i32_1 = arith.constant 0 : i32
    return %arg0, %c0_i32, %c0_i32_0 : i32, i32, i32
  }
  func.func @transform_1(%arg0: i32) -> (i32, i32) {
    %c0_i32 = arith.constant 0 : i32
    %c0_i32_0 = arith.constant 0 : i32
    %c0_i32_1 = arith.constant 0 : i32
    return %c0_i32, %c0_i32_0 : i32, i32
  }
  func.func @transform_2(%arg0: i32) -> (i32, i32) {
    %c0_i32 = arith.constant 0 : i32
    %c0_i32_0 = arith.constant 0 : i32
    %c0_i32_1 = arith.constant 0 : i32
    return %c0_i32, %c0_i32_0 : i32, i32
  }
  func.func @transform_3(%arg0: i32) -> (i32, i32) {
    %c0_i32 = arith.constant 0 : i32
    %c0_i32_0 = arith.constant 0 : i32
    %c0_i32_1 = arith.constant 0 : i32
    return %c0_i32, %c0_i32_0 : i32, i32
  }
  func.func @transform_4(%arg0: i32) -> (i32, i32) {
    %c0_i32 = arith.constant 0 : i32
    %c0_i32_0 = arith.constant 0 : i32
    %c0_i32_1 = arith.constant 0 : i32
    return %c0_i32, %c0_i32_0 : i32, i32
  }
  func.func @transform_5(%arg0: i32) -> (i32, i32, i32) {
    %c0_i32 = arith.constant 0 : i32
    %c0_i32_0 = arith.constant 0 : i32
    %c0_i32_1 = arith.constant 0 : i32
    %c0_i32_2 = arith.constant 0 : i32
    return %c0_i32, %c0_i32_0, %c0_i32_1 : i32, i32, i32
  }
  func.func @transform_6(%arg0: i32) -> (i32, i32, i32) {
    %c0_i32 = arith.constant 0 : i32
    %c0_i32_0 = arith.constant 0 : i32
    %c0_i32_1 = arith.constant 0 : i32
    %c0_i32_2 = arith.constant 0 : i32
    return %c0_i32, %c0_i32_0, %c0_i32_1 : i32, i32, i32
  }
  func.func @transform_7(%arg0: i32) -> (i32, i32) {
    %c0_i32 = arith.constant 0 : i32
    %c0_i32_0 = arith.constant 0 : i32
    %c0_i32_1 = arith.constant 0 : i32
    return %c0_i32, %c0_i32_0 : i32, i32
  }
  func.func @transform_8(%arg0: i32) -> (i32, i32) {
    %c0_i32 = arith.constant 0 : i32
    %c0_i32_0 = arith.constant 0 : i32
    %c0_i32_1 = arith.constant 0 : i32
    return %c0_i32, %c0_i32_0 : i32, i32
  }
  func.func @transform_9(%arg0: i32) -> (i32, i32) {
    %c0_i32 = arith.constant 0 : i32
    %c0_i32_0 = arith.constant 0 : i32
    %c0_i32_1 = arith.constant 0 : i32
    return %c0_i32, %c0_i32_0 : i32, i32
  }
  func.func @transform_10(%arg0: i32) -> (i32, i32) {
    %c0_i32 = arith.constant 0 : i32
    %c0_i32_0 = arith.constant 0 : i32
    %c0_i32_1 = arith.constant 0 : i32
    return %c0_i32, %c0_i32_0 : i32, i32
  }
  func.func @transform_11(%arg0: i32) -> (i32, i32) {
    %c0_i32 = arith.constant 0 : i32
    %c0_i32_0 = arith.constant 0 : i32
    %c0_i32_1 = arith.constant 0 : i32
    return %c0_i32, %c0_i32_0 : i32, i32
  }
  func.func @transform_12(%arg0: i32) -> (i32, i32) {
    %c0_i32 = arith.constant 0 : i32
    %c0_i32_0 = arith.constant 0 : i32
    %c0_i32_1 = arith.constant 0 : i32
    return %c0_i32, %c0_i32_0 : i32, i32
  }
  func.func @transform_13(%arg0: i32) -> (i32, i32, i32) {
    %c0_i32 = arith.constant 0 : i32
    %c0_i32_0 = arith.constant 0 : i32
    %c0_i32_1 = arith.constant 0 : i32
    %c0_i32_2 = arith.constant 0 : i32
    return %c0_i32, %c0_i32_0, %c0_i32_1 : i32, i32, i32
  }
  func.func @transform_14(%arg0: i32) -> (i32, i32, i32) {
    %c0_i32 = arith.constant 0 : i32
    %c0_i32_0 = arith.constant 0 : i32
    %c0_i32_1 = arith.constant 0 : i32
    %c0_i32_2 = arith.constant 0 : i32
    return %c0_i32, %c0_i32_0, %c0_i32_1 : i32, i32, i32
  }
  func.func @transform_15(%arg0: i32) -> (i32, i32) {
    %c0_i32 = arith.constant 0 : i32
    %c0_i32_0 = arith.constant 0 : i32
    %c0_i32_1 = arith.constant 0 : i32
    return %c0_i32, %c0_i32_0 : i32, i32
  }
  func.func @transform_16(%arg0: i32) -> (i32, i32) {
    %c0_i32 = arith.constant 0 : i32
    %c0_i32_0 = arith.constant 0 : i32
    %c0_i32_1 = arith.constant 0 : i32
    return %c0_i32, %c0_i32_0 : i32, i32
  }
  func.func @transform_17(%arg0: i32) -> (i32, i32) {
    %c0_i32 = arith.constant 0 : i32
    %c0_i32_0 = arith.constant 0 : i32
    %c0_i32_1 = arith.constant 0 : i32
    return %c0_i32, %c0_i32_0 : i32, i32
  }
  func.func @transform_18(%arg0: i32) -> (i32, i32) {
    %c0_i32 = arith.constant 0 : i32
    %c0_i32_0 = arith.constant 0 : i32
    %c0_i32_1 = arith.constant 0 : i32
    return %c0_i32, %c0_i32_0 : i32, i32
  }
  func.func @transform_19(%arg0: i32) -> (i32, i32) {
    %c0_i32 = arith.constant 0 : i32
    %c0_i32_0 = arith.constant 0 : i32
    %c0_i32_1 = arith.constant 0 : i32
    return %c0_i32, %c0_i32_0 : i32, i32
  }
  func.func @transform_20(%arg0: i32) -> (i32, i32) {
    %c0_i32 = arith.constant 0 : i32
    %c0_i32_0 = arith.constant 0 : i32
    %c0_i32_1 = arith.constant 0 : i32
    return %c0_i32, %c0_i32_0 : i32, i32
  }
  func.func @transform_21(%arg0: i32) -> (i32, i32) {
    %c0_i32 = arith.constant 0 : i32
    %c0_i32_0 = arith.constant 0 : i32
    %c0_i32_1 = arith.constant 0 : i32
    return %c0_i32, %c0_i32_0 : i32, i32
  }
  func.func @transform_22(%arg0: i32) -> (i32, i32) {
    %c0_i32 = arith.constant 0 : i32
    %c0_i32_0 = arith.constant 0 : i32
    %c0_i32_1 = arith.constant 0 : i32
    return %c0_i32, %c0_i32_0 : i32, i32
  }
  func.func @transform_23(%arg0: i32) -> (i32, i32, i32) {
    %c0_i32 = arith.constant 0 : i32
    %c0_i32_0 = arith.constant 0 : i32
    %c0_i32_1 = arith.constant 0 : i32
    return %arg0, %c0_i32, %c0_i32_0 : i32, i32, i32
  }
  func.func @transform_24(%arg0: i32) -> (i32, i32, i32) {
    %c0_i32 = arith.constant 0 : i32
    %c0_i32_0 = arith.constant 0 : i32
    %c0_i32_1 = arith.constant 0 : i32
    return %arg0, %c0_i32, %c0_i32_0 : i32, i32, i32
  }
  func.func @transform_25(%arg0: i32) -> (i32, i32, i32) {
    %c0_i32 = arith.constant 0 : i32
    %c0_i32_0 = arith.constant 0 : i32
    %c0_i32_1 = arith.constant 0 : i32
    return %arg0, %c0_i32, %c0_i32_0 : i32, i32, i32
  }
}

</mosaic_0001>

<bundles_post_ra>
// kernel: feature_net_forward.4
= control target key start
LH: loop header
LB: loop body
LE: loop exit
PB: predicated region body
PF: predicated region fallthrough
CT: control target
= control target key end

     0   :  { %s1728_s30 = smov 0   ;;  %s2099_s0 = inlined_call_operand.vmem [shape: f32[2,4,128], index: 0, kind: input, shape index: {}]   ;;  %s2100_s1 = inlined_call_operand.vmem [shape: bf16[2,8,128], index: 1, kind: input, shape index: {}]   ;;  %s2101_s2 = inlined_call_operand.vmem [shape: f32[8,4], index: 2, kind: input, shape index: {}]   ;;  %s2102_s3 = inlined_call_operand.vmem [shape: f32[128,256], index: 3, kind: input, shape index: {}]   ;;  %s2103_s4 = inlined_call_operand.vmem [shape: bf16[128,256], index: 4, kind: input, shape index: {}]   ;;  %s2104_s5 = inlined_call_operand.vmem [shape: f32[1,256], index: 5, kind: input, shape index: {}]   ;;  %s2105_s6 = inlined_call_operand.vmem [shape: bf16[768,128], index: 6, kind: input, shape index: {}]   ;;  %s2106_s7 = inlined_call_operand.vmem [shape: f32[1,128], index: 7, kind: input, shape index: {}]   ;;  %s2107_s8 = inlined_call_operand.vmem [shape: bf16[2,8,256], index: 8, kind: output, shape index: {0}]   ;;  %s2108_s9 = inlined_call_operand.vmem [shape: f32[2,8,128], index: 9, kind: output, shape index: {1}]  }
   0x1 LB: > { %s1389_s10 = sadd.s32 4294967295, %s1673_s30   ;;  %p1393_p0 = scmp.ge.s32.totalorder %s1673_s30, 1  ;;  %s1673_s30 = sphi %s1728_s30, %s20_s30  }
   0x2   : > { %p298_p1 = scmp.lt.s32.totalorder %s1673_s30, 3 }
   0x4   : > { %p299_p2 = pnand %p1393_p0, %p298_p1 }
   0x5   : > { %p341_p3 = scmp.lt.s32.totalorder (!%p299_p2), %s1389_s10, 1  ;;  %v1675_v0 = vmov (!%p299_p2), 0.0   ;;  %vm1676_vm0 = vmmov (!%p299_p2), 0   ;;  %v1593_v1 = vld [vmem:[%s2103_s4 + $0x4] ss:$8 sps:$4 sm:$0xff] (!%p299_p2)   ;;  %v1677_v2 = vmov (!%p299_p2), 0  }
   0x6   : > { %302 = sbr.rel (%p299_p2) target bundleno = 709 (0x2c5), region = 52  ;;  %1545 = vmatprep.subr.mxu0 (!%p299_p2), %v1675_v0  ;;  %1547 = vmatprep.mubr.msk.f32.mxu0 (!%p299_p2), %vm1676_vm0, %v1675_v0  ;;  %vm365_vm1 = vcmask (!%p299_p2), 1043456   ;;  %v1595_v3 = vld [vmem:[%s2103_s4] ss:$8 sps:$4 sm:$0xff] (!%p299_p2)   ;;  %vm361_vm2 = vcmask (!%p299_p2), 31744   ;;  %v442_v6 = vld [vmem:[%s2102_s3 + $0x18] sm:$0xff] (!%p299_p2) }
   0x7   : > { %600 = vmatprep.mubr.bf16.mxu1 (!%p299_p2), %v1677_v2  ;;  %v440_v4 = vld [vmem:[%s2102_s3 + $0x8] sm:$0xff] (!%p299_p2)  ;;  %v360_v5 = vld [vmem:[%s2101_s2] sm:$0xff] (!%p299_p2)  ;;  %568 = vmatprep.subr.bf16.mxu1 (!%p299_p2), %v1593_v1  ;;  %v1596_v9 = vld [vmem:[%s2103_s4 + $0x14] ss:$8 sps:$4 sm:$0xff] (!%p299_p2)   ;;  %vm703_vm3 = vcmask (!%p299_p2), 1040384   ;;  %vm706_vm5 = vcmask (!%p299_p2), 1044484  }
   0x8   : > { %569 = vmatpush1.bf16.msra.mxu1 (!%p299_p2), %v1595_v3  ;;  %v1550_v8 = vpack.c.bf16 (!%p299_p2), %v442_v6, %v440_v4  ;;  %v439_v10 = vld [vmem:[%s2102_s3] sm:$0xff] (!%p299_p2)  ;;  %v441_v11 = vld [vmem:[%s2102_s3 + $0x10] sm:$0xff] (!%p299_p2)  ;;  %v444_v14 = vld [vmem:[%s2102_s3 + $0x28] sm:$0xff] (!%p299_p2)  ;;  %vm704_vm4 = vsmask.f32 (!%p299_p2), 256  ;;  %vm732_vm9 = vcmask (!%p299_p2), 1043459  }
   0x9   : > { %v1552_v12 = vpack.c.bf16 (!%p299_p2), %v441_v11, %v439_v10  ;;  %v1598_v13 = vld [vmem:[%s2103_s4 + $0x10] ss:$8 sps:$4 sm:$0xff] (!%p299_p2)   ;;  %570 = vmatprep.subr.bf16.mxu1 (!%p299_p2), %v1596_v9  ;;  %v1599_v17 = vld [vmem:[%s2103_s4 + $0x24] ss:$8 sps:$4 sm:$0xff] (!%p299_p2)   ;;  %v1601_v20 = vld [vmem:[%s2103_s4 + $0x20] ss:$8 sps:$4 sm:$0xff] (!%p299_p2)  }
   0xa   : > { %v446_v15 = vld [vmem:[%s2102_s3 + $0x38] sm:$0xff] (!%p299_p2)  ;;  %v443_v18 = vld [vmem:[%s2102_s3 + $0x20] sm:$0xff] (!%p299_p2)  ;;  %v445_v19 = vld [vmem:[%s2102_s3 + $0x30] sm:$0xff] (!%p299_p2)  ;;  %vm707_vm7 = vsmask.f32 (!%p299_p2), 4352  ;;  %vm735_vm11 = vcmask (!%p299_p2), 1047559  }
   0xb   : > { %v1554_v16 = vpack.c.bf16 (!%p299_p2), %v446_v15, %v444_v14  ;;  %v1556_v21 = vpack.c.bf16 (!%p299_p2), %v445_v19, %v443_v18  ;;  %v448_v22 = vld [vmem:[%s2102_s3 + $0x48] sm:$0xff] (!%p299_p2)  ;;  %v450_v23 = vld [vmem:[%s2102_s3 + $0x58] sm:$0xff] (!%p299_p2)  ;;  %v447_v26 = vld [vmem:[%s2102_s3 + $0x40] sm:$0xff] (!%p299_p2)  ;;  %vm733_vm10 = vsmask.f32 (!%p299_p2), 7950 }
   0xc   : > { %571 = vmatpush1.bf16.msra.mxu1 (!%p299_p2), %v1598_v13  ;;  %v1558_v24 = vpack.c.bf16 (!%p299_p2), %v450_v23, %v448_v22  ;;  %v1602_v25 = vld [vmem:[%s2103_s4 + $0x34] ss:$8 sps:$4 sm:$0xff] (!%p299_p2)   ;;  %v1604_v28 = vld [vmem:[%s2103_s4 + $0x30] ss:$8 sps:$4 sm:$0xff] (!%p299_p2)   ;;  %v452_v29 = vld [vmem:[%s2102_s3 + $0x68] sm:$0xff] (!%p299_p2) }
   0xd   : > { %s2120_s10 = smov (!%p341_p3, %s1389_s10), 1  ;;  %572 = vmatprep.subr.bf16.mxu1 %v1599_v17  ;;  %v449_v27 = vld [vmem:[%s2102_s3 + $0x50] sm:$0xff]  ;;  %v454_v31 = vld [vmem:[%s2102_s3 + $0x78] sm:$0xff]  ;;  %v1605_v33 = vld [vmem:[%s2103_s4 + $0x44] ss:$8 sps:$4 sm:$0xff]  }
   0xe   : > { %s1394_s13 = sshll.u32 %s2120_s10, 2  ;;  %v1560_v30 = vpack.c.bf16 %v449_v27, %v447_v26  ;;  %v1562_v32 = vpack.c.bf16 %v454_v31, %v452_v29  ;;  %v451_v34 = vld [vmem:[%s2102_s3 + $0x60] sm:$0xff]  ;;  %v453_v35 = vld [vmem:[%s2102_s3 + $0x70] sm:$0xff]  ;;  %v456_v36 = vld [vmem:[%s2102_s3 + $0x88] sm:$0xff]  ;;  %vm736_vm13 = vsmask.f32 7966 }
   0xf   : > { %s344_s20 = scalar_lea.vmem %s2099_s0, %s1394_s13  ;;  %v458_v37 = vld [vmem:[%s2102_s3 + $0x98] sm:$0xff]  ;;  %v1564_v38 = vpack.c.bf16 %v453_v35, %v451_v34  ;;  %v1607_v39 = vld [vmem:[%s2103_s4 + $0x40] ss:$8 sps:$4 sm:$0xff]   ;;  %v457_v43 = vld [vmem:[%s2102_s3 + $0x90] sm:$0xff]  ;;  %s348_s21 = scalar_lea.vmem %s2100_s1, %s1394_s13 }
  0x10   : > { %v359_v7 = vld [vmem:[%s344_s20] sm:$0xf]  ;;  %573 = vmatpush1.bf16.msra.mxu1 %v1601_v20  ;;  %v1608_v40 = vld [vmem:[%s2103_s4 + $0x54] ss:$8 sps:$4 sm:$0xff]   ;;  %v1566_v41 = vpack.c.bf16 %v458_v37, %v456_v36  ;;  %v460_v44 = vld [vmem:[%s2102_s3 + $0xa8] sm:$0xff]  ;;  %s1475_s18 = sshll.u32 %s2120_s10, 3 }
  0x11   : > { %1546 = vmatpush3.msk.msra.mxu0 %vm365_vm1, %v359_v7  ;;  %574 = vmatprep.subr.bf16.mxu1 %v1602_v25  ;;  %v455_v42 = vld [vmem:[%s2102_s3 + $0x80] sm:$0xff]  ;;  %v462_v45 = vld [vmem:[%s2102_s3 + $0xb8] sm:$0xff]  ;;  %v461_v51 = vld [vmem:[%s2102_s3 + $0xb0] sm:$0xff]  ;;  %s357_s20 = scalar_lea.vmem %s2108_s9, %s1475_s18 }
  0x12   : > { %1548 = vmatmul.mubr.msk.f32.vlgmr.msra.gmra.mrb[0].mxu0 %vm361_vm2, %v360_v5  ;;  %1551 = vmatprep.subr.bf16.mxu0 %v1550_v8  ;;  %v1568_v46 = vpack.c.bf16 %v457_v43, %v455_v42  ;;  %v1610_v47 = vld [vmem:[%s2103_s4 + $0x50] ss:$8 sps:$4 sm:$0xff]   ;;  %v1570_v48 = vpack.c.bf16 %v462_v45, %v460_v44  ;;  %v1611_v49 = vld [vmem:[%s2103_s4 + $0x64] ss:$8 sps:$4 sm:$0xff]   ;;  %v1613_v52 = vld [vmem:[%s2103_s4 + $0x60] ss:$8 sps:$4 sm:$0xff]  }
  0x13   : > { %673 = vmatprep.mubr.f32.mxu0 %v1675_v0  ;;  %1553 = vmatpush1.bf16.msra.mxu0 %v1552_v12  ;;  %v459_v50 = vld [vmem:[%s2102_s3 + $0xa0] sm:$0xff]  ;;  %v464_v53 = vld [vmem:[%s2102_s3 + $0xc8] sm:$0xff]  ;;  %v466_v54 = vld [vmem:[%s2102_s3 + $0xd8] sm:$0xff]  ;;  %vm722_vm2 = vsmask.f32 7938 }
  0x14   : > { %1555 = vmatprep.subr.bf16.mxu0 %v1554_v16  ;;  %575 = vmatpush1.bf16.msra.mxu1 %v1604_v28  ;;  %v1614_v55 = vld [vmem:[%s2103_s4 + $0x74] ss:$8 sps:$4 sm:$0xff]   ;;  %v463_v56 = vld [vmem:[%s2102_s3 + $0xc0] sm:$0xff]  ;;  %v1572_v58 = vpack.c.bf16 %v461_v51, %v459_v50  ;;  %v468_v59 = vld [vmem:[%s2102_s3 + $0xe8] sm:$0xff]  ;;  %v1574_v61 = vpack.c.bf16 %v466_v54, %v464_v53 }
  0x15   : > { %576 = vmatprep.subr.bf16.mxu1 %v1605_v33  ;;  %v465_v57 = vld [vmem:[%s2102_s3 + $0xd0] sm:$0xff]  ;;  %v470_v60 = vld [vmem:[%s2102_s3 + $0xf8] sm:$0xff]  ;;  %v467_v63 = vld [vmem:[%s2102_s3 + $0xe0] sm:$0xff] }
  0x16   : > { %v1616_v62 = vld [vmem:[%s2103_s4 + $0x70] ss:$8 sps:$4 sm:$0xff]   ;;  %v1576_v1 = vpack.c.bf16 %v465_v57, %v463_v56  ;;  %v1578_v2 = vpack.c.bf16 %v470_v60, %v468_v59  ;;  %v471_v3 = vld [vmem:[%s348_s21] sm:$0xf]  ;;  %v1625_v8 = vld [vmem:[%s2105_s6 + $0x48] sm:$0xff]   ;;  %s353_s21 = scalar_lea.vmem %s2107_s8, %s1475_s18 }
  0x17   : > { %1557 = vmatpush1.bf16.msra.mxu0 %v1556_v21  ;;  %v469_v0 = vld [vmem:[%s2102_s3 + $0xf0] sm:$0xff]  ;;  %v1617_v5 = vld [vmem:[%s2105_s6 + $0xc0] sm:$0xff]   ;;  %v1626_v9 = vld [vmem:[%s2105_s6 + $0x8] sm:$0xff]  }
  0x18   : > { %1559 = vmatprep.subr.bf16.mxu0 %v1558_v24  ;;  %577 = vmatpush1.bf16.msra.mxu1 %v1607_v39  ;;  %v1580_v4 = vpack.c.bf16 %v469_v0, %v467_v63  ;;  %v1621_v6 = vld [vmem:[%s2105_s6 + $0x40] sm:$0xff]   ;;  %v1619_v11 = vld [vmem:[%s2105_s6 + $0xc8] sm:$0xff]   ;;  %v1623_v15 = vld [vmem:[%s2105_s6 + $0xd0] sm:$0xff]  }
  0x19   : > { %578 = vmatprep.subr.bf16.mxu1 %v1608_v40  ;;  %v1622_v7 = vld [vmem:[%s2105_s6] sm:$0xff]   ;;  %v1620_v14 = vld [vmem:[%s2105_s6 + $0x88] sm:$0xff]   ;;  %v1624_v16 = vld [vmem:[%s2105_s6 + $0x90] sm:$0xff]  }
  0x1a   : > { %v1618_v10 = vld [vmem:[%s2105_s6 + $0x80] sm:$0xff]   ;;  %v1627_v17 = vld [vmem:[%s2105_s6 + $0xd8] sm:$0xff]   ;;  %v1629_v23 = vld [vmem:[%s2105_s6 + $0x50] sm:$0xff]  }
  0x1b   : > { %1561 = vmatpush1.bf16.msra.mxu0 %v1560_v30  ;;  %v1628_v22 = vld [vmem:[%s2105_s6 + $0x98] sm:$0xff]   ;;  %v1630_v24 = vld [vmem:[%s2105_s6 + $0x10] sm:$0xff]   ;;  %v1631_v25 = vld [vmem:[%s2105_s6 + $0xe0] sm:$0xff]  }
  0x1c   : > { %1563 = vmatprep.subr.bf16.mxu0 %v1562_v32  ;;  %579 = vmatpush1.bf16.msra.mxu1 %v1610_v47  ;;  %v1632_v26 = vld [vmem:[%s2105_s6 + $0xa0] sm:$0xff]   ;;  %v1633_v27 = vld [vmem:[%s2105_s6 + $0x58] sm:$0xff]   ;;  %v1635_v29 = vld [vmem:[%s2105_s6 + $0xe8] sm:$0xff]  }
  0x1d   : > { %580 = vmatprep.subr.bf16.mxu1 %v1611_v49  ;;  %v1634_v28 = vld [vmem:[%s2105_s6 + $0x18] sm:$0xff]   ;;  %v1636_v30 = vld [vmem:[%s2105_s6 + $0xa8] sm:$0xff]   ;;  %v1637_v31 = vld [vmem:[%s2105_s6 + $0x60] sm:$0xff]   ;;  %v682_v49 = vlaneseq }
  0x1e   : > { %v1638_v32 = vld [vmem:[%s2105_s6 + $0x20] sm:$0xff]   ;;  %v1639_v33 = vld [vmem:[%s2105_s6 + $0xf0] sm:$0xff]   ;;  %vm1973_vm6 = vmand %vm703_vm3, %vm704_vm4  ;;  %vm724_vm3 = vcmask 1047556   ;;  %vm725_vm4 = vsmask.f32 7954 }
  0x1f   : > { %1565 = vmatpush1.bf16.msra.mxu0 %v1564_v38  ;;  %v1640_v34 = vld [vmem:[%s2105_s6 + $0xb0] sm:$0xff]   ;;  %v1641_v36 = vld [vmem:[%s2105_s6 + $0x68] sm:$0xff]   ;;  %vm708_vm8 = vmand %vm706_vm5, %vm707_vm7  ;;  %v683_v50 = vshrl.u32 %v682_v49, 7  ;;  %vm747_vm5 = vsmask.f32 3328 }
  0x20   : > { %1567 = vmatprep.subr.bf16.mxu0 %v1566_v41  ;;  %581 = vmatpush1.bf16.msra.mxu1 %v1613_v52  ;;  %v710_v37 = vld [vmem:[#allocation2] sm:$0x11]  ;;  %vm709_vm12 = vmor %vm708_vm8, %vm1973_vm6  ;;  %v1642_v38 = vld [vmem:[%s2105_s6 + $0x28] sm:$0xff]   ;;  %vm749_vm7 = vsmask.f32 7424 }
  0x21   : > { %582 = vmatprep.subr.bf16.mxu1 %v1614_v55  ;;  %v1643_v39 = vld [vmem:[%s2105_s6 + $0xf8] sm:$0xff]   ;;  %v711_v40 = vsel %vm709_vm12, 0, %v710_v37  ;;  %vm734_vm14 = vmand %vm732_vm9, %vm733_vm10  ;;  %v739_v41 = vld [vmem:[#allocation2 + $0x10] sm:$0x88]  ;;  %v684_v51 = vsub.s32 0, %v683_v50  ;;  %v688_v53 = vsub.s32 1, %v683_v50 }
  0x22   : > { %v1644_v42 = vld [vmem:[%s2105_s6 + $0xb8] sm:$0xff]   ;;  %712 = vst [vmem:[#allocation2] sm:$0x11] %v711_v40  ;;  %vm737_vm15 = vmand %vm735_vm11, %vm736_vm13  ;;  %v1645_v43 = vld [vmem:[%s2105_s6 + $0x70] sm:$0xff]  }
  0x23   : > { %1569 = vmatpush1.bf16.msra.mxu0 %v1568_v46  ;;  %vm738_vm0 = vmor %vm737_vm15, %vm734_vm14  ;;  %v1646_v44 = vld [vmem:[%s2105_s6 + $0x30] sm:$0xff]   ;;  %v1647_v46 = vld [vmem:[%s2105_s6 + $0x78] sm:$0xff]  }
  0x24   : > { %1571 = vmatprep.subr.bf16.mxu0 %v1570_v48  ;;  %583 = vmatpush1.bf16.msra.mxu1 %v1616_v62  ;;  %v740_v45 = vsel %vm738_vm0, 0, %v739_v41  ;;  %v1648_v47 = vld [vmem:[%s2105_s6 + $0x38] sm:$0xff]   ;;  %v1649_v48 = vld [vmem:[%s2105_s6 + $0x140] sm:$0xff]   ;;  %vm2018_vm6 = vmand %vm365_vm1, %vm722_vm2 }
  0x25   : > { %1479 = vmatprep.subr.bf16.mxu1 %v1621_v6  ;;  %741 = vst [vmem:[#allocation2 + $0x10] sm:$0x88] %v740_v45  ;;  %v680_v52 = vld [vmem:[%s2104_s5] sm:$0x3]  ;;  %vm2022_vm8 = vmand %vm724_vm3, %vm725_vm4 }
  0x26   : > { %v685_v54 = vrot.slane %v680_v52, %v684_v51  ;;  %v689_v56 = vrot.slane %v680_v52, %v688_v53  ;;  %vm2027_vm9 = vmand %vm365_vm1, %vm747_vm5 }
  0x27   : > { %1573 = vmatpush1.bf16.msra.mxu0 %v1572_v58  ;;  %601 = vmatmul.mubr.bf16.vlgmr.msra.gmra.mrb[0].mxu1 %v471_v3  ;;  %vm2031_vm10 = vmand %vm724_vm3, %vm749_vm7 }
  0x28   : > { %1575 = vmatprep.subr.bf16.mxu0 %v1574_v61  ;;  %1480 = vmatpush3.bf16.msra.mxu1 %v1622_v7  ;;  %vm727_vm11 = vmor %vm2022_vm8, %vm2018_vm6 }
  0x29   : > { %1481 = vmatprep.subr.bf16.mxu1 %v1625_v8  ;;  %vm751_vm1 = vmor %vm2031_vm10, %vm2027_vm9 }
  0x2b   : > { %1577 = vmatpush1.bf16.msra.mxu0 %v1576_v1 }
  0x2c   : > { %1579 = vmatprep.subr.bf16.mxu0 %v1578_v2  ;;  %1482 = vmatpush3.bf16.msra.mxu1 %v1626_v9 }
  0x2d   : > { %1483 = vmatprep.subr.bf16.mxu1 %v1629_v23  ;;  %v1653_v23 = vld [vmem:[%s2105_s6 + $0x150] sm:$0xff]  }
  0x2f   : > { %1581 = vmatpush1.bf16.msra.mxu0 %v1580_v4 }
  0x30   : > { %1501 = vmatprep.subr.bf16.mxu0 %v1617_v5  ;;  %1484 = vmatpush3.bf16.msra.mxu1 %v1630_v24  ;;  %v1654_v24 = vld [vmem:[%s2105_s6 + $0x110] sm:$0xff]  }
  0x31   : > { %1485 = vmatprep.subr.bf16.mxu1 %v1633_v27  ;;  %v1657_v27 = vld [vmem:[%s2105_s6 + $0x160] sm:$0xff]  }
  0x34   : > { %1486 = vmatpush3.bf16.msra.mxu1 %v1634_v28  ;;  %v1658_v28 = vld [vmem:[%s2105_s6 + $0x120] sm:$0xff]  }
  0x35   : > { %1487 = vmatprep.subr.bf16.mxu1 %v1637_v31  ;;  %v1661_v31 = vld [vmem:[%s2105_s6 + $0x170] sm:$0xff]  }
  0x38   : > { %1488 = vmatpush3.bf16.msra.mxu1 %v1638_v32  ;;  %v1662_v32 = vld [vmem:[%s2105_s6 + $0x130] sm:$0xff]  }
  0x39   : > { %1489 = vmatprep.subr.bf16.mxu1 %v1641_v36 }
  0x3c   : > { %1490 = vmatpush3.bf16.msra.mxu1 %v1642_v38 }
  0x3d   : > { %1491 = vmatprep.subr.bf16.mxu1 %v1645_v43 }
  0x40   : > { %1492 = vmatpush3.bf16.msra.mxu1 %v1646_v44 }
  0x41   : > { %1493 = vmatprep.subr.bf16.mxu1 %v1647_v46 }
  0x44   : > { %1494 = vmatpush3.bf16.msra.mxu1 %v1648_v47 }
  0x45   : > { %1523 = vmatprep.subr.bf16.mxu1 %v1649_v48 }
  0xe5   : > { %v435_v12 = vpop.f32.mrb[0].mxu0 }
  0xe6   : > { %v1549_v13 = vpop.f32.mrb[1].mxu0  ;;  %674 = vmatmul.mubr.f32.vlgmr.msra.gmra.mrb[2].mxu0 %v435_v12 }
  0xe7   : > { %1502 = vmatpush3.bf16.msra.mxu0 %v1618_v10  ;;  %v728_v10 = vld [vmem:[#allocation2] sm:$0xff]  ;;  %v752_v13 = vld [vmem:[#allocation2 + $0x10] sm:$0xff] }
  0xe8   : > { %1503 = vmatprep.subr.bf16.mxu0 %v1619_v11 }
  0xeb   : > { %1504 = vmatpush3.bf16.msra.mxu0 %v1620_v14 }
  0xec   : > { %1505 = vmatprep.subr.bf16.mxu0 %v1623_v15 }
  0xef   : > { %1506 = vmatpush3.bf16.msra.mxu0 %v1624_v16 }
  0xf0   : > { %1507 = vmatprep.subr.bf16.mxu0 %v1627_v17 }
  0xf3   : > { %1508 = vmatpush3.bf16.msra.mxu0 %v1628_v22  ;;  %v1652_v22 = vld [vmem:[%s2105_s6 + $0x108] sm:$0xff]  }
  0xf4   : > { %1509 = vmatprep.subr.bf16.mxu0 %v1631_v25  ;;  %v1655_v25 = vld [vmem:[%s2105_s6 + $0x158] sm:$0xff]  }
  0xf7   : > { %1510 = vmatpush3.bf16.msra.mxu0 %v1632_v26  ;;  %v1656_v26 = vld [vmem:[%s2105_s6 + $0x118] sm:$0xff]  }
  0xf8   : > { %1511 = vmatprep.subr.bf16.mxu0 %v1635_v29  ;;  %v1659_v29 = vld [vmem:[%s2105_s6 + $0x168] sm:$0xff]  }
  0xfa   : > { %v1930_v18 = vpop.f32.mrb[0].mxu1 }
  0xfb   : > { %v1932_v19 = vpop.f32.mrb[1].mxu1  ;;  %1512 = vmatpush3.bf16.msra.mxu0 %v1636_v30  ;;  %v1660_v30 = vld [vmem:[%s2105_s6 + $0x128] sm:$0xff]  }
  0xfc   : > { %v606_v20 = vpop.f32.mrb[2].mxu1  ;;  %1513 = vmatprep.subr.bf16.mxu0 %v1639_v33  ;;  %v1663_v33 = vld [vmem:[%s2105_s6 + $0x178] sm:$0xff]  }
  0xfd   : > { %v607_v21 = vpop.f32.mrb[3].mxu1  ;;  %v1651_v20 = vld [vmem:[%s2105_s6 + $0x148] sm:$0xff]  }
  0xff   : > { %1514 = vmatpush3.bf16.msra.mxu0 %v1640_v34  ;;  %v1664_v34 = vld [vmem:[%s2105_s6 + $0x138] sm:$0xff]  }
 0x100   : > { %1515 = vmatprep.subr.bf16.mxu0 %v1643_v39 }
 0x103   : > { %1516 = vmatpush3.bf16.msra.mxu0 %v1644_v42  ;;  %v1418_v42 = vld [vmem:[%s2106_s7] ss:$0 sm:$0xff] }
 0x1b9   : > { %v675_v55 = vpop.f32.mrb[2].mxu0 }
 0x1ba   : > { %v676_v57 = vadd.f32 %v675_v55, %v1930_v18  ;;  %v677_v58 = vpop.f32.mrb[3].mxu0  ;;  %v1650_v18 = vld [vmem:[%s2105_s6 + $0x100] sm:$0xff]  }
 0x1bb   : > { %v678_v59 = vadd.f32 %v677_v58, %v1932_v19 }
 0x1bc   : > { %v692_v60 = vadd.f32 %v685_v54, %v676_v57 }
 0x1bd   : > { %v693_v61 = vadd.f32 %v689_v56, %v678_v59 }
 0x1be   : > { %v1665_v3 = vpack.c.bf16 %v692_v60, %v692_v60 }
 0x1bf   : > { %v1476_v62 = vpack.c.bf16 %v693_v61, %v692_v60  ;;  %v1666_v4 = vpack.c.bf16 %v693_v61, %v693_v61 }
 0x1c1   : > { %v714_v1 = vshrl.u32 %v1476_v62, 16  ;;  %v717_v2 = vshll.u32 %v1476_v62, 16  ;;  %702 = vst [vmem:[%s353_s21] sm:$0xff] %v1476_v62  ;;  %1242 = vmatprep.mubr.bf16.mxu0 %v1666_v4 }
 0x1c2   : > { %1243 = vmatmul.mubr.bf16.vlgmr.msra.gmra.mrb[4].mxu0 %v1665_v3 }
 0x1c3   : > { %v716_v7 = vrot.slane %v714_v1, 7  ;;  %v742_v8 = vrot.slane %v714_v1, 4  ;;  %v743_v9 = vrot.slane %v717_v2, 5 }
 0x1c5   : > { %v719_v11 = vor.u32 %v717_v2, %v716_v7  ;;  %v744_v12 = vor.u32 %v743_v9, %v742_v8 }
 0x1c7   : > { %v729_v14 = vsel %vm727_vm11, %v719_v11, %v728_v10  ;;  %v745_v15 = vrot.slane %v744_v12, 4 }
 0x1c8   : > { %730 = vst [vmem:[#allocation2] sm:$0xff] %v729_v14  ;;  %v1419_v16 = vcombine.low %v729_v14, %v729_v14  ;;  %v1420_v17 = vcombine.high %v729_v14, %v729_v14 }
 0x1c9   : > { %v753_v19 = vsel %vm751_vm1, %v745_v15, %v752_v13 }
 0x1ca   : > { %754 = vst [vmem:[#allocation2 + $0x10] sm:$0xff] %v753_v19  ;;  %1202 = vmatprep.mubr.bf16.mxu1 %v1420_v17  ;;  %v1424_v21 = vcombine.high %v753_v19, %v753_v19  ;;  %v1423_v35 = vcombine.low %v753_v19, %v753_v19 }
 0x1cb   : > { %1203 = vmatmul.mubr.bf16.vlgmr.msra.gmra.mrb[4].mxu1 %v1419_v16 }
 0x1cc   : > { %1524 = vmatpush3.bf16.msra.mxu1 %v1650_v18  ;;  %1282 = vmatprep.mubr.bf16.mxu1 %v1424_v21 }
 0x1cd   : > { %1525 = vmatprep.subr.bf16.mxu1 %v1651_v20 }
 0x1d0   : > { %1526 = vmatpush3.bf16.msra.mxu1 %v1652_v22 }
 0x1d1   : > { %1527 = vmatprep.subr.bf16.mxu1 %v1653_v23 }
 0x1d4   : > { %1528 = vmatpush3.bf16.msra.mxu1 %v1654_v24 }
 0x1d5   : > { %1529 = vmatprep.subr.bf16.mxu1 %v1655_v25 }
 0x1d8   : > { %1530 = vmatpush3.bf16.msra.mxu1 %v1656_v26 }
 0x1d9   : > { %1531 = vmatprep.subr.bf16.mxu1 %v1657_v27 }
 0x1dc   : > { %1532 = vmatpush3.bf16.msra.mxu1 %v1658_v28 }
 0x1dd   : > { %1533 = vmatprep.subr.bf16.mxu1 %v1659_v29 }
 0x1e0   : > { %1534 = vmatpush3.bf16.msra.mxu1 %v1660_v30 }
 0x1e1   : > { %1535 = vmatprep.subr.bf16.mxu1 %v1661_v31 }
 0x1e4   : > { %1536 = vmatpush3.bf16.msra.mxu1 %v1662_v32 }
 0x1e5   : > { %1537 = vmatprep.subr.bf16.mxu1 %v1663_v33 }
 0x1e8   : > { %1538 = vmatpush3.bf16.msra.mxu1 %v1664_v34 }
 0x1eb   : > { %1283 = vmatmul.mubr.bf16.vlgmr.msra.gmra.mrb[8].mxu1 %v1423_v35 }
 0x295   : > { %v1517_v36 = vpop.f32.mrb[4].mxu0 }
 0x296   : > { %v1518_v37 = vpop.f32.mrb[5].mxu0 }
 0x297   : > { %v1519_v38 = vadd.f32 %v1518_v37, %v1517_v36  ;;  %v1520_v39 = vpop.f32.mrb[6].mxu0 }
 0x298   : > { %v1521_v40 = vpop.f32.mrb[7].mxu0 }
 0x29e   : > { %v1495_v41 = vpop.f32.mrb[4].mxu1 }
 0x29f   : > { %v1496_v43 = vpop.f32.mrb[5].mxu1 }
 0x2a0   : > { %v1497_v44 = vadd.f32 %v1496_v43, %v1495_v41  ;;  %v1498_v45 = vpop.f32.mrb[6].mxu1 }
 0x2a1   : > { %v1499_v46 = vpop.f32.mrb[7].mxu1 }
 0x2a2   : > { %v1205_v47 = vadd.f32 %v1497_v44, %v1418_v42 }
 0x2a4   : > { %v1245_v48 = vadd.f32 %v1519_v38, %v1205_v47 }
 0x2be   : > { %v1539_v49 = vpop.f32.mrb[8].mxu1 }
 0x2bf   : > { %v1540_v50 = vpop.f32.mrb[9].mxu1 }
 0x2c0   : > { %v1541_v51 = vadd.f32 %v1540_v50, %v1539_v49  ;;  %v1542_v52 = vpop.f32.mrb[10].mxu1 }
 0x2c1   : > { %v1543_v53 = vpop.f32.mrb[11].mxu1 }
 0x2c2   : > { %v1285_v54 = vadd.f32 %v1541_v51, %v1245_v48 }
 0x2c4   : > { %1290 = vst [vmem:[%s357_s20] sm:$0xff] %v1285_v54 }
 0x2c5 PF: > { %s20_s30 = sadd.s32 1, %s1673_s30  }
 0x2c6   : > { %p17_p4 = scmp.ge.s32.totalorder %s20_s30, 4  }
 0x2c8   :  { %19 = sbr.rel (!%p17_p4) target bundleno = 1 (0x1), region = 97 }

// kernel: feature_net_forward.5
= control target key start
LH: loop header
LB: loop body
LE: loop exit
PB: predicated region body
PF: predicated region fallthrough
CT: control target
= control target key end

     0   :  { %s2845_s27 = smov 0   ;;  %s3765_s0 = inlined_call_operand.vmem [shape: bf16[2,8,256], index: 0, kind: input, shape index: {}]   ;;  %s3766_s1 = inlined_call_operand.vmem [shape: bf16[2,16,128], index: 1, kind: input, shape index: {}]   ;;  %s3767_s2 = inlined_call_operand.vmem [shape: f32[16,8], index: 2, kind: input, shape index: {}]   ;;  %s3768_s3 = inlined_call_operand.vmem [shape: f32[256,512], index: 3, kind: input, shape index: {}]   ;;  %s3769_s4 = inlined_call_operand.vmem [shape: bf16[128,512], index: 4, kind: input, shape index: {}]   ;;  %s3770_s5 = inlined_call_operand.vmem [shape: f32[1,512], index: 5, kind: input, shape index: {}]   ;;  %s3771_s6 = inlined_call_operand.vmem [shape: bf16[1536,128], index: 6, kind: input, shape index: {}]   ;;  %s3772_s7 = inlined_call_operand.vmem [shape: f32[1,128], index: 7, kind: input, shape index: {}]   ;;  %s3773_s8 = inlined_call_operand.vmem [shape: f32[2,16,128], index: 8, kind: output, shape index: {}]  }
   0x1 LB: > { %s2227_s28 = sadd.s32 4294967295, %s2796_s27   ;;  %p2231_p0 = scmp.ge.s32.totalorder %s2796_s27, 1  ;;  %s2796_s27 = sphi %s2845_s27, %s18_s27  }
   0x2   : > { %p272_p1 = scmp.lt.s32.totalorder %s2796_s27, 3 }
   0x4   : > { %p273_p2 = pnand %p2231_p0, %p272_p1 }
   0x5   : > { %p311_p3 = scmp.lt.s32.totalorder (!%p273_p2), %s2227_s28, 1  ;;  %v2798_v0 = vmov (!%p273_p2), 0.0   ;;  %v2645_v1 = vld [vmem:[%s3769_s4 + $0x4] ss:$16 sps:$4 sm:$0xff] (!%p273_p2)   ;;  %v2647_v2 = vld [vmem:[%s3769_s4] ss:$16 sps:$4 sm:$0xff] (!%p273_p2)  }
   0x6   : > { %276 = sbr.rel (%p273_p2) target bundleno = 752 (0x2f0), region = 52  ;;  %403 = vmatprep.mubr.f32.mxu0 (!%p273_p2), %v2798_v0  ;;  %v2799_v3 = vmov (!%p273_p2), 0   ;;  %744 = vmatprep.subr.bf16.mxu1 (!%p273_p2), %v2645_v1  ;;  %v2651_v4 = vld [vmem:[%s3769_s4 + $0x24] ss:$16 sps:$4 sm:$0xff] (!%p273_p2)   ;;  %v2653_v5 = vld [vmem:[%s3769_s4 + $0x20] ss:$16 sps:$4 sm:$0xff] (!%p273_p2)  }
   0x7   : > { %776 = vmatprep.mubr.bf16.mxu1 (!%p273_p2), %v2799_v3  ;;  %745 = vmatpush1.bf16.msra.mxu1 (!%p273_p2), %v2647_v2  ;;  %v2650_v6 = vld [vmem:[%s3769_s4 + $0xc] ss:$16 sps:$4 sm:$0xff] (!%p273_p2)   ;;  %v330_v8 = vld [vmem:[%s3767_s2] sm:$0xff] (!%p273_p2)  ;;  %vm332_vm0 = vcmask (!%p273_p2), 64512   ;;  %v2648_v12 = vld [vmem:[%s3769_s4 + $0x8] ss:$16 sps:$4 sm:$0xff] (!%p273_p2)  }
   0x8   : > { %746 = vmatprep.subr.bf16.mxu1 (!%p273_p2), %v2651_v4  ;;  %v2657_v11 = vld [vmem:[%s3769_s4 + $0x44] ss:$16 sps:$4 sm:$0xff] (!%p273_p2)   ;;  %v2656_v13 = vld [vmem:[%s3769_s4 + $0x2c] ss:$16 sps:$4 sm:$0xff] (!%p273_p2)   ;;  %v2659_v14 = vld [vmem:[%s3769_s4 + $0x40] ss:$16 sps:$4 sm:$0xff] (!%p273_p2)  }
   0x9   : > { %v2663_v15 = vld [vmem:[%s3769_s4 + $0x64] ss:$16 sps:$4 sm:$0xff] (!%p273_p2)   ;;  %v331_v16 = vld [vmem:[%s3767_s2 + $0x8] sm:$0xff] (!%p273_p2)  ;;  %v2665_v19 = vld [vmem:[%s3769_s4 + $0x60] ss:$16 sps:$4 sm:$0xff] (!%p273_p2)   ;;  %vm1018_vm1 = vcmask (!%p273_p2), 1040384  }
   0xa   : > { %v2654_v17 = vld [vmem:[%s3769_s4 + $0x28] ss:$16 sps:$4 sm:$0xff] (!%p273_p2)   ;;  %v2662_v18 = vld [vmem:[%s3769_s4 + $0x4c] ss:$16 sps:$4 sm:$0xff] (!%p273_p2)   ;;  %v2669_v20 = vld [vmem:[%s3769_s4 + $0x84] ss:$16 sps:$4 sm:$0xff] (!%p273_p2)  }
   0xb   : > { %747 = vmatpush1.bf16.msra.mxu1 (!%p273_p2), %v2653_v5  ;;  %v2660_v21 = vld [vmem:[%s3769_s4 + $0x48] ss:$16 sps:$4 sm:$0xff] (!%p273_p2)   ;;  %v2668_v22 = vld [vmem:[%s3769_s4 + $0x6c] ss:$16 sps:$4 sm:$0xff] (!%p273_p2)   ;;  %v2671_v23 = vld [vmem:[%s3769_s4 + $0x80] ss:$16 sps:$4 sm:$0xff] (!%p273_p2)  }
   0xc   : > { %748 = vmatprep.subr.bf16.mxu1 (!%p273_p2), %v2657_v11  ;;  %v2675_v24 = vld [vmem:[%s3769_s4 + $0xa4] ss:$16 sps:$4 sm:$0xff] (!%p273_p2)   ;;  %v2666_v25 = vld [vmem:[%s3769_s4 + $0x68] ss:$16 sps:$4 sm:$0xff] (!%p273_p2)   ;;  %v2674_v26 = vld [vmem:[%s3769_s4 + $0x8c] ss:$16 sps:$4 sm:$0xff] (!%p273_p2)  }
   0xd   : > { %s3783_s28 = smov (!%p311_p3, %s2227_s28), 1  ;;  %v2677_v27 = vld [vmem:[%s3769_s4 + $0xa0] ss:$16 sps:$4 sm:$0xff]   ;;  %v2681_v28 = vld [vmem:[%s3769_s4 + $0xc4] ss:$16 sps:$4 sm:$0xff]   ;;  %v417_v33 = vld [vmem:[%s3768_s3 + $0x8] sm:$0xff] }
   0xe   : > { %s2372_s11 = sshll.u32 %s3783_s28, 3  ;;  %v2672_v29 = vld [vmem:[%s3769_s4 + $0x88] ss:$16 sps:$4 sm:$0xff]   ;;  %v2680_v30 = vld [vmem:[%s3769_s4 + $0xac] ss:$16 sps:$4 sm:$0xff]   ;;  %v416_v39 = vld [vmem:[%s3768_s3] sm:$0xff] }
   0xf   : > { %s315_s18 = scalar_lea.vmem %s3765_s0, %s2372_s11  ;;  %s2874_s21 = scalar_lea.vmem %s3766_s1, %s2372_s11  ;;  %749 = vmatpush1.bf16.msra.mxu1 %v2659_v14  ;;  %v2683_v31 = vld [vmem:[%s3769_s4 + $0xc0] ss:$16 sps:$4 sm:$0xff]   ;;  %v2687_v32 = vld [vmem:[%s3769_s4 + $0xe4] ss:$16 sps:$4 sm:$0xff]   ;;  %v421_v34 = vld [vmem:[%s3768_s3 + $0x28] sm:$0xff]  ;;  %vm1084_vm3 = vcmask 1047559  }
  0x10   : > { %v327_v7 = vld [vmem:[%s315_s18] sm:$0xff]  ;;  %750 = vmatprep.subr.bf16.mxu1 %v2663_v15  ;;  %v2678_v35 = vld [vmem:[%s3769_s4 + $0xa8] ss:$16 sps:$4 sm:$0xff]   ;;  %v2686_v36 = vld [vmem:[%s3769_s4 + $0xcc] ss:$16 sps:$4 sm:$0xff]   ;;  %v2507_v38 = vpack.c.bf16 %v421_v34, %v417_v33  ;;  %vm1065_vm7 = vcmask 1047552  }
  0x11   : > { %v329_v9 = vunpack.c.h.bf16 %v327_v7  ;;  %v328_v10 = vunpack.c.l.bf16 %v327_v7  ;;  %v2689_v37 = vld [vmem:[%s3769_s4 + $0xe0] ss:$16 sps:$4 sm:$0xff]   ;;  %v425_v41 = vld [vmem:[%s3768_s3 + $0x48] sm:$0xff]  ;;  %v419_v46 = vld [vmem:[%s3768_s3 + $0x18] sm:$0xff]  ;;  %vm1019_vm2 = vsmask.f32 256 }
  0x12   : > { %v420_v40 = vld [vmem:[%s3768_s3 + $0x20] sm:$0xff]  ;;  %v429_v42 = vld [vmem:[%s3768_s3 + $0x68] sm:$0xff]  ;;  %v423_v48 = vld [vmem:[%s3768_s3 + $0x38] sm:$0xff]  ;;  %vm1085_vm4 = vsmask.f32 7966  ;;  %s2374_s17 = sshll.u32 %s3783_s28, 4 }
  0x13   : > { %339 = vmatprep.subr.mxu0 %v329_v9  ;;  %751 = vmatpush1.bf16.msra.mxu1 %v2665_v19  ;;  %v2684_v43 = vld [vmem:[%s3769_s4 + $0xc8] ss:$16 sps:$4 sm:$0xff]   ;;  %v2693_v44 = vld [vmem:[%s2874_s21] sm:$0xff]   ;;  %v2692_v45 = vld [vmem:[%s3769_s4 + $0xec] ss:$16 sps:$4 sm:$0xff]   ;;  %v2509_v47 = vpack.c.bf16 %v420_v40, %v416_v39  ;;  %v2511_v49 = vpack.c.bf16 %v429_v42, %v425_v41  ;;  %v2571_v55 = vpack.c.bf16 %v423_v48, %v419_v46  ;;  %s325_s20 = scalar_lea.vmem %s3773_s8, %s2374_s17 }
  0x14   : > { %340 = vmatpush1.msra.mxu0 %v328_v10  ;;  %752 = vmatprep.subr.bf16.mxu1 %v2669_v20  ;;  %v424_v50 = vld [vmem:[%s3768_s3 + $0x40] sm:$0xff]  ;;  %v433_v52 = vld [vmem:[%s3768_s3 + $0x88] sm:$0xff]  ;;  %v418_v56 = vld [vmem:[%s3768_s3 + $0x10] sm:$0xff]  ;;  %vm1066_vm8 = vsmask.f32 7938 }
  0x15   : > { %2238 = vmatmul.mubr.msk.f32.vlgmr.msra.gmra.mrb[0].mxu0 %vm332_vm0, %v330_v8  ;;  %787 = vmatprep.subr.bf16.mxu0 %v2650_v6  ;;  %v428_v51 = vld [vmem:[%s3768_s3 + $0x60] sm:$0xff]  ;;  %v437_v53 = vld [vmem:[%s3768_s3 + $0xa8] sm:$0xff]  ;;  %v422_v57 = vld [vmem:[%s3768_s3 + $0x30] sm:$0xff]  ;;  %vm1111_vm9 = vsmask.f32 7424 }
  0x16   : > { %409 = vmatprep.mubr.f32.mxu0 %v2798_v0  ;;  %788 = vmatpush1.bf16.msra.mxu0 %v2648_v12  ;;  %v2690_v54 = vld [vmem:[%s3769_s4 + $0xe8] ss:$16 sps:$4 sm:$0xff]   ;;  %v2513_v59 = vpack.c.bf16 %v428_v51, %v424_v50  ;;  %v2515_v61 = vpack.c.bf16 %v437_v53, %v433_v52  ;;  %v432_v62 = vld [vmem:[%s3768_s3 + $0x80] sm:$0xff]  ;;  %v2573_v2 = vpack.c.bf16 %v422_v57, %v418_v56  ;;  %v426_v4 = vld [vmem:[%s3768_s3 + $0x50] sm:$0xff] }
  0x17   : > { %789 = vmatprep.subr.bf16.mxu0 %v2656_v13  ;;  %753 = vmatpush1.bf16.msra.mxu1 %v2671_v23  ;;  %v427_v58 = vld [vmem:[%s3768_s3 + $0x58] sm:$0xff]  ;;  %v436_v63 = vld [vmem:[%s3768_s3 + $0xa0] sm:$0xff]  ;;  %v441_v0 = vld [vmem:[%s3768_s3 + $0xc8] sm:$0xff] }
  0x18   : > { %754 = vmatprep.subr.bf16.mxu1 %v2675_v24  ;;  %v431_v60 = vld [vmem:[%s3768_s3 + $0x78] sm:$0xff]  ;;  %v445_v1 = vld [vmem:[%s3768_s3 + $0xe8] sm:$0xff]  ;;  %v430_v5 = vld [vmem:[%s3768_s3 + $0x70] sm:$0xff]  ;;  %v2517_v7 = vpack.c.bf16 %v436_v63, %v432_v62 }
  0x19   : > { %2239 = vmatmul.mubr.msk.f32.gmra.mrb[2].mxu0 %vm332_vm0, %v331_v16  ;;  %v435_v6 = vld [vmem:[%s3768_s3 + $0x98] sm:$0xff]  ;;  %v2519_v9 = vpack.c.bf16 %v445_v1, %v441_v0  ;;  %v440_v10 = vld [vmem:[%s3768_s3 + $0xc0] sm:$0xff]  ;;  %v449_v12 = vld [vmem:[%s3768_s3 + $0x108] sm:$0xff]  ;;  %v2577_v14 = vpack.c.bf16 %v430_v5, %v426_v4 }
  0x1a   : > { %790 = vmatpush1.bf16.msra.mxu0 %v2654_v17  ;;  %819 = vmatprep.mubr.bf16.mxu0 %v2799_v3  ;;  %v2575_v3 = vpack.c.bf16 %v431_v60, %v427_v58  ;;  %v439_v8 = vld [vmem:[%s3768_s3 + $0xb8] sm:$0xff]  ;;  %v444_v11 = vld [vmem:[%s3768_s3 + $0xe0] sm:$0xff]  ;;  %v453_v13 = vld [vmem:[%s3768_s3 + $0x128] sm:$0xff] }
  0x1b   : > { %791 = vmatprep.subr.bf16.mxu0 %v2662_v18  ;;  %755 = vmatpush1.bf16.msra.mxu1 %v2677_v27  ;;  %v2579_v15 = vpack.c.bf16 %v439_v8, %v435_v6  ;;  %v434_v16 = vld [vmem:[%s3768_s3 + $0x90] sm:$0xff]  ;;  %v443_v18 = vld [vmem:[%s3768_s3 + $0xd8] sm:$0xff]  ;;  %v2521_v19 = vpack.c.bf16 %v444_v11, %v440_v10  ;;  %v452_v23 = vld [vmem:[%s3768_s3 + $0x120] sm:$0xff] }
  0x1c   : > { %756 = vmatprep.subr.bf16.mxu1 %v2681_v28  ;;  %v438_v17 = vld [vmem:[%s3768_s3 + $0xb0] sm:$0xff]  ;;  %v447_v20 = vld [vmem:[%s3768_s3 + $0xf8] sm:$0xff]  ;;  %v457_v24 = vld [vmem:[%s3768_s3 + $0x148] sm:$0xff] }
  0x1d   : > { %v2583_v27 = vpack.c.bf16 %v447_v20, %v443_v18  ;;  %v442_v28 = vld [vmem:[%s3768_s3 + $0xd0] sm:$0xff]  ;;  %v456_v34 = vld [vmem:[%s3768_s3 + $0x140] sm:$0xff]  ;;  %v459_v42 = vld [vmem:[%s3768_s3 + $0x158] sm:$0xff] }
  0x1e   : > { %792 = vmatpush1.bf16.msra.mxu0 %v2660_v21  ;;  %v2523_v21 = vpack.c.bf16 %v453_v13, %v449_v12  ;;  %v450_v40 = vld [vmem:[%s3768_s3 + $0x110] sm:$0xff]  ;;  %v464_v46 = vld [vmem:[%s3768_s3 + $0x180] sm:$0xff]  ;;  %v473_v48 = vld [vmem:[%s3768_s3 + $0x1c8] sm:$0xff] }
  0x1f   : > { %793 = vmatprep.subr.bf16.mxu0 %v2668_v22  ;;  %757 = vmatpush1.bf16.msra.mxu1 %v2683_v31  ;;  %v448_v22 = vld [vmem:[%s3768_s3 + $0x100] sm:$0xff]  ;;  %v454_v41 = vld [vmem:[%s3768_s3 + $0x130] sm:$0xff]  ;;  %v471_v56 = vld [vmem:[%s3768_s3 + $0x1b8] sm:$0xff] }
  0x20   : > { %758 = vmatprep.subr.bf16.mxu1 %v2687_v32  ;;  %v2525_v31 = vpack.c.bf16 %v452_v23, %v448_v22  ;;  %v455_v32 = vld [vmem:[%s3768_s3 + $0x138] sm:$0xff]  ;;  %v2589_v50 = vpack.c.bf16 %v454_v41, %v450_v40  ;;  %v458_v52 = vld [vmem:[%s3768_s3 + $0x150] sm:$0xff]  ;;  %v472_v58 = vld [vmem:[%s3768_s3 + $0x1c0] sm:$0xff] }
  0x21   : > { %v462_v53 = vld [vmem:[%s3768_s3 + $0x170] sm:$0xff]  ;;  %v481_v60 = vld [vmem:[%s3768_s3 + $0x208] sm:$0xff]  ;;  %v479_v4 = vld [vmem:[%s3768_s3 + $0x1f8] sm:$0xff] }
  0x22   : > { %794 = vmatpush1.bf16.msra.mxu0 %v2666_v25  ;;  %v461_v25 = vld [vmem:[%s3768_s3 + $0x168] sm:$0xff]  ;;  %v2593_v62 = vpack.c.bf16 %v462_v53, %v458_v52  ;;  %v466_v0 = vld [vmem:[%s3768_s3 + $0x190] sm:$0xff]  ;;  %v480_v6 = vld [vmem:[%s3768_s3 + $0x200] sm:$0xff] }
  0x23   : > { %795 = vmatprep.subr.bf16.mxu0 %v2674_v26  ;;  %759 = vmatpush1.bf16.msra.mxu1 %v2689_v37  ;;  %v2581_v26 = vpack.c.bf16 %v438_v17, %v434_v16  ;;  %v2527_v33 = vpack.c.bf16 %v461_v25, %v457_v24  ;;  %v469_v37 = vld [vmem:[%s3768_s3 + $0x1a8] sm:$0xff]  ;;  %v470_v1 = vld [vmem:[%s3768_s3 + $0x1b0] sm:$0xff]  ;;  %v483_v13 = vld [vmem:[%s3768_s3 + $0x218] sm:$0xff] }
  0x24   : > { %2508 = vmatprep.subr.bf16.mxu1 %v2507_v38  ;;  %v474_v8 = vld [vmem:[%s3768_s3 + $0x1d0] sm:$0xff]  ;;  %v489_v10 = vld [vmem:[%s3768_s3 + $0x248] sm:$0xff]  ;;  %v2597_v12 = vpack.c.bf16 %v470_v1, %v466_v0  ;;  %v492_v16 = vld [vmem:[%s3768_s3 + $0x260] sm:$0xff] }
  0x25   : > { %v493_v11 = vld [vmem:[%s3768_s3 + $0x268] sm:$0xff]  ;;  %v482_v22 = vld [vmem:[%s3768_s3 + $0x210] sm:$0xff]  ;;  %v491_v25 = vld [vmem:[%s3768_s3 + $0x258] sm:$0xff] }
  0x26   : > { %796 = vmatpush1.bf16.msra.mxu0 %v2672_v29  ;;  %777 = vmatmul.mubr.bf16.vlgmr.msra.gmra.mrb[0].mxu1 %v2693_v44  ;;  %v446_v29 = vld [vmem:[%s3768_s3 + $0xf0] sm:$0xff]  ;;  %v501_v20 = vld [vmem:[%s3768_s3 + $0x2a8] sm:$0xff]  ;;  %v508_v40 = vld [vmem:[%s3768_s3 + $0x2e0] sm:$0xff] }
  0x27   : > { %797 = vmatprep.subr.bf16.mxu0 %v2680_v30  ;;  %2510 = vmatpush1.bf16.msra.mxu1 %v2509_v47  ;;  %v451_v30 = vld [vmem:[%s3768_s3 + $0x118] sm:$0xff]  ;;  %v2585_v38 = vpack.c.bf16 %v446_v29, %v442_v28  ;;  %v468_v47 = vld [vmem:[%s3768_s3 + $0x1a0] sm:$0xff]  ;;  %v486_v23 = vld [vmem:[%s3768_s3 + $0x230] sm:$0xff] }
  0x28   : > { %2512 = vmatprep.subr.bf16.mxu1 %v2511_v49  ;;  %v2587_v39 = vpack.c.bf16 %v455_v32, %v451_v30  ;;  %v477_v49 = vld [vmem:[%s3768_s3 + $0x1e8] sm:$0xff]  ;;  %v500_v28 = vld [vmem:[%s3768_s3 + $0x2a0] sm:$0xff]  ;;  %vm3435_vm5 = vmand %vm1018_vm1, %vm1019_vm2 }
  0x29   : > { %v2535_v57 = vpack.c.bf16 %v477_v49, %v473_v48  ;;  %v509_v32 = vld [vmem:[%s3768_s3 + $0x2e8] sm:$0xff]  ;;  %v507_v49 = vld [vmem:[%s3768_s3 + $0x2d8] sm:$0xff]  ;;  %v516_v52 = vld [vmem:[%s3768_s3 + $0x320] sm:$0xff] }
  0x2a   : > { %798 = vmatpush1.bf16.msra.mxu0 %v2678_v35  ;;  %v460_v35 = vld [vmem:[%s3768_s3 + $0x160] sm:$0xff]  ;;  %vm3441_vm6 = vmand %vm1084_vm3, %vm1085_vm4 }
  0x2b   : > { %799 = vmatprep.subr.bf16.mxu0 %v2686_v36  ;;  %2514 = vmatpush1.bf16.msra.mxu1 %v2513_v59  ;;  %v465_v36 = vld [vmem:[%s3768_s3 + $0x188] sm:$0xff]  ;;  %v476_v59 = vld [vmem:[%s3768_s3 + $0x1e0] sm:$0xff]  ;;  %vm3523_vm10 = vmand %vm1065_vm7, %vm1066_vm8 }
  0x2c   : > { %2516 = vmatprep.subr.bf16.mxu1 %v2515_v61  ;;  %v485_v61 = vld [vmem:[%s3768_s3 + $0x228] sm:$0xff]  ;;  %v524_v0 = vld [vmem:[%s3768_s3 + $0x360] sm:$0xff]  ;;  %vm3529_vm11 = vmand %vm1065_vm7, %vm1111_vm9 }
  0x2d   : > { %v2539_v5 = vpack.c.bf16 %v485_v61, %v481_v60  ;;  %v515_v61 = vld [vmem:[%s3768_s3 + $0x318] sm:$0xff] }
  0x2e   : > { %800 = vmatpush1.bf16.msra.mxu0 %v2684_v43  ;;  %v2529_v43 = vpack.c.bf16 %v460_v35, %v456_v34  ;;  %v490_v34 = vld [vmem:[%s3768_s3 + $0x250] sm:$0xff] }
  0x2f   : > { %801 = vmatprep.subr.bf16.mxu0 %v2692_v45  ;;  %2518 = vmatpush1.bf16.msra.mxu1 %v2517_v7  ;;  %v2531_v45 = vpack.c.bf16 %v469_v37, %v465_v36  ;;  %v484_v7 = vld [vmem:[%s3768_s3 + $0x220] sm:$0xff]  ;;  %v494_v35 = vld [vmem:[%s3768_s3 + $0x270] sm:$0xff]  ;;  %v2605_v36 = vpack.c.bf16 %v486_v23, %v482_v22  ;;  %v499_v37 = vld [vmem:[%s3768_s3 + $0x298] sm:$0xff] }
  0x30   : > { %2520 = vmatprep.subr.bf16.mxu1 %v2519_v9  ;;  %v478_v9 = vld [vmem:[%s3768_s3 + $0x1f0] sm:$0xff]  ;;  %v2541_v18 = vpack.c.bf16 %v484_v7, %v480_v6  ;;  %v2609_v48 = vpack.c.bf16 %v494_v35, %v490_v34  ;;  %v535_v22 = vld [vmem:[%s3768_s3 + $0x3b8] sm:$0xff] }
  0x31   : > { %v2601_v24 = vpack.c.bf16 %v478_v9, %v474_v8  ;;  %v514_v6 = vld [vmem:[%s3768_s3 + $0x310] sm:$0xff]  ;;  %v523_v9 = vld [vmem:[%s3768_s3 + $0x358] sm:$0xff] }
  0x32   : > { %802 = vmatpush1.bf16.msra.mxu0 %v2690_v54  ;;  %v467_v54 = vld [vmem:[%s3768_s3 + $0x198] sm:$0xff]  ;;  %v518_v7 = vld [vmem:[%s3768_s3 + $0x330] sm:$0xff] }
  0x33   : > { %2572 = vmatprep.subr.bf16.mxu0 %v2571_v55  ;;  %2522 = vmatpush1.bf16.msra.mxu1 %v2521_v19  ;;  %v2533_v55 = vpack.c.bf16 %v468_v47, %v464_v46  ;;  %v2595_v63 = vpack.c.bf16 %v471_v56, %v467_v54  ;;  %v497_v19 = vld [vmem:[%s3768_s3 + $0x288] sm:$0xff]  ;;  %v498_v46 = vld [vmem:[%s3768_s3 + $0x290] sm:$0xff] }
  0x34   : > { %2524 = vmatprep.subr.bf16.mxu1 %v2523_v21  ;;  %v2543_v21 = vpack.c.bf16 %v493_v11, %v489_v10  ;;  %v502_v47 = vld [vmem:[%s3768_s3 + $0x2b0] sm:$0xff]  ;;  %v525_v56 = vld [vmem:[%s3768_s3 + $0x368] sm:$0xff]  ;;  %v527_v10 = vld [vmem:[%s3768_s3 + $0x378] sm:$0xff] }
  0x35   : > { %820 = vmatmul.mubr.bf16.vlgmr.msra.gmra.mrb[4].mxu0 %v2693_v44  ;;  %v463_v44 = vld [vmem:[%s3768_s3 + $0x178] sm:$0xff]  ;;  %v2613_v60 = vpack.c.bf16 %v502_v47, %v498_v46  ;;  %v528_v11 = vld [vmem:[%s3768_s3 + $0x380] sm:$0xff]  ;;  %v2623_v23 = vpack.c.bf16 %v527_v10, %v523_v9  ;;  %v538_v35 = vld [vmem:[%s3768_s3 + $0x3d0] sm:$0xff] }
  0x36   : > { %2574 = vmatpush1.bf16.msra.mxu0 %v2573_v2  ;;  %v2591_v51 = vpack.c.bf16 %v463_v44, %v459_v42  ;;  %v475_v2 = vld [vmem:[%s3768_s3 + $0x1d8] sm:$0xff]  ;;  %v517_v44 = vld [vmem:[%s3768_s3 + $0x328] sm:$0xff] }
  0x37   : > { %2576 = vmatprep.subr.bf16.mxu0 %v2575_v3  ;;  %2526 = vmatpush1.bf16.msra.mxu1 %v2525_v31  ;;  %v2537_v3 = vpack.c.bf16 %v476_v59, %v472_v58  ;;  %v2599_v17 = vpack.c.bf16 %v479_v4, %v475_v2  ;;  %v505_v31 = vld [vmem:[%s3768_s3 + $0x2c8] sm:$0xff]  ;;  %v506_v58 = vld [vmem:[%s3768_s3 + $0x2d0] sm:$0xff] }
  0x38   : > { %2528 = vmatprep.subr.bf16.mxu1 %v2527_v33  ;;  %v2547_v33 = vpack.c.bf16 %v501_v20, %v497_v19  ;;  %v510_v59 = vld [vmem:[%s3768_s3 + $0x2f0] sm:$0xff]  ;;  %v533_v4 = vld [vmem:[%s3768_s3 + $0x3a8] sm:$0xff]  ;;  %v2621_v20 = vpack.c.bf16 %v518_v7, %v514_v6  ;;  %v2712_v6 = vld [vmem:[%s3771_s6 + $0x20] sm:$0xff]  }
  0x39   : > { %v2617_v8 = vpack.c.bf16 %v510_v59, %v506_v58  ;;  %v526_v19 = vld [vmem:[%s3768_s3 + $0x370] sm:$0xff]  ;;  %v2698_v46 = vld [vmem:[%s3771_s6 + $0x48] sm:$0xff]   ;;  %v2713_v7 = vld [vmem:[%s3771_s6 + $0xa0] sm:$0xff]  }
  0x3a   : > { %2578 = vmatpush1.bf16.msra.mxu0 %v2577_v14  ;;  %v487_v14 = vld [vmem:[%s3768_s3 + $0x238] sm:$0xff]  ;;  %v2699_v47 = vld [vmem:[%s3771_s6 + $0xc8] sm:$0xff]  }
  0x3b   : > { %2580 = vmatprep.subr.bf16.mxu0 %v2579_v15  ;;  %2530 = vmatpush1.bf16.msra.mxu1 %v2529_v43  ;;  %v488_v15 = vld [vmem:[%s3768_s3 + $0x240] sm:$0xff]  ;;  %v2603_v29 = vpack.c.bf16 %v487_v14, %v483_v13  ;;  %v513_v43 = vld [vmem:[%s3768_s3 + $0x308] sm:$0xff] }
  0x3c   : > { %2532 = vmatprep.subr.bf16.mxu1 %v2531_v45  ;;  %v2545_v30 = vpack.c.bf16 %v492_v16, %v488_v15  ;;  %v2551_v45 = vpack.c.bf16 %v509_v32, %v505_v31  ;;  %v537_v15 = vld [vmem:[%s3768_s3 + $0x3c8] sm:$0xff]  ;;  %v539_v31 = vld [vmem:[%s3768_s3 + $0x3d8] sm:$0xff] }
  0x3d   : > { %v541_v16 = vld [vmem:[%s3768_s3 + $0x3e8] sm:$0xff]  ;;  %v543_v32 = vld [vmem:[%s3768_s3 + $0x3f8] sm:$0xff] }
  0x3e   : > { %2582 = vmatpush1.bf16.msra.mxu0 %v2581_v26  ;;  %v495_v26 = vld [vmem:[%s3768_s3 + $0x278] sm:$0xff]  ;;  %v2700_v58 = vld [vmem:[%s3771_s6 + $0x8] sm:$0xff]  }
  0x3f   : > { %2584 = vmatprep.subr.bf16.mxu0 %v2583_v27  ;;  %2534 = vmatpush1.bf16.msra.mxu1 %v2533_v55  ;;  %v496_v27 = vld [vmem:[%s3768_s3 + $0x280] sm:$0xff]  ;;  %v2607_v41 = vpack.c.bf16 %v495_v26, %v491_v25  ;;  %v521_v55 = vld [vmem:[%s3768_s3 + $0x348] sm:$0xff]  ;;  %v2567_v25 = vpack.c.bf16 %v541_v16, %v537_v15  ;;  %v530_v26 = vld [vmem:[%s3768_s3 + $0x390] sm:$0xff] }
  0x40   : > { %2536 = vmatprep.subr.bf16.mxu1 %v2535_v57  ;;  %v2549_v42 = vpack.c.bf16 %v500_v28, %v496_v27  ;;  %v2555_v57 = vpack.c.bf16 %v517_v44, %v513_v43  ;;  %v534_v27 = vld [vmem:[%s3768_s3 + $0x3b0] sm:$0xff]  ;;  %v536_v28 = vld [vmem:[%s3768_s3 + $0x3c0] sm:$0xff]  ;;  %v2701_v59 = vld [vmem:[%s3771_s6 + $0x88] sm:$0xff]  }
  0x41   : > { %v2696_v43 = vld [vmem:[%s3771_s6] sm:$0xff]   ;;  %v2715_v9 = vld [vmem:[%s3771_s6 + $0xe8] sm:$0xff]   ;;  %v1027_v15 = vld [vmem:[#allocation2 + $0x10] sm:$0x1] }
  0x42   : > { %2586 = vmatpush1.bf16.msra.mxu0 %v2585_v38  ;;  %v503_v38 = vld [vmem:[%s3768_s3 + $0x2b8] sm:$0xff]  ;;  %v2697_v44 = vld [vmem:[%s3771_s6 + $0x80] sm:$0xff]   ;;  %v1093_v16 = vld [vmem:[#allocation2 + $0x50] sm:$0x80] }
  0x43   : > { %2588 = vmatprep.subr.bf16.mxu0 %v2587_v39  ;;  %2538 = vmatpush1.bf16.msra.mxu1 %v2537_v3  ;;  %v504_v39 = vld [vmem:[%s3768_s3 + $0x2c0] sm:$0xff]  ;;  %v2611_v53 = vpack.c.bf16 %v503_v38, %v499_v37  ;;  %v529_v3 = vld [vmem:[%s3768_s3 + $0x388] sm:$0xff]  ;;  %v2629_v37 = vpack.c.bf16 %v534_v27, %v530_v26  ;;  %v2631_v38 = vpack.c.bf16 %v543_v32, %v539_v31  ;;  %v2720_v32 = vld [vmem:[%s3771_s6 + $0x30] sm:$0xff]  }
  0x44   : > { %2540 = vmatprep.subr.bf16.mxu1 %v2539_v5  ;;  %v2553_v54 = vpack.c.bf16 %v508_v40, %v504_v39  ;;  %v2559_v5 = vpack.c.bf16 %v525_v56, %v521_v55  ;;  %v2694_v40 = vld [vmem:[%s3771_s6 + $0x40] sm:$0xff]  }
  0x46   : > { %2590 = vmatpush1.bf16.msra.mxu0 %v2589_v50  ;;  %v511_v50 = vld [vmem:[%s3768_s3 + $0x2f8] sm:$0xff] }
  0x47   : > { %2592 = vmatprep.subr.bf16.mxu0 %v2591_v51  ;;  %2542 = vmatpush1.bf16.msra.mxu1 %v2541_v18  ;;  %v512_v51 = vld [vmem:[%s3768_s3 + $0x300] sm:$0xff]  ;;  %v2615_v1 = vpack.c.bf16 %v511_v50, %v507_v49  ;;  %v522_v18 = vld [vmem:[%s3768_s3 + $0x350] sm:$0xff] }
  0x48   : > { %2544 = vmatprep.subr.bf16.mxu1 %v2543_v21  ;;  %v2557_v2 = vpack.c.bf16 %v516_v52, %v512_v51  ;;  %v531_v21 = vld [vmem:[%s3768_s3 + $0x398] sm:$0xff] }
  0x4a   : > { %2594 = vmatpush1.bf16.msra.mxu0 %v2593_v62  ;;  %v519_v62 = vld [vmem:[%s3768_s3 + $0x338] sm:$0xff] }
  0x4b   : > { %2596 = vmatprep.subr.bf16.mxu0 %v2595_v63  ;;  %2546 = vmatpush1.bf16.msra.mxu1 %v2545_v30  ;;  %v520_v63 = vld [vmem:[%s3768_s3 + $0x340] sm:$0xff]  ;;  %v2619_v13 = vpack.c.bf16 %v519_v62, %v515_v61  ;;  %v2625_v30 = vpack.c.bf16 %v526_v19, %v522_v18  ;;  %v2703_v61 = vld [vmem:[%s3771_s6 + $0xd0] sm:$0xff]   ;;  %v1028_v18 = vsel %vm3435_vm5, 0, %v1027_v15  ;;  %v1094_v19 = vsel %vm3441_vm6, 0, %v1093_v16 }
  0x4c   : > { %2548 = vmatprep.subr.bf16.mxu1 %v2547_v33  ;;  %v2561_v14 = vpack.c.bf16 %v524_v0, %v520_v63  ;;  %v2627_v33 = vpack.c.bf16 %v535_v22, %v531_v21  ;;  %v2704_v62 = vld [vmem:[%s3771_s6 + $0x10] sm:$0xff]   ;;  %v2706_v0 = vld [vmem:[%s3771_s6 + $0x58] sm:$0xff]   ;;  %v2716_v21 = vld [vmem:[%s3771_s6 + $0x28] sm:$0xff]   ;;  %1029 = vst [vmem:[#allocation2 + $0x10] sm:$0x1] %v1028_v18 }
  0x4d   : > { %v2705_v63 = vld [vmem:[%s3771_s6 + $0x90] sm:$0xff]   ;;  %1095 = vst [vmem:[#allocation2 + $0x50] sm:$0x80] %v1094_v19 }
  0x4e   : > { %2598 = vmatpush1.bf16.msra.mxu0 %v2597_v12  ;;  %v532_v12 = vld [vmem:[%s3768_s3 + $0x3a0] sm:$0xff] }
  0x4f   : > { %2600 = vmatprep.subr.bf16.mxu0 %v2599_v17  ;;  %2550 = vmatpush1.bf16.msra.mxu1 %v2549_v42  ;;  %v2563_v17 = vpack.c.bf16 %v533_v4, %v529_v3  ;;  %v2709_v3 = vld [vmem:[%s3771_s6 + $0x98] sm:$0xff]   ;;  %v2710_v4 = vld [vmem:[%s3771_s6 + $0x60] sm:$0xff]  }
  0x50   : > { %2552 = vmatprep.subr.bf16.mxu1 %v2551_v45 }
  0x52   : > { %2602 = vmatpush1.bf16.msra.mxu0 %v2601_v24  ;;  %v2565_v24 = vpack.c.bf16 %v532_v12, %v528_v11  ;;  %v1021_v11 = vld [vmem:[#allocation2] sm:$0x1]  ;;  %v1087_v12 = vld [vmem:[#allocation2 + $0x40] sm:$0x80] }
  0x53   : > { %2604 = vmatprep.subr.bf16.mxu0 %v2603_v29  ;;  %2554 = vmatpush1.bf16.msra.mxu1 %v2553_v54  ;;  %v540_v29 = vld [vmem:[%s3768_s3 + $0x3e0] sm:$0xff] }
  0x54   : > { %2556 = vmatprep.subr.bf16.mxu1 %v2555_v57  ;;  %v2569_v34 = vpack.c.bf16 %v540_v29, %v536_v28  ;;  %v1096_v28 = vld [vmem:[#allocation2 + $0x58] sm:$0x80]  ;;  %v2718_v29 = vld [vmem:[%s3771_s6 + $0x70] sm:$0xff]  }
  0x55   : > { %v1097_v31 = vsel %vm3441_vm6, 0, %v1096_v28 }
  0x56   : > { %2606 = vmatpush1.bf16.msra.mxu0 %v2605_v36  ;;  %v542_v36 = vld [vmem:[%s3768_s3 + $0x3f0] sm:$0xff]  ;;  %1098 = vst [vmem:[#allocation2 + $0x58] sm:$0x80] %v1097_v31  ;;  %v2764_v31 = vld [vmem:[%s3771_s6 + $0x208] sm:$0xff]  }
  0x57   : > { %2608 = vmatprep.subr.bf16.mxu0 %v2607_v41  ;;  %2558 = vmatpush1.bf16.msra.mxu1 %v2557_v2  ;;  %v2633_v39 = vpack.c.bf16 %v542_v36, %v538_v35  ;;  %v2695_v41 = vld [vmem:[%s3771_s6 + $0xc0] sm:$0xff]   ;;  %v2708_v2 = vld [vmem:[%s3771_s6 + $0x18] sm:$0xff]  }
  0x58   : > { %2560 = vmatprep.subr.bf16.mxu1 %v2559_v5  ;;  %v2711_v5 = vld [vmem:[%s3771_s6 + $0xe0] sm:$0xff]   ;;  %v2723_v35 = vld [vmem:[%s3771_s6 + $0xf8] sm:$0xff]  }
  0x59   : > { %v2724_v36 = vld [vmem:[%s3771_s6 + $0x38] sm:$0xff]  }
  0x5a   : > { %2610 = vmatpush1.bf16.msra.mxu0 %v2609_v48 }
  0x5b   : > { %2612 = vmatprep.subr.bf16.mxu0 %v2611_v53  ;;  %2562 = vmatpush1.bf16.msra.mxu1 %v2561_v14 }
  0x5c   : > { %2564 = vmatprep.subr.bf16.mxu1 %v2563_v17  ;;  %v1088_v17 = vsel %vm3441_vm6, 0, %v1087_v12 }
  0x5d   : > { %1089 = vst [vmem:[#allocation2 + $0x40] sm:$0x80] %v1088_v17 }
  0x5e   : > { %2614 = vmatpush1.bf16.msra.mxu0 %v2613_v60  ;;  %v2702_v60 = vld [vmem:[%s3771_s6 + $0x50] sm:$0xff]  }
  0x5f   : > { %2616 = vmatprep.subr.bf16.mxu0 %v2615_v1  ;;  %2566 = vmatpush1.bf16.msra.mxu1 %v2565_v24  ;;  %v2707_v1 = vld [vmem:[%s3771_s6 + $0xd8] sm:$0xff]  }
  0x60   : > { %2568 = vmatprep.subr.bf16.mxu1 %v2567_v25  ;;  %v1030_v24 = vld [vmem:[#allocation2 + $0x18] sm:$0x1]  ;;  %v2717_v25 = vld [vmem:[%s3771_s6 + $0xa8] sm:$0xff]  }
  0x61   : > { %v1031_v27 = vsel %vm3435_vm5, 0, %v1030_v24 }
  0x62   : > { %2618 = vmatpush1.bf16.msra.mxu0 %v2617_v8  ;;  %v2714_v8 = vld [vmem:[%s3771_s6 + $0x68] sm:$0xff]   ;;  %1032 = vst [vmem:[#allocation2 + $0x18] sm:$0x1] %v1031_v27 }
  0x63   : > { %2620 = vmatprep.subr.bf16.mxu0 %v2619_v13  ;;  %2570 = vmatpush1.bf16.msra.mxu1 %v2569_v34  ;;  %v1022_v13 = vsel %vm3435_vm5, 0, %v1021_v11  ;;  %v2722_v34 = vld [vmem:[%s3771_s6 + $0x78] sm:$0xff]  }
  0x64   : > { %2375 = vmatprep.subr.bf16.mxu1 %v2694_v40  ;;  %1023 = vst [vmem:[#allocation2] sm:$0x1] %v1022_v13  ;;  %v986_v40 = vlaneseq  ;;  %v1113_v27 = vld [vmem:[#allocation2 + $0x40] sm:$0xff] }
  0x66   : > { %2622 = vmatpush1.bf16.msra.mxu0 %v2621_v20  ;;  %v1024_v20 = vld [vmem:[#allocation2 + $0x8] sm:$0x1] }
  0x67   : > { %2624 = vmatprep.subr.bf16.mxu0 %v2623_v23  ;;  %v1025_v22 = vsel %vm3435_vm5, 0, %v1024_v20  ;;  %v1090_v23 = vld [vmem:[#allocation2 + $0x48] sm:$0x80] }
  0x68   : > { %1026 = vst [vmem:[#allocation2 + $0x8] sm:$0x1] %v1025_v22  ;;  %v1091_v26 = vsel %vm3441_vm6, 0, %v1090_v23 }
  0x69   : > { %1092 = vst [vmem:[#allocation2 + $0x48] sm:$0x80] %v1091_v26 }
  0x6a   : > { %2626 = vmatpush1.bf16.msra.mxu0 %v2625_v30  ;;  %v2719_v30 = vld [vmem:[%s3771_s6 + $0xf0] sm:$0xff]  }
  0x6b   : > { %2628 = vmatprep.subr.bf16.mxu0 %v2627_v33  ;;  %v2721_v33 = vld [vmem:[%s3771_s6 + $0xb0] sm:$0xff]   ;;  %v1068_v19 = vld [vmem:[#allocation2] sm:$0xff] }
  0x6e   : > { %2630 = vmatpush1.bf16.msra.mxu0 %v2629_v37  ;;  %v2725_v37 = vld [vmem:[%s3771_s6 + $0xb8] sm:$0xff]  }
  0x6f   : > { %2632 = vmatprep.subr.bf16.mxu0 %v2631_v38  ;;  %v2726_v38 = vld [vmem:[%s3771_s6 + $0x140] sm:$0xff]  }
  0x72   : > { %2634 = vmatpush1.bf16.msra.mxu0 %v2633_v39  ;;  %v2727_v39 = vld [vmem:[%s3771_s6 + $0x1c0] sm:$0xff]  }
  0x73   : > { %2397 = vmatprep.subr.bf16.mxu0 %v2695_v41  ;;  %v987_v41 = vshrl.u32 %v986_v40, 7 }
  0xe8   : > { %v405_v42 = vpop.f32.mrb[0].mxu0 }
  0xe9   : > { %v407_v45 = vpop.f32.mrb[1].mxu0 }
  0xea   : > { %894 = vmatprep.mubr.f32.mxu1 %v407_v45  ;;  %971 = vmatprep.mubr.f32.mxu0 %v407_v45  ;;  %v984_v45 = vld [vmem:[%s3770_s5] sm:$0xf] }
  0xeb   : > { %895 = vmatmul.mubr.f32.vlgmr.msra.gmra.mrb[4].mxu1 %v405_v42  ;;  %972 = vmatmul.mubr.f32.vlgmr.msra.gmra.mrb[8].mxu0 %v405_v42  ;;  %v988_v42 = vsub.s32 0, %v987_v41 }
  0xec   : > { %v411_v48 = vpop.f32.mrb[2].mxu0  ;;  %2376 = vmatpush3.bf16.msra.mxu1 %v2696_v43  ;;  %2398 = vmatpush3.bf16.msra.mxu0 %v2697_v44  ;;  %v996_v43 = vsub.s32 2, %v987_v41 }
  0xed   : > { %v413_v49 = vpop.f32.mrb[3].mxu0  ;;  %2377 = vmatprep.subr.bf16.mxu1 %v2698_v46  ;;  %2399 = vmatprep.subr.bf16.mxu0 %v2699_v47  ;;  %v992_v47 = vsub.s32 1, %v987_v41 }
  0xee   : > { %900 = vmatprep.mubr.f32.mxu1 %v413_v49  ;;  %977 = vmatprep.mubr.f32.mxu0 %v413_v49 }
  0xef   : > { %901 = vmatmul.mubr.f32.gmra.mrb[6].mxu1 %v411_v48  ;;  %978 = vmatmul.mubr.f32.gmra.mrb[10].mxu0 %v411_v48  ;;  %v1000_v48 = vsub.s32 3, %v987_v41 }
  0xf0   : > { %2378 = vmatpush3.bf16.msra.mxu1 %v2700_v58  ;;  %2400 = vmatpush3.bf16.msra.mxu0 %v2701_v59 }
  0xf1   : > { %2379 = vmatprep.subr.bf16.mxu1 %v2702_v60  ;;  %2401 = vmatprep.subr.bf16.mxu0 %v2703_v61 }
  0xf4   : > { %2380 = vmatpush3.bf16.msra.mxu1 %v2704_v62  ;;  %2402 = vmatpush3.bf16.msra.mxu0 %v2705_v63  ;;  %v989_v63 = vrot.slane %v984_v45, %v988_v42  ;;  %v1116_v42 = vld [vmem:[#allocation2 + $0x48] sm:$0xff] }
  0xf5   : > { %2381 = vmatprep.subr.bf16.mxu1 %v2706_v0  ;;  %2403 = vmatprep.subr.bf16.mxu0 %v2707_v1  ;;  %v997_v0 = vrot.slane %v984_v45, %v996_v43  ;;  %v993_v1 = vrot.slane %v984_v45, %v992_v47  ;;  %v1077_v43 = vld [vmem:[#allocation2 + $0x18] sm:$0xff] }
  0xf8   : > { %2382 = vmatpush3.bf16.msra.mxu1 %v2708_v2  ;;  %2404 = vmatpush3.bf16.msra.mxu0 %v2709_v3  ;;  %v1001_v2 = vrot.slane %v984_v45, %v1000_v48 }
  0xf9   : > { %v3371_v50 = vpop.f32.mrb[0].mxu1  ;;  %2383 = vmatprep.subr.bf16.mxu1 %v2710_v4  ;;  %2405 = vmatprep.subr.bf16.mxu0 %v2711_v5 }
  0xfa   : > { %v3373_v51 = vpop.f32.mrb[1].mxu1 }
  0xfb   : > { %v3375_v52 = vpop.f32.mrb[2].mxu1 }
  0xfc   : > { %v3377_v53 = vpop.f32.mrb[3].mxu1  ;;  %2384 = vmatpush3.bf16.msra.mxu1 %v2712_v6  ;;  %2406 = vmatpush3.bf16.msra.mxu0 %v2713_v7 }
  0xfd   : > { %2385 = vmatprep.subr.bf16.mxu1 %v2714_v8  ;;  %2407 = vmatprep.subr.bf16.mxu0 %v2715_v9 }
 0x100   : > { %2386 = vmatpush3.bf16.msra.mxu1 %v2716_v21  ;;  %2408 = vmatpush3.bf16.msra.mxu0 %v2717_v25  ;;  %v2758_v25 = vld [vmem:[%s3771_s6 + $0x240] sm:$0xff]  }
 0x101   : > { %2387 = vmatprep.subr.bf16.mxu1 %v2718_v29  ;;  %2409 = vmatprep.subr.bf16.mxu0 %v2719_v30  ;;  %v1074_v29 = vld [vmem:[#allocation2 + $0x10] sm:$0xff] }
 0x104   : > { %2388 = vmatpush3.bf16.msra.mxu1 %v2720_v32  ;;  %2410 = vmatpush3.bf16.msra.mxu0 %v2721_v33  ;;  %v1119_v32 = vld [vmem:[#allocation2 + $0x50] sm:$0xff] }
 0x105   : > { %2389 = vmatprep.subr.bf16.mxu1 %v2722_v34  ;;  %2411 = vmatprep.subr.bf16.mxu0 %v2723_v35  ;;  %v1071_v34 = vld [vmem:[#allocation2 + $0x8] sm:$0xff] }
 0x108   : > { %v3379_v54 = vpop.f32.mrb[4].mxu0  ;;  %2390 = vmatpush3.bf16.msra.mxu1 %v2724_v36  ;;  %2412 = vmatpush3.bf16.msra.mxu0 %v2725_v37 }
 0x109   : > { %v3381_v55 = vpop.f32.mrb[5].mxu0  ;;  %2419 = vmatprep.subr.bf16.mxu1 %v2726_v38  ;;  %2441 = vmatprep.subr.bf16.mxu0 %v2727_v39 }
 0x10a   : > { %v3383_v56 = vpop.f32.mrb[6].mxu0 }
 0x10b   : > { %v3385_v57 = vpop.f32.mrb[7].mxu0 }
 0x1be   : > { %v896_v44 = vpop.f32.mrb[4].mxu1  ;;  %v973_v46 = vpop.f32.mrb[8].mxu0 }
 0x1bf   : > { %v897_v49 = vadd.f32 %v896_v44, %v3371_v50  ;;  %v974_v58 = vadd.f32 %v973_v46, %v3379_v54  ;;  %v898_v59 = vpop.f32.mrb[5].mxu1  ;;  %v975_v60 = vpop.f32.mrb[9].mxu0  ;;  %v1122_v44 = vld [vmem:[#allocation2 + $0x58] sm:$0xff] }
 0x1c0   : > { %v899_v61 = vadd.f32 %v898_v59, %v3373_v51  ;;  %v976_v62 = vadd.f32 %v975_v60, %v3381_v55 }
 0x1c1   : > { %v1006_v9 = vadd.f32 %v989_v63, %v897_v49  ;;  %v1008_v51 = vadd.f32 %v997_v0, %v974_v58 }
 0x1c2   : > { %v902_v3 = vpop.f32.mrb[6].mxu1  ;;  %v979_v4 = vpop.f32.mrb[10].mxu0  ;;  %v1007_v11 = vadd.f32 %v993_v1, %v899_v61  ;;  %v1009_v12 = vadd.f32 %v1001_v2, %v976_v62  ;;  %v2728_v61 = vld [vmem:[%s3771_s6 + $0x100] sm:$0xff]  }
 0x1c3   : > { %v903_v5 = vadd.f32 %v902_v3, %v3375_v52  ;;  %v980_v6 = vadd.f32 %v979_v4, %v3383_v56  ;;  %v904_v7 = vpop.f32.mrb[7].mxu1  ;;  %v981_v50 = vpop.f32.mrb[11].mxu0  ;;  %v2729_v62 = vld [vmem:[%s3771_s6 + $0x180] sm:$0xff]   ;;  %v2730_v3 = vld [vmem:[%s3771_s6 + $0x148] sm:$0xff]  }
 0x1c4   : > { %v905_v54 = vadd.f32 %v904_v7, %v3377_v53  ;;  %v982_v8 = vadd.f32 %v981_v50, %v3385_v57  ;;  %v2731_v4 = vld [vmem:[%s3771_s6 + $0x1c8] sm:$0xff]   ;;  %v2734_v7 = vld [vmem:[%s3771_s6 + $0x150] sm:$0xff]  }
 0x1c5   : > { %v1010_v10 = vadd.f32 %v989_v63, %v903_v5  ;;  %v1012_v55 = vadd.f32 %v997_v0, %v980_v6  ;;  %v2732_v5 = vld [vmem:[%s3771_s6 + $0x108] sm:$0xff]   ;;  %v2735_v50 = vld [vmem:[%s3771_s6 + $0x1d0] sm:$0xff]  }
 0x1c6   : > { %v1011_v13 = vadd.f32 %v993_v1, %v905_v54  ;;  %v1013_v14 = vadd.f32 %v1001_v2, %v982_v8  ;;  %v2733_v6 = vld [vmem:[%s3771_s6 + $0x188] sm:$0xff]   ;;  %v2736_v54 = vld [vmem:[%s3771_s6 + $0x110] sm:$0xff]  }
 0x1c7   : > { %v3506_v15 = vpack.c.bf16 %v1010_v10, %v1006_v9  ;;  %v3508_v52 = vpack.c.bf16 %v1012_v55, %v1008_v51  ;;  %v2737_v8 = vld [vmem:[%s3771_s6 + $0x190] sm:$0xff]   ;;  %v2738_v9 = vld [vmem:[%s3771_s6 + $0x158] sm:$0xff]  }
 0x1c8   : > { %v3510_v56 = vpack.c.bf16 %v1011_v13, %v1007_v11  ;;  %v3512_v53 = vpack.c.bf16 %v1013_v14, %v1009_v12  ;;  %v2739_v51 = vld [vmem:[%s3771_s6 + $0x1d8] sm:$0xff]   ;;  %v2742_v11 = vld [vmem:[%s3771_s6 + $0x160] sm:$0xff]  }
 0x1c9   : > { %v1034_v57 = vshrl.u32 %v3506_v15, 16  ;;  %v1037_v16 = vshll.u32 %v3506_v15, 16  ;;  %v1048_v17 = vshrl.u32 %v3508_v52, 16  ;;  %v1051_v18 = vshll.u32 %v3508_v52, 16  ;;  %v2740_v10 = vld [vmem:[%s3771_s6 + $0x118] sm:$0xff]   ;;  %v2743_v12 = vld [vmem:[%s3771_s6 + $0x1e0] sm:$0xff]  }
 0x1ca   : > { %v1041_v20 = vshrl.u32 %v3510_v56, 16  ;;  %v1044_v21 = vshll.u32 %v3510_v56, 16  ;;  %v1055_v22 = vshrl.u32 %v3512_v53, 16  ;;  %v1058_v23 = vshll.u32 %v3512_v53, 16  ;;  %v2741_v55 = vld [vmem:[%s3771_s6 + $0x198] sm:$0xff]   ;;  %v2744_v13 = vld [vmem:[%s3771_s6 + $0x120] sm:$0xff]  }
 0x1cb   : > { %v1036_v24 = vrot.slane %v1034_v57, 7  ;;  %v1099_v26 = vrot.slane %v1037_v16, 1  ;;  %v1050_v28 = vrot.slane %v1048_v17, 7  ;;  %v1103_v30 = vrot.slane %v1051_v18, 1  ;;  %v2745_v14 = vld [vmem:[%s3771_s6 + $0x1a0] sm:$0xff]  }
 0x1cc   : > { %v1043_v33 = vrot.slane %v1041_v20, 7  ;;  %v1101_v35 = vrot.slane %v1044_v21, 1  ;;  %v1057_v36 = vrot.slane %v1055_v22, 7  ;;  %v1105_v37 = vrot.slane %v1058_v23, 1 }
 0x1cd   : > { %v1039_v38 = vor.u32 %v1037_v16, %v1036_v24  ;;  %v1100_v39 = vor.u32 %v1099_v26, %v1034_v57  ;;  %v1053_v40 = vor.u32 %v1051_v18, %v1050_v28  ;;  %v1104_v41 = vor.u32 %v1103_v30, %v1048_v17  ;;  %v2748_v57 = vld [vmem:[%s3771_s6 + $0x128] sm:$0xff]   ;;  %v2750_v17 = vld [vmem:[%s3771_s6 + $0x170] sm:$0xff]   ;;  %v2757_v24 = vld [vmem:[%s3771_s6 + $0x1b8] sm:$0xff]  }
 0x1ce   : > { %v1046_v45 = vor.u32 %v1044_v21, %v1043_v33  ;;  %v1102_v46 = vor.u32 %v1101_v35, %v1041_v20  ;;  %v1060_v47 = vor.u32 %v1058_v23, %v1057_v36  ;;  %v1106_v48 = vor.u32 %v1105_v37, %v1055_v22  ;;  %v2749_v16 = vld [vmem:[%s3771_s6 + $0x1a8] sm:$0xff]   ;;  %v2751_v18 = vld [vmem:[%s3771_s6 + $0x1f0] sm:$0xff]   ;;  %v2754_v21 = vld [vmem:[%s3771_s6 + $0x178] sm:$0xff]  }
 0x1cf   : > { %v1069_v49 = vsel %vm3523_vm10, %v1039_v38, %v1068_v19  ;;  %v3537_v58 = vsel %vm3529_vm11, %v1100_v39, %v1113_v27  ;;  %v1075_v59 = vsel %vm3523_vm10, %v1053_v40, %v1074_v29  ;;  %v3543_v60 = vsel %vm3529_vm11, %v1104_v41, %v1119_v32  ;;  %v2752_v19 = vld [vmem:[%s3771_s6 + $0x130] sm:$0xff]   ;;  %v2755_v22 = vld [vmem:[%s3771_s6 + $0x1f8] sm:$0xff]   ;;  %v2759_v26 = vld [vmem:[%s3771_s6 + $0x2c0] sm:$0xff]  }
 0x1d0   : > { %1070 = vst [vmem:[#allocation2] sm:$0xff] %v1069_v49  ;;  %1115 = vst [vmem:[#allocation2 + $0x40] sm:$0xff] %v3537_v58  ;;  %v1072_v63 = vsel %vm3523_vm10, %v1046_v45, %v1071_v34  ;;  %v3557_v0 = vsel %vm3529_vm11, %v1102_v46, %v1116_v42  ;;  %v1078_v1 = vsel %vm3523_vm10, %v1060_v47, %v1077_v43  ;;  %v2753_v20 = vld [vmem:[%s3771_s6 + $0x1b0] sm:$0xff]   ;;  %v2756_v23 = vld [vmem:[%s3771_s6 + $0x138] sm:$0xff]  }
 0x1d1   : > { %1076 = vst [vmem:[#allocation2 + $0x10] sm:$0xff] %v1075_v59  ;;  %1121 = vst [vmem:[#allocation2 + $0x50] sm:$0xff] %v3543_v60  ;;  %v3563_v2 = vsel %vm3529_vm11, %v1106_v48, %v1122_v44  ;;  %1944 = vmatprep.mubr.bf16.mxu1 %v1072_v63  ;;  %1985 = vmatprep.mubr.bf16.mxu0 %v1078_v1  ;;  %v2760_v27 = vld [vmem:[%s3771_s6 + $0x200] sm:$0xff]   ;;  %v2762_v29 = vld [vmem:[%s3771_s6 + $0x248] sm:$0xff]  }
 0x1d2   : > { %1073 = vst [vmem:[#allocation2 + $0x8] sm:$0xff] %v1072_v63  ;;  %1118 = vst [vmem:[#allocation2 + $0x48] sm:$0xff] %v3557_v0  ;;  %1945 = vmatmul.mubr.bf16.vlgmr.msra.gmra.mrb[8].mxu1 %v1069_v49  ;;  %1986 = vmatmul.mubr.bf16.vlgmr.msra.gmra.mrb[12].mxu0 %v1075_v59  ;;  %v2761_v28 = vld [vmem:[%s3771_s6 + $0x280] sm:$0xff]   ;;  %v2763_v30 = vld [vmem:[%s3771_s6 + $0x2c8] sm:$0xff]  }
 0x1d3   : > { %1079 = vst [vmem:[#allocation2 + $0x18] sm:$0xff] %v1078_v1  ;;  %1124 = vst [vmem:[#allocation2 + $0x58] sm:$0xff] %v3563_v2  ;;  %2420 = vmatpush3.bf16.msra.mxu1 %v2728_v61  ;;  %2442 = vmatpush3.bf16.msra.mxu0 %v2729_v62  ;;  %v2765_v32 = vld [vmem:[%s3771_s6 + $0x288] sm:$0xff]   ;;  %v2768_v33 = vld [vmem:[%s3771_s6 + $0x210] sm:$0xff]  }
 0x1d4   : > { %2026 = vmatprep.mubr.bf16.mxu1 %v3510_v56  ;;  %2067 = vmatprep.mubr.bf16.mxu0 %v3512_v53  ;;  %v2746_v56 = vld [vmem:[%s3771_s6 + $0x168] sm:$0xff]   ;;  %v2769_v34 = vld [vmem:[%s3771_s6 + $0x290] sm:$0xff]   ;;  %v2770_v35 = vld [vmem:[%s3771_s6 + $0x258] sm:$0xff]  }
 0x1d5   : > { %2421 = vmatprep.subr.bf16.mxu1 %v2730_v3  ;;  %2443 = vmatprep.subr.bf16.mxu0 %v2731_v4  ;;  %v2747_v53 = vld [vmem:[%s3771_s6 + $0x1e8] sm:$0xff]   ;;  %v2771_v36 = vld [vmem:[%s3771_s6 + $0x2d8] sm:$0xff]   ;;  %v2774_v39 = vld [vmem:[%s3771_s6 + $0x260] sm:$0xff]  }
 0x1d6   : > { %v2772_v37 = vld [vmem:[%s3771_s6 + $0x218] sm:$0xff]   ;;  %v2775_v40 = vld [vmem:[%s3771_s6 + $0x2e0] sm:$0xff]   ;;  %v2778_v43 = vld [vmem:[%s3771_s6 + $0x268] sm:$0xff]  }
 0x1d7   : > { %2422 = vmatpush3.bf16.msra.mxu1 %v2732_v5  ;;  %2444 = vmatpush3.bf16.msra.mxu0 %v2733_v6  ;;  %v2773_v38 = vld [vmem:[%s3771_s6 + $0x298] sm:$0xff]   ;;  %v2776_v41 = vld [vmem:[%s3771_s6 + $0x220] sm:$0xff]   ;;  %v2779_v44 = vld [vmem:[%s3771_s6 + $0x2e8] sm:$0xff]  }
 0x1d8   : > { %2423 = vmatprep.subr.bf16.mxu1 %v2734_v7  ;;  %2445 = vmatprep.subr.bf16.mxu0 %v2735_v50  ;;  %v2777_v42 = vld [vmem:[%s3771_s6 + $0x2a0] sm:$0xff]   ;;  %v2780_v45 = vld [vmem:[%s3771_s6 + $0x228] sm:$0xff]   ;;  %v2782_v47 = vld [vmem:[%s3771_s6 + $0x270] sm:$0xff]  }
 0x1d9   : > { %v2781_v46 = vld [vmem:[%s3771_s6 + $0x2a8] sm:$0xff]   ;;  %v2783_v48 = vld [vmem:[%s3771_s6 + $0x2f0] sm:$0xff]   ;;  %v2786_v61 = vld [vmem:[%s3771_s6 + $0x278] sm:$0xff]  }
 0x1da   : > { %v2784_v49 = vld [vmem:[%s3771_s6 + $0x230] sm:$0xff]   ;;  %v2787_v62 = vld [vmem:[%s3771_s6 + $0x2f8] sm:$0xff]   ;;  %v2273_v3 = vld [vmem:[%s3772_s7] ss:$0 sm:$0xff] }
 0x1db   : > { %2424 = vmatpush3.bf16.msra.mxu1 %v2736_v54  ;;  %2446 = vmatpush3.bf16.msra.mxu0 %v2737_v8  ;;  %v2785_v59 = vld [vmem:[%s3771_s6 + $0x2b0] sm:$0xff]   ;;  %v2788_v63 = vld [vmem:[%s3771_s6 + $0x238] sm:$0xff]  }
 0x1dc   : > { %2425 = vmatprep.subr.bf16.mxu1 %v2738_v9  ;;  %2447 = vmatprep.subr.bf16.mxu0 %v2739_v51 }
 0x1df   : > { %2426 = vmatpush3.bf16.msra.mxu1 %v2740_v10  ;;  %2448 = vmatpush3.bf16.msra.mxu0 %v2741_v55 }
 0x1e0   : > { %2427 = vmatprep.subr.bf16.mxu1 %v2742_v11  ;;  %2449 = vmatprep.subr.bf16.mxu0 %v2743_v12 }
 0x1e3   : > { %2428 = vmatpush3.bf16.msra.mxu1 %v2744_v13  ;;  %2450 = vmatpush3.bf16.msra.mxu0 %v2745_v14 }
 0x1e4   : > { %2429 = vmatprep.subr.bf16.mxu1 %v2746_v56  ;;  %2451 = vmatprep.subr.bf16.mxu0 %v2747_v53 }
 0x1e7   : > { %2430 = vmatpush3.bf16.msra.mxu1 %v2748_v57  ;;  %2452 = vmatpush3.bf16.msra.mxu0 %v2749_v16 }
 0x1e8   : > { %2431 = vmatprep.subr.bf16.mxu1 %v2750_v17  ;;  %2453 = vmatprep.subr.bf16.mxu0 %v2751_v18 }
 0x1eb   : > { %2432 = vmatpush3.bf16.msra.mxu1 %v2752_v19  ;;  %2454 = vmatpush3.bf16.msra.mxu0 %v2753_v20 }
 0x1ec   : > { %2433 = vmatprep.subr.bf16.mxu1 %v2754_v21  ;;  %2455 = vmatprep.subr.bf16.mxu0 %v2755_v22 }
 0x1ef   : > { %2434 = vmatpush3.bf16.msra.mxu1 %v2756_v23  ;;  %2456 = vmatpush3.bf16.msra.mxu0 %v2757_v24 }
 0x1f0   : > { %2463 = vmatprep.subr.bf16.mxu1 %v2758_v25  ;;  %2485 = vmatprep.subr.bf16.mxu0 %v2759_v26 }
 0x1f2   : > { %2027 = vmatmul.mubr.bf16.vlgmr.msra.gmra.mrb[12].mxu1 %v3506_v15  ;;  %2068 = vmatmul.mubr.bf16.vlgmr.msra.gmra.mrb[16].mxu0 %v3508_v52  ;;  %v2766_v15 = vld [vmem:[%s3771_s6 + $0x250] sm:$0xff]  }
 0x1f3   : > { %2464 = vmatpush3.bf16.msra.mxu1 %v2760_v27  ;;  %2108 = vmatprep.mubr.bf16.mxu1 %v3557_v0  ;;  %v2767_v52 = vld [vmem:[%s3771_s6 + $0x2d0] sm:$0xff]   ;;  %v2789_v0 = vld [vmem:[%s3771_s6 + $0x2b8] sm:$0xff]  }
 0x1f4   : > { %2486 = vmatpush3.bf16.msra.mxu0 %v2761_v28  ;;  %2149 = vmatprep.mubr.bf16.mxu0 %v3563_v2 }
 0x1f5   : > { %2465 = vmatprep.subr.bf16.mxu1 %v2762_v29  ;;  %2487 = vmatprep.subr.bf16.mxu0 %v2763_v30 }
 0x1f7   : > { %2466 = vmatpush3.bf16.msra.mxu1 %v2764_v31 }
 0x1f8   : > { %2488 = vmatpush3.bf16.msra.mxu0 %v2765_v32  ;;  %2467 = vmatprep.subr.bf16.mxu1 %v2766_v15 }
 0x1f9   : > { %2489 = vmatprep.subr.bf16.mxu0 %v2767_v52 }
 0x1fb   : > { %2468 = vmatpush3.bf16.msra.mxu1 %v2768_v33 }
 0x1fc   : > { %2490 = vmatpush3.bf16.msra.mxu0 %v2769_v34  ;;  %2469 = vmatprep.subr.bf16.mxu1 %v2770_v35 }
 0x1fd   : > { %2491 = vmatprep.subr.bf16.mxu0 %v2771_v36 }
 0x1ff   : > { %2470 = vmatpush3.bf16.msra.mxu1 %v2772_v37 }
 0x200   : > { %2492 = vmatpush3.bf16.msra.mxu0 %v2773_v38  ;;  %2471 = vmatprep.subr.bf16.mxu1 %v2774_v39 }
 0x201   : > { %2493 = vmatprep.subr.bf16.mxu0 %v2775_v40 }
 0x203   : > { %2472 = vmatpush3.bf16.msra.mxu1 %v2776_v41 }
 0x204   : > { %2494 = vmatpush3.bf16.msra.mxu0 %v2777_v42  ;;  %2473 = vmatprep.subr.bf16.mxu1 %v2778_v43 }
 0x205   : > { %2495 = vmatprep.subr.bf16.mxu0 %v2779_v44 }
 0x207   : > { %2474 = vmatpush3.bf16.msra.mxu1 %v2780_v45 }
 0x208   : > { %2496 = vmatpush3.bf16.msra.mxu0 %v2781_v46  ;;  %2475 = vmatprep.subr.bf16.mxu1 %v2782_v47 }
 0x209   : > { %2497 = vmatprep.subr.bf16.mxu0 %v2783_v48 }
 0x20b   : > { %2476 = vmatpush3.bf16.msra.mxu1 %v2784_v49 }
 0x20c   : > { %2498 = vmatpush3.bf16.msra.mxu0 %v2785_v59  ;;  %2477 = vmatprep.subr.bf16.mxu1 %v2786_v61 }
 0x20d   : > { %2499 = vmatprep.subr.bf16.mxu0 %v2787_v62 }
 0x20f   : > { %2478 = vmatpush3.bf16.msra.mxu1 %v2788_v63 }
 0x210   : > { %2500 = vmatpush3.bf16.msra.mxu0 %v2789_v0 }
 0x212   : > { %2109 = vmatmul.mubr.bf16.vlgmr.msra.gmra.mrb[16].mxu1 %v3537_v58 }
 0x213   : > { %2150 = vmatmul.mubr.bf16.vlgmr.msra.gmra.mrb[20].mxu0 %v3543_v60 }
 0x2a5   : > { %v2391_v1 = vpop.f32.mrb[8].mxu1  ;;  %v2413_v2 = vpop.f32.mrb[12].mxu0 }
 0x2a6   : > { %v2392_v4 = vpop.f32.mrb[9].mxu1  ;;  %v2414_v5 = vpop.f32.mrb[13].mxu0 }
 0x2a7   : > { %v2393_v6 = vadd.f32 %v2392_v4, %v2391_v1  ;;  %v2415_v7 = vadd.f32 %v2414_v5, %v2413_v2  ;;  %v2394_v50 = vpop.f32.mrb[10].mxu1  ;;  %v2416_v54 = vpop.f32.mrb[14].mxu0 }
 0x2a8   : > { %v2395_v8 = vpop.f32.mrb[11].mxu1  ;;  %v2417_v9 = vpop.f32.mrb[15].mxu0 }
 0x2a9   : > { %v1947_v51 = vadd.f32 %v2393_v6, %v2273_v3  ;;  %v2396_v10 = vadd.f32 %v2395_v8, %v2394_v50  ;;  %v2418_v55 = vadd.f32 %v2417_v9, %v2416_v54 }
 0x2ab   : > { %v1988_v58 = vadd.f32 %v2415_v7, %v1947_v51  ;;  %v1950_v11 = vadd.f32 %v2396_v10, %v2273_v3 }
 0x2ad   : > { %v1991_v60 = vadd.f32 %v2418_v55, %v1950_v11 }
 0x2c5   : > { %v2435_v12 = vpop.f32.mrb[12].mxu1  ;;  %v2457_v13 = vpop.f32.mrb[16].mxu0 }
 0x2c6   : > { %v2436_v14 = vpop.f32.mrb[13].mxu1  ;;  %v2458_v56 = vpop.f32.mrb[17].mxu0 }
 0x2c7   : > { %v2437_v53 = vadd.f32 %v2436_v14, %v2435_v12  ;;  %v2459_v57 = vadd.f32 %v2458_v56, %v2457_v13  ;;  %v2438_v16 = vpop.f32.mrb[14].mxu1  ;;  %v2460_v17 = vpop.f32.mrb[18].mxu0 }
 0x2c8   : > { %v2439_v18 = vpop.f32.mrb[15].mxu1  ;;  %v2461_v19 = vpop.f32.mrb[19].mxu0 }
 0x2c9   : > { %v2029_v20 = vadd.f32 %v2437_v53, %v1988_v58  ;;  %v2440_v21 = vadd.f32 %v2439_v18, %v2438_v16  ;;  %v2462_v22 = vadd.f32 %v2461_v19, %v2460_v17 }
 0x2cb   : > { %v2070_v23 = vadd.f32 %v2459_v57, %v2029_v20  ;;  %v2032_v24 = vadd.f32 %v2440_v21, %v1991_v60 }
 0x2cd   : > { %v2073_v25 = vadd.f32 %v2462_v22, %v2032_v24 }
 0x2e5   : > { %v2479_v26 = vpop.f32.mrb[16].mxu1 }
 0x2e6   : > { %v2501_v27 = vpop.f32.mrb[20].mxu0  ;;  %v2480_v28 = vpop.f32.mrb[17].mxu1 }
 0x2e7   : > { %v2481_v29 = vadd.f32 %v2480_v28, %v2479_v26  ;;  %v2502_v30 = vpop.f32.mrb[21].mxu0  ;;  %v2482_v31 = vpop.f32.mrb[18].mxu1 }
 0x2e8   : > { %v2503_v32 = vadd.f32 %v2502_v30, %v2501_v27  ;;  %v2504_v15 = vpop.f32.mrb[22].mxu0  ;;  %v2483_v52 = vpop.f32.mrb[19].mxu1 }
 0x2e9   : > { %v2111_v33 = vadd.f32 %v2481_v29, %v2070_v23  ;;  %v2484_v34 = vadd.f32 %v2483_v52, %v2482_v31  ;;  %v2505_v35 = vpop.f32.mrb[23].mxu0 }
 0x2ea   : > { %v2506_v36 = vadd.f32 %v2505_v35, %v2504_v15 }
 0x2eb   : > { %v2152_v37 = vadd.f32 %v2503_v32, %v2111_v33  ;;  %v2114_v38 = vadd.f32 %v2484_v34, %v2073_v25 }
 0x2ed   : > { %2158 = vst [vmem:[%s325_s20] sm:$0xff] %v2152_v37  ;;  %v2155_v39 = vadd.f32 %v2506_v36, %v2114_v38 }
 0x2ef   : > { %2159 = vst [vmem:[%s325_s20 + $0x8] sm:$0xff] %v2155_v39 }
 0x2f0 PF: > { %s18_s27 = sadd.s32 1, %s2796_s27  }
 0x2f1   : > { %p15_p4 = scmp.ge.s32.totalorder %s18_s27, 4  }
 0x2f3   :  { %17 = sbr.rel (!%p15_p4) target bundleno = 1 (0x1), region = 85 }

// kernel: feature_net_forward.3
= control target key start
LH: loop header
LB: loop body
LE: loop exit
PB: predicated region body
PF: predicated region fallthrough
CT: control target
= control target key end

     0   :  { %s8526_s0 = inlined_call_operand.vmem [shape: bf16[2,16,128], index: 0, kind: input, shape index: {}]   ;;  %s8527_s1 = inlined_call_operand.hbm [shape: bf16[384,128], index: 1, kind: input, shape index: {}]   ;;  %s8528_s2 = inlined_call_operand.vmem [shape: f32[1,128], index: 2, kind: input, shape index: {}]   ;;  %s8529_s3 = inlined_call_operand.hbm [shape: bf16[384,128], index: 3, kind: input, shape index: {}]   ;;  %s8530_s4 = inlined_call_operand.hbm [shape: f32[1,128], index: 4, kind: input, shape index: {}]   ;;  %s8531_s5 = inlined_call_operand.hbm [shape: bf16[2,8,16], index: 5, kind: input, shape index: {}]   ;;  %s8532_s6 = inlined_call_operand.vmem [shape: bf16[2,128,256], index: 6, kind: input, shape index: {}]   ;;  %s8533_s7 = inlined_call_operand.vmem [shape: bf16[768,128], index: 7, kind: input, shape index: {}]   ;;  %s8534_s8 = inlined_call_operand.hbm [shape: f32[1,128], index: 8, kind: input, shape index: {}]   ;;  %s8535_s9 = inlined_call_operand.hbm [shape: bf16[384,128], index: 9, kind: input, shape index: {}]   ;;  %s8536_s10 = inlined_call_operand.hbm [shape: f32[1,128], index: 10, kind: input, shape index: {}]   ;;  %s8537_s11 = inlined_call_operand.hbm [shape: bf16[384,128], index: 11, kind: input, shape index: {}]   ;;  %s8538_s12 = inlined_call_operand.hbm [shape: f32[1,128], index: 12, kind: input, shape index: {}]   ;;  %s8539_s13 = inlined_call_operand.hbm [shape: bf16[2,4,8], index: 13, kind: input, shape index: {}]   ;;  %s8540_s14 = inlined_call_operand.hbm [shape: bf16[2,128,256], index: 14, kind: input, shape index: {}]   ;;  %s8541_s15 = inlined_call_operand.hbm [shape: bf16[768,128], index: 15, kind: input, shape index: {}]   ;;  %s8542_s16 = inlined_call_operand.hbm [shape: f32[1,128], index: 16, kind: input, shape index: {}]   ;;  %s8543_s17 = inlined_call_operand.hbm [shape: bf16[384,128], index: 17, kind: input, shape index: {}]   ;;  %s8544_s18 = inlined_call_operand.hbm [shape: f32[1,128], index: 18, kind: input, shape index: {}]   ;;  %s8545_s19 = inlined_call_operand.hbm [shape: bf16[384,128], index: 19, kind: input, shape index: {}]   ;;  %s8546_s20 = inlined_call_operand.hbm [shape: f32[1,128], index: 20, kind: input, shape index: {}]   ;;  %s8547_s21 = inlined_call_operand.vmem [shape: bf16[128,128], index: 21, kind: input, shape index: {}]   ;;  %s8548_s22 = inlined_call_operand.hbm [shape: f32[1,128], index: 22, kind: input, shape index: {}]   ;;  %s8549_s23 = inlined_call_operand.vmem [shape: bf16[2,16,128], index: 23, kind: output, shape index: {0}]   ;;  %s8550_s24 = inlined_call_operand.vmem [shape: bf16[2,8,128], index: 24, kind: output, shape index: {1}]   ;;  %s8551_s25 = inlined_call_operand.vmem [shape: f32[2,4,128], index: 25, kind: output, shape index: {2}]  }
   0x1   :  { %8573 = sst [smem:[#allocation52_spill]] %s8526_s0 }
   0x2   :  { %8574 = sst [smem:[#allocation53_spill]] %s8527_s1 }
   0x3   :  { %8575 = sst [smem:[#allocation54_spill]] %s8528_s2 }
   0x4   :  { %8576 = sst [smem:[#allocation55_spill]] %s8529_s3 }
   0x5   :  { %8577 = sst [smem:[#allocation56_spill]] %s8530_s4 }
   0x6   :  { %8578 = sst [smem:[#allocation57_spill]] %s8531_s5 }
   0x7   :  { %8579 = sst [smem:[#allocation58_spill]] %s8532_s6 }
   0x8   :  { %8580 = sst [smem:[#allocation59_spill]] %s8533_s7 }
   0x9   :  { %8581 = sst [smem:[#allocation60_spill]] %s8534_s8 }
   0xa   :  { %8582 = sst [smem:[#allocation61_spill]] %s8535_s9 }
   0xb   :  { %8583 = sst [smem:[#allocation62_spill]] %s8536_s10 }
   0xc   :  { %8584 = sst [smem:[#allocation63_spill]] %s8537_s11 }
   0xd   :  { %8585 = sst [smem:[#allocation64_spill]] %s8538_s12 }
   0xe   :  { %8586 = sst [smem:[#allocation65_spill]] %s8547_s21 }
   0xf   :  { %8587 = sst [smem:[#allocation66_spill]] %s8549_s23 }
  0x10   :  { %8588 = sst [smem:[#allocation67_spill]] %s8550_s24 }
  0x11   :  { %8589 = sst [smem:[#allocation68_spill]] %s8551_s25 }
  0x12   :  { %31 = vsyncpa [#allocation12], 0 }
  0x13   :  { %32 = vsyncpa [#allocation14], 0 }
  0x14   :  { %33 = vsyncpa [#allocation17], 0 }
  0x15   :  { %34 = vsyncpa [#allocation20], 0 }
  0x16   :  { %35 = vsyncpa [#allocation23], 0 }
  0x17   :  { %36 = vsyncpa [#allocation26], 0 }
  0x18   :  { %37 = vsyncpa [#allocation29], 0 }
  0x19   :  { %38 = vsyncpa [#allocation32], 0 }
  0x1a   :  { %39 = vsyncpa [#allocation35], 0 }
  0x1b   :  { %40 = vsyncpa [#allocation38], 0  ;;  %s7534_s29 = smov 0  }
  0x1c LB: > { %8590 = sst [smem:[#allocation49_spill]] %s7374_s29  ;;  %s7540_s2 = sadd.s32 4294967295, %s7374_s29   ;;  %s7374_s29 = sphi %s7534_s29, %s46_s29  }
  0x1d   : > { %8591 = sst [smem:[#allocation50_spill]] %s7540_s2  ;;  %p5341_p0 = scmp.ge.s32.totalorder %s7374_s29, 1 }
  0x1e   : > { %p617_p1 = scmp.lt.s32.totalorder %s7374_s29, 3  ;;  %p8565_p2 = scmp.eq.s32.totalorder %s7540_s2, 0 }
  0x1f   : > { %s7376_s30 = smov [#allocation13]   ;;  %s7377_s3 = smov [#allocation16]  }
  0x20   : > { %p7545_p3 = pnand %p5341_p0, %p617_p1  ;;  %s645_s7 = sshll.u32 %s7376_s30, 4  ;;  %s7549_s7 = int_to_ptr.vmem [resolvable:$true] %s645_s7 }
  0x21   : > { %s669_s26 = sshll.u32 %s7377_s3, 4  ;;  %s7378_s8 = smov [#allocation19]   ;;  %s7553_s26 = int_to_ptr.vmem [resolvable:$true] %s669_s26 }
  0x22   : > { %s8592_s6 = scalar_select %p7545_p3, 1, 0 }
  0x23   : > { %p6341_p4 = pneg %p7545_p3  ;;  %s699_s27 = sshll.u32 %s7378_s8, 4  ;;  %s7561_s27 = int_to_ptr.vmem [resolvable:$true] %s699_s27 }
  0x24   : > { %8593 = sst [smem:[#allocation51_spill]] %s8592_s6  ;;  %s7379_s4 = smov [#allocation22]  }
  0x25   : > { %p7557_p5 = pnand %p8565_p2, %p6341_p4  ;;  %s7563_s28 = sshll.u32 %s7379_s4, 4  ;;  %s724_s28 = int_to_ptr.vmem [resolvable:$true] %s7563_s28 }
  0x26   : > { %s8595_s0 = sld [smem:[#allocation55_spill]] }
  0x27   : > { %p7573_p7 = pneg %p7557_p5 }
  0x2c   : > { %s6824_s30 = scalar_lea.hbm %s8595_s0, 3072 }
  0x2d   : > { %p6825_p6 = scmp.ne.s32.totalorder %s8595_s0, %s6824_s30  ;;  %p6831_p10 = scmp.lt.u32.totalorder %s6824_s30, %s8595_s0 }
  0x2f   : > { %p6827_p8 = pnand %p7573_p7, %p6825_p6 }
  0x31   : > { %p6828_p9 = pneg %p6827_p8 }
  0x33   : > { %p6833_p11 = pnand %p6831_p10, %p6828_p9 }
  0x35   : > { %6836 = shalt.err (!%p6833_p11)
}
  0x36   : > { %s6837_s29 = scalar_lea.vmem %s7549_s7, 3072  ;;  %p6845_p1 = scmp.lt.s32.totalorder %s7549_s7, %s7549_s7 }
  0x37   : > { %p6838_p12 = scmp.ne.s32.totalorder %s7549_s7, %s6837_s29  ;;  %p6846_p4 = scmp.lt.s32.totalorder %s6837_s29, %s6837_s29 }
  0x39   : > { %p6840_p13 = pnand %p6838_p12, %p7573_p7  ;;  %p6847_p6 = por %p6846_p4, %p6845_p1 }
  0x3b   : > { %p6841_p0 = pneg %p6840_p13 }
  0x3d   : > { %p6848_p8 = pnand %p6847_p6, %p6841_p0 }
  0x3f   : > { %6851 = shalt.err (!%p6848_p8)
}
  0x40   : > { %s8567_s9 = smov 64   ;;  %s8569_s5 = smov 4  }
  0x41   : > { %6347 = dma.hbm_to_vmem [thread:$0]  (!%p7557_p5), %s8595_s0, 3072, %s7549_s7, [#allocation14], %s8567_s9, %s8567_s9, %s8569_s5  }
  0x42   : > { %s8597_s21 = sld [smem:[#allocation57_spill]] }
  0x48   : > { %s6852_s29 = scalar_lea.hbm %s8597_s21, 128 }
  0x49   : > { %p6853_p9 = scmp.ne.s32.totalorder %s8597_s21, %s6852_s29  ;;  %p6859_p12 = scmp.lt.u32.totalorder %s6852_s29, %s8597_s21 }
  0x4b   : > { %p6855_p10 = pnand %p6853_p9, %p7573_p7 }
  0x4d   : > { %p6856_p11 = pneg %p6855_p10 }
  0x4f   : > { %p6861_p13 = pnand %p6859_p12, %p6856_p11 }
  0x51   : > { %6864 = shalt.err (!%p6861_p13)
}
  0x52   : > { %s6865_s7 = scalar_lea.vmem %s7553_s26, 128  ;;  %p6873_p6 = scmp.lt.s32.totalorder %s7553_s26, %s7553_s26 }
  0x53   : > { %p6866_p0 = scmp.ne.s32.totalorder %s7553_s26, %s6865_s7  ;;  %p6874_p8 = scmp.lt.s32.totalorder %s6865_s7, %s6865_s7 }
  0x55   : > { %p6868_p1 = pnand %p6866_p0, %p7573_p7  ;;  %p6875_p9 = por %p6874_p8, %p6873_p6 }
  0x57   : > { %p6869_p4 = pneg %p6868_p1 }
  0x59   : > { %p6876_p10 = pnand %p6875_p9, %p6869_p4 }
  0x5b   : > { %6879 = shalt.err (!%p6876_p10)
}
  0x5c   : > { %6353 = dma.hbm_to_vmem [thread:$0]  (!%p7557_p5), %s8597_s21, 128, %s7553_s26, [#allocation17], %s8567_s9, %s8567_s9, %s8569_s5  }
  0x5d   : > { %s8598_s30 = sld [smem:[#allocation61_spill]] }
  0x63   : > { %s6880_s3 = scalar_lea.hbm %s8598_s30, 3072 }
  0x64   : > { %p6881_p11 = scmp.ne.s32.totalorder %s8598_s30, %s6880_s3  ;;  %p6887_p0 = scmp.lt.u32.totalorder %s6880_s3, %s8598_s30 }
  0x66   : > { %p6883_p12 = pnand %p6881_p11, %p7573_p7 }
  0x68   : > { %p6884_p13 = pneg %p6883_p12 }
  0x6a   : > { %p6889_p1 = pnand %p6887_p0, %p6884_p13 }
  0x6c   : > { %6892 = shalt.err (!%p6889_p1)
}
  0x6d   : > { %s6893_s26 = scalar_lea.vmem %s7561_s27, 3072  ;;  %p6901_p9 = scmp.lt.s32.totalorder %s7561_s27, %s7561_s27 }
  0x6e   : > { %p6894_p4 = scmp.ne.s32.totalorder %s7561_s27, %s6893_s26  ;;  %p6902_p10 = scmp.lt.s32.totalorder %s6893_s26, %s6893_s26 }
  0x70   : > { %p6896_p6 = pnand %p6894_p4, %p7573_p7  ;;  %p6903_p11 = por %p6902_p10, %p6901_p9 }
  0x72   : > { %p6897_p8 = pneg %p6896_p6 }
  0x74   : > { %p6904_p12 = pnand %p6903_p11, %p6897_p8 }
  0x76   : > { %6907 = shalt.err (!%p6904_p12)
}
  0x77   : > { %6359 = dma.hbm_to_vmem [thread:$0]  (!%p7557_p5), %s8598_s30, 3072, %s7561_s27, [#allocation20], %s8567_s9, %s8567_s9, %s8569_s5  }
  0x78   : > { %s8599_s11 = sld [smem:[#allocation63_spill]] }
  0x7e   : > { %s6908_s3 = scalar_lea.hbm %s8599_s11, 3072 }
  0x7f   : > { %p6909_p13 = scmp.ne.s32.totalorder %s8599_s11, %s6908_s3  ;;  %p6915_p4 = scmp.lt.u32.totalorder %s6908_s3, %s8599_s11 }
  0x81   : > { %p6911_p0 = pnand %p6909_p13, %p7573_p7 }
  0x83   : > { %p6912_p1 = pneg %p6911_p0 }
  0x85   : > { %p6917_p6 = pnand %p6915_p4, %p6912_p1 }
  0x87   : > { %6920 = shalt.err (!%p6917_p6)
}
  0x88   : > { %s6921_s26 = scalar_lea.vmem %s724_s28, 3072  ;;  %p6929_p11 = scmp.lt.s32.totalorder %s724_s28, %s724_s28 }
  0x89   : > { %p6922_p8 = scmp.ne.s32.totalorder %s724_s28, %s6921_s26  ;;  %p6930_p12 = scmp.lt.s32.totalorder %s6921_s26, %s6921_s26 }
  0x8b   : > { %p6924_p9 = pnand %p6922_p8, %p7573_p7  ;;  %p6931_p2 = por %p6930_p12, %p6929_p11 }
  0x8d   : > { %p6925_p10 = pneg %p6924_p9 }
  0x8f   : > { %p6932_p3 = pnand %p6931_p2, %p6925_p10 }
  0x91   : > { %6935 = shalt.err (!%p6932_p3)
}
  0x92   : > { %6365 = dma.hbm_to_vmem [thread:$0]  (!%p7557_p5), %s8599_s11, 3072, %s724_s28, [#allocation23], %s8567_s9, %s8567_s9, %s8569_s5  }
  0x93   : > { %s7382_s24 = smov [#allocation25]   ;;  %s6936_s8 = scalar_lea.hbm %s8539_s13, 64 }
  0x94   : > { %s747_s2 = sshll.u32 %s7382_s24, 4  ;;  %p6937_p2 = scmp.ne.s32.totalorder %s8539_s13, %s6936_s8  ;;  %s748_s2 = int_to_ptr.vmem [resolvable:$true] %s747_s2 }
  0x95   : > { %p6943_p0 = scmp.lt.u32.totalorder %s6936_s8, %s8539_s13 }
  0x96   : > { %p6939_p3 = pnand %p6937_p2, %p7573_p7 }
  0x98   : > { %p6940_p13 = pneg %p6939_p3 }
  0x9a   : > { %p6945_p1 = pnand %p6943_p0, %p6940_p13 }
  0x9c   : > { %6948 = shalt.err (!%p6945_p1)
}
  0x9d   : > { %s6949_s28 = scalar_lea.vmem %s748_s2, 64  ;;  %p6957_p9 = scmp.lt.s32.totalorder %s748_s2, %s748_s2 }
  0x9e   : > { %p6950_p4 = scmp.ne.s32.totalorder %s748_s2, %s6949_s28  ;;  %p6958_p10 = scmp.lt.s32.totalorder %s6949_s28, %s6949_s28 }
  0xa0   : > { %p6952_p6 = pnand %p6950_p4, %p7573_p7  ;;  %p6959_p11 = por %p6958_p10, %p6957_p9 }
  0xa2   : > { %p6953_p8 = pneg %p6952_p6 }
  0xa4   : > { %p6960_p12 = pnand %p6959_p11, %p6953_p8 }
  0xa6   : > { %6963 = shalt.err (!%p6960_p12)
}
  0xa7   : > { %s7383_s27 = smov 32   ;;  %s7384_s23 = smov 2  }
  0xa8   : > { %6371 = dma.hbm_to_vmem [thread:$0]  (!%p7557_p5), %s8539_s13, 64, %s748_s2, [#allocation26], %s7383_s27, %s7383_s27, %s7384_s23  }
  0xa9   : > { %s7385_s3 = smov [#allocation28]   ;;  %s7386_s4 = smov [#allocation31]  }
  0xaa   : > { %s773_s8 = sshll.u32 %s7385_s3, 4  ;;  %s797_s29 = sshll.u32 %s7386_s4, 4  ;;  %s774_s8 = int_to_ptr.vmem [resolvable:$true] %s773_s8  ;;  %s7689_s29 = int_to_ptr.vmem [resolvable:$true] %s797_s29 }
  0xab   : > { %s6964_s28 = scalar_lea.hbm %s8541_s15, 6144 }
  0xac   : > { %p6965_p2 = scmp.ne.s32.totalorder %s8541_s15, %s6964_s28  ;;  %p6971_p0 = scmp.lt.u32.totalorder %s6964_s28, %s8541_s15 }
  0xae   : > { %p6967_p3 = pnand %p6965_p2, %p7573_p7 }
  0xb0   : > { %p6968_p13 = pneg %p6967_p3 }
  0xb2   : > { %p6973_p1 = pnand %p6971_p0, %p6968_p13 }
  0xb4   : > { %6976 = shalt.err (!%p6973_p1)
}
  0xb5   : > { %s6977_s27 = scalar_lea.vmem %s774_s8, 6144  ;;  %p6985_p9 = scmp.lt.s32.totalorder %s774_s8, %s774_s8 }
  0xb6   : > { %p6978_p4 = scmp.ne.s32.totalorder %s774_s8, %s6977_s27  ;;  %p6986_p10 = scmp.lt.s32.totalorder %s6977_s27, %s6977_s27 }
  0xb8   : > { %p6980_p6 = pnand %p6978_p4, %p7573_p7  ;;  %p6987_p11 = por %p6986_p10, %p6985_p9 }
  0xba   : > { %p6981_p8 = pneg %p6980_p6 }
  0xbc   : > { %p6988_p12 = pnand %p6987_p11, %p6981_p8 }
  0xbe   : > { %6991 = shalt.err (!%p6988_p12)
}
  0xbf   : > { %s8600_s9 = smov 4   ;;  %s8601_s5 = smov 64  }
  0xc0   : > { %6377 = dma.hbm_to_vmem [thread:$0]  (!%p7557_p5), %s8541_s15, 6144, %s774_s8, [#allocation29], %s8601_s5, %s8601_s5, %s8600_s9  }
  0xc1   : > { %s6992_s7 = scalar_lea.hbm %s8543_s17, 3072 }
  0xc2   : > { %p6993_p2 = scmp.ne.s32.totalorder %s8543_s17, %s6992_s7  ;;  %p6999_p0 = scmp.lt.u32.totalorder %s6992_s7, %s8543_s17 }
  0xc4   : > { %p6995_p3 = pnand %p6993_p2, %p7573_p7 }
  0xc6   : > { %p6996_p13 = pneg %p6995_p3 }
  0xc8   : > { %p7001_p1 = pnand %p6999_p0, %p6996_p13 }
  0xca   : > { %7004 = shalt.err (!%p7001_p1)
}
  0xcb   : > { %s7005_s8 = scalar_lea.vmem %s7689_s29, 3072  ;;  %p7013_p9 = scmp.lt.s32.totalorder %s7689_s29, %s7689_s29 }
  0xcc   : > { %p7006_p4 = scmp.ne.s32.totalorder %s7689_s29, %s7005_s8  ;;  %p7014_p10 = scmp.lt.s32.totalorder %s7005_s8, %s7005_s8 }
  0xce   : > { %p7008_p6 = pnand %p7006_p4, %p7573_p7  ;;  %p7015_p11 = por %p7014_p10, %p7013_p9 }
  0xd0   : > { %p7009_p8 = pneg %p7008_p6 }
  0xd2   : > { %p7016_p12 = pnand %p7015_p11, %p7009_p8 }
  0xd4   : > { %7019 = shalt.err (!%p7016_p12)
}
  0xd5   : > { %6383 = dma.hbm_to_vmem [thread:$0]  (!%p7557_p5), %s8543_s17, 3072, %s7689_s29, [#allocation32], %s8601_s5, %s8601_s5, %s8600_s9  }
  0xd6   : > { %s7387_s6 = smov [#allocation34]   ;;  %s7388_s4 = smov [#allocation11]  }
  0xd7   : > { %s821_s3 = sshll.u32 %s7387_s6, 4  ;;  %s629_s7 = sshll.u32 %s7388_s4, 4  ;;  %s822_s3 = int_to_ptr.vmem [resolvable:$true] %s821_s3  ;;  %s7738_s7 = int_to_ptr.vmem [resolvable:$true] %s629_s7 }
  0xd8   : > { %s7020_s24 = scalar_lea.hbm %s8545_s19, 3072 }
  0xd9   : > { %p7021_p2 = scmp.ne.s32.totalorder %s8545_s19, %s7020_s24  ;;  %p7027_p0 = scmp.lt.u32.totalorder %s7020_s24, %s8545_s19 }
  0xdb   : > { %p7023_p3 = pnand %p7021_p2, %p7573_p7 }
  0xdd   : > { %p7024_p13 = pneg %p7023_p3 }
  0xdf   : > { %p7029_p1 = pnand %p7027_p0, %p7024_p13 }
  0xe1   : > { %7032 = shalt.err (!%p7029_p1)
}
  0xe2   : > { %s7033_s23 = scalar_lea.vmem %s822_s3, 3072  ;;  %p7041_p9 = scmp.lt.s32.totalorder %s822_s3, %s822_s3 }
  0xe3   : > { %p7034_p4 = scmp.ne.s32.totalorder %s822_s3, %s7033_s23  ;;  %p7042_p10 = scmp.lt.s32.totalorder %s7033_s23, %s7033_s23 }
  0xe5   : > { %p7036_p6 = pnand %p7034_p4, %p7573_p7  ;;  %p7043_p11 = por %p7042_p10, %p7041_p9 }
  0xe7   : > { %p7037_p8 = pneg %p7036_p6 }
  0xe9   : > { %p7044_p12 = pnand %p7043_p11, %p7037_p8 }
  0xeb   : > { %7047 = shalt.err (!%p7044_p12)
}
  0xec   : > { %6389 = dma.hbm_to_vmem [thread:$0]  (!%p7557_p5), %s8545_s19, 3072, %s822_s3, [#allocation35], %s8601_s5, %s8601_s5, %s8600_s9  }
  0xed   : > { %s8602_s24 = sld [smem:[#allocation53_spill]] }
  0xf3   : > { %s7048_s2 = scalar_lea.hbm %s8602_s24, 3072 }
  0xf4   : > { %p7049_p2 = scmp.ne.s32.totalorder %s8602_s24, %s7048_s2  ;;  %p7055_p0 = scmp.lt.u32.totalorder %s7048_s2, %s8602_s24 }
  0xf6   : > { %p7051_p3 = pnand %p7049_p2, %p7573_p7 }
  0xf8   : > { %p7052_p13 = pneg %p7051_p3 }
  0xfa   : > { %p7057_p1 = pnand %p7055_p0, %p7052_p13 }
  0xfc   : > { %7060 = shalt.err (!%p7057_p1)
}
  0xfd   : > { %s7061_s3 = scalar_lea.vmem %s7738_s7, 3072  ;;  %p7069_p9 = scmp.lt.s32.totalorder %s7738_s7, %s7738_s7 }
  0xfe   : > { %p7062_p4 = scmp.ne.s32.totalorder %s7738_s7, %s7061_s3  ;;  %p7070_p10 = scmp.lt.s32.totalorder %s7061_s3, %s7061_s3 }
 0x100   : > { %p7064_p6 = pnand %p7062_p4, %p7573_p7  ;;  %p7071_p11 = por %p7070_p10, %p7069_p9 }
 0x102   : > { %p7065_p8 = pneg %p7064_p6 }
 0x104   : > { %p7072_p12 = pnand %p7071_p11, %p7065_p8 }
 0x106   : > { %7075 = shalt.err (!%p7072_p12)
}
 0x107   : > { %6344 = dma.hbm_to_vmem [thread:$0]  (!%p7557_p5), %s8602_s24, 3072, %s7738_s7, [#allocation12], %s8601_s5, %s8601_s5, %s8600_s9  }
 0x108   : > { %s7389_s26 = smov [#allocation15]   ;;  %s7390_s2 = smov [#allocation18]  }
 0x109   : > { %s659_s28 = sshll.u32 %s7389_s26, 4  ;;  %s689_s8 = sshll.u32 %s7390_s2, 4  ;;  %s660_s28 = int_to_ptr.vmem [resolvable:$true] %s659_s28  ;;  %s7787_s8 = int_to_ptr.vmem [resolvable:$true] %s689_s8 }
 0x10a   : > { %s8603_s23 = sld [smem:[#allocation56_spill]] }
 0x110   : > { %s7076_s3 = scalar_lea.hbm %s8603_s23, 16 }
 0x111   : > { %p7077_p2 = scmp.ne.s32.totalorder %s8603_s23, %s7076_s3  ;;  %p7083_p0 = scmp.lt.u32.totalorder %s7076_s3, %s8603_s23 }
 0x113   : > { %p7079_p3 = pnand %p7077_p2, %p7573_p7 }
 0x115   : > { %p7080_p13 = pneg %p7079_p3 }
 0x117   : > { %p7085_p1 = pnand %p7083_p0, %p7080_p13 }
 0x119   : > { %7088 = shalt.err (!%p7085_p1)
}
 0x11a   : > { %s7089_s5 = scalar_lea.vmem %s660_s28, 16  ;;  %s7096_s7 = scalar_lea.vmem %s660_s28, 32 }
 0x11b   : > { %p7090_p4 = scmp.ne.s32.totalorder %s660_s28, %s7089_s5  ;;  %p7097_p9 = scmp.lt.s32.totalorder %s660_s28, %s660_s28 }
 0x11c   : > { %p7098_p10 = scmp.lt.s32.totalorder %s7096_s7, %s7089_s5 }
 0x11d   : > { %p7092_p6 = pnand %p7090_p4, %p7573_p7 }
 0x11e   : > { %p7099_p11 = por %p7098_p10, %p7097_p9 }
 0x11f   : > { %p7093_p8 = pneg %p7092_p6 }
 0x121   : > { %p7100_p12 = pnand %p7099_p11, %p7093_p8 }
 0x123   : > { %7103 = shalt.err (!%p7100_p12)
}
 0x124   : > { %6350 = dma.hbm_to_vmem [thread:$0]  (!%p7557_p5), %s8603_s23, 16, %s660_s28, [#allocation14]  }
 0x125   : > { %s8604_s2 = sld [smem:[#allocation60_spill]] }
 0x12b   : > { %s7104_s27 = scalar_lea.hbm %s8604_s2, 16 }
 0x12c   : > { %p7105_p2 = scmp.ne.s32.totalorder %s8604_s2, %s7104_s27  ;;  %p7111_p0 = scmp.lt.u32.totalorder %s7104_s27, %s8604_s2 }
 0x12e   : > { %p7107_p3 = pnand %p7105_p2, %p7573_p7 }
 0x130   : > { %p7108_p13 = pneg %p7107_p3 }
 0x132   : > { %p7113_p1 = pnand %p7111_p0, %p7108_p13 }
 0x134   : > { %7116 = shalt.err (!%p7113_p1)
}
 0x135   : > { %s7117_s28 = scalar_lea.vmem %s7787_s8, 16  ;;  %s7124_s5 = scalar_lea.vmem %s7787_s8, 32 }
 0x136   : > { %p7118_p4 = scmp.ne.s32.totalorder %s7787_s8, %s7117_s28  ;;  %p7125_p9 = scmp.lt.s32.totalorder %s7787_s8, %s7787_s8 }
 0x137   : > { %p7126_p10 = scmp.lt.s32.totalorder %s7124_s5, %s7117_s28 }
 0x138   : > { %p7120_p6 = pnand %p7118_p4, %p7573_p7 }
 0x139   : > { %p7127_p11 = por %p7126_p10, %p7125_p9 }
 0x13a   : > { %p7121_p8 = pneg %p7120_p6 }
 0x13c   : > { %p7128_p12 = pnand %p7127_p11, %p7121_p8 }
 0x13e   : > { %7131 = shalt.err (!%p7128_p12)
}
 0x13f   : > { %6356 = dma.hbm_to_vmem [thread:$0]  (!%p7557_p5), %s8604_s2, 16, %s7787_s8, [#allocation17]  }
 0x140   : > { %s7391_s0 = smov [#allocation21]   ;;  %s7392_s26 = smov [#allocation24]  }
 0x141   : > { %s713_s4 = sshll.u32 %s7391_s0, 4  ;;  %s737_s27 = sshll.u32 %s7392_s26, 4  ;;  %s714_s4 = int_to_ptr.vmem [resolvable:$true] %s713_s4  ;;  %s7831_s27 = int_to_ptr.vmem [resolvable:$true] %s737_s27 }
 0x142   : > { %s8605_s10 = sld [smem:[#allocation62_spill]] }
 0x148   : > { %s7132_s6 = scalar_lea.hbm %s8605_s10, 16 }
 0x149   : > { %p7133_p2 = scmp.ne.s32.totalorder %s8605_s10, %s7132_s6  ;;  %p7139_p0 = scmp.lt.u32.totalorder %s7132_s6, %s8605_s10 }
 0x14b   : > { %p7135_p3 = pnand %p7133_p2, %p7573_p7 }
 0x14d   : > { %p7136_p13 = pneg %p7135_p3 }
 0x14f   : > { %p7141_p1 = pnand %p7139_p0, %p7136_p13 }
 0x151   : > { %7144 = shalt.err (!%p7141_p1)
}
 0x152   : > { %s7145_s7 = scalar_lea.vmem %s714_s4, 16  ;;  %s7152_s11 = scalar_lea.vmem %s714_s4, 32 }
 0x153   : > { %p7146_p4 = scmp.ne.s32.totalorder %s714_s4, %s7145_s7  ;;  %p7153_p9 = scmp.lt.s32.totalorder %s714_s4, %s714_s4 }
 0x154   : > { %p7154_p10 = scmp.lt.s32.totalorder %s7152_s11, %s7145_s7 }
 0x155   : > { %p7148_p6 = pnand %p7146_p4, %p7573_p7 }
 0x156   : > { %p7155_p11 = por %p7154_p10, %p7153_p9 }
 0x157   : > { %p7149_p8 = pneg %p7148_p6 }
 0x159   : > { %p7156_p12 = pnand %p7155_p11, %p7149_p8 }
 0x15b   : > { %7159 = shalt.err (!%p7156_p12)
}
 0x15c   : > { %6362 = dma.hbm_to_vmem [thread:$0]  (!%p7557_p5), %s8605_s10, 16, %s714_s4, [#allocation20]  }
 0x15d   : > { %s8606_s12 = sld [smem:[#allocation64_spill]] }
 0x163   : > { %s7160_s6 = scalar_lea.hbm %s8606_s12, 16 }
 0x164   : > { %p7161_p2 = scmp.ne.s32.totalorder %s8606_s12, %s7160_s6  ;;  %p7167_p0 = scmp.lt.u32.totalorder %s7160_s6, %s8606_s12 }
 0x166   : > { %p7163_p3 = pnand %p7161_p2, %p7573_p7 }
 0x168   : > { %p7164_p13 = pneg %p7163_p3 }
 0x16a   : > { %p7169_p1 = pnand %p7167_p0, %p7164_p13 }
 0x16c   : > { %7172 = shalt.err (!%p7169_p1)
}
 0x16d   : > { %s7173_s4 = scalar_lea.vmem %s7831_s27, 16  ;;  %s7180_s7 = scalar_lea.vmem %s7831_s27, 32 }
 0x16e   : > { %p7174_p4 = scmp.ne.s32.totalorder %s7831_s27, %s7173_s4  ;;  %p7181_p9 = scmp.lt.s32.totalorder %s7831_s27, %s7831_s27 }
 0x16f   : > { %p7182_p10 = scmp.lt.s32.totalorder %s7180_s7, %s7173_s4 }
 0x170   : > { %p7176_p6 = pnand %p7174_p4, %p7573_p7 }
 0x171   : > { %p7183_p11 = por %p7182_p10, %p7181_p9 }
 0x172   : > { %p7177_p8 = pneg %p7176_p6 }
 0x174   : > { %p7184_p12 = pnand %p7183_p11, %p7177_p8 }
 0x176   : > { %7187 = shalt.err (!%p7184_p12)
}
 0x177   : > { %6368 = dma.hbm_to_vmem [thread:$0]  (!%p7557_p5), %s8606_s12, 16, %s7831_s27, [#allocation23]  }
 0x178   : > { %s7393_s26 = smov [#allocation27]   ;;  %s7188_s9 = scalar_lea.hbm %s8540_s14, 4096 }
 0x179   : > { %s760_s29 = sshll.u32 %s7393_s26, 4  ;;  %p7189_p2 = scmp.ne.s32.totalorder %s8540_s14, %s7188_s9  ;;  %s761_s29 = int_to_ptr.vmem [resolvable:$true] %s760_s29 }
 0x17a   : > { %p7195_p0 = scmp.lt.u32.totalorder %s7188_s9, %s8540_s14 }
 0x17b   : > { %p7191_p3 = pnand %p7189_p2, %p7573_p7 }
 0x17d   : > { %p7192_p13 = pneg %p7191_p3 }
 0x17f   : > { %p7197_p1 = pnand %p7195_p0, %p7192_p13 }
 0x181   : > { %7200 = shalt.err (!%p7197_p1)
}
 0x182   : > { %s7201_s27 = scalar_lea.vmem %s761_s29, 4096  ;;  %p7209_p9 = scmp.lt.s32.totalorder %s761_s29, %s761_s29 }
 0x183   : > { %p7202_p4 = scmp.ne.s32.totalorder %s761_s29, %s7201_s27  ;;  %p7210_p10 = scmp.lt.s32.totalorder %s7201_s27, %s7201_s27 }
 0x185   : > { %p7204_p6 = pnand %p7202_p4, %p7573_p7  ;;  %p7211_p11 = por %p7210_p10, %p7209_p9 }
 0x187   : > { %p7205_p8 = pneg %p7204_p6 }
 0x189   : > { %p7212_p12 = pnand %p7211_p11, %p7205_p8 }
 0x18b   : > { %7215 = shalt.err (!%p7212_p12)
}
 0x18c   : > { %s7394_s7 = smov 128   ;;  %s7395_s11 = smov 8  }
 0x18d   : > { %6374 = dma.hbm_to_vmem [thread:$0]  (!%p7557_p5), %s8540_s14, 4096, %s761_s29, [#allocation26], %s7394_s7, %s7394_s7, %s7395_s11  }
 0x18e   : > { %s7396_s3 = smov [#allocation30]   ;;  %s7397_s9 = smov [#allocation33]  }
 0x18f   : > { %s787_s6 = sshll.u32 %s7396_s3, 4  ;;  %s811_s28 = sshll.u32 %s7397_s9, 4  ;;  %s788_s6 = int_to_ptr.vmem [resolvable:$true] %s787_s6  ;;  %s812_s28 = int_to_ptr.vmem [resolvable:$true] %s811_s28 }
 0x190   : > { %s7216_s4 = scalar_lea.hbm %s8542_s16, 16 }
 0x191   : > { %p7217_p2 = scmp.ne.s32.totalorder %s8542_s16, %s7216_s4  ;;  %p7223_p0 = scmp.lt.u32.totalorder %s7216_s4, %s8542_s16 }
 0x193   : > { %p7219_p3 = pnand %p7217_p2, %p7573_p7 }
 0x195   : > { %p7220_p13 = pneg %p7219_p3 }
 0x197   : > { %p7225_p1 = pnand %p7223_p0, %p7220_p13 }
 0x199   : > { %7228 = shalt.err (!%p7225_p1)
}
 0x19a   : > { %s7229_s29 = scalar_lea.vmem %s788_s6, 16  ;;  %s7236_s7 = scalar_lea.vmem %s788_s6, 32 }
 0x19b   : > { %p7230_p4 = scmp.ne.s32.totalorder %s788_s6, %s7229_s29  ;;  %p7237_p9 = scmp.lt.s32.totalorder %s788_s6, %s788_s6 }
 0x19c   : > { %p7238_p10 = scmp.lt.s32.totalorder %s7236_s7, %s7229_s29 }
 0x19d   : > { %p7232_p6 = pnand %p7230_p4, %p7573_p7 }
 0x19e   : > { %p7239_p11 = por %p7238_p10, %p7237_p9 }
 0x19f   : > { %p7233_p8 = pneg %p7232_p6 }
 0x1a1   : > { %p7240_p12 = pnand %p7239_p11, %p7233_p8 }
 0x1a3   : > { %7243 = shalt.err (!%p7240_p12)
}
 0x1a4   : > { %6380 = dma.hbm_to_vmem [thread:$0]  (!%p7557_p5), %s8542_s16, 16, %s788_s6, [#allocation29]  }
 0x1a5   : > { %s7244_s0 = scalar_lea.hbm %s8544_s18, 16 }
 0x1a6   : > { %p7245_p2 = scmp.ne.s32.totalorder %s8544_s18, %s7244_s0  ;;  %p7251_p0 = scmp.lt.u32.totalorder %s7244_s0, %s8544_s18 }
 0x1a8   : > { %p7247_p3 = pnand %p7245_p2, %p7573_p7 }
 0x1aa   : > { %p7248_p13 = pneg %p7247_p3 }
 0x1ac   : > { %p7253_p1 = pnand %p7251_p0, %p7248_p13 }
 0x1ae   : > { %7256 = shalt.err (!%p7253_p1)
}
 0x1af   : > { %s7257_s8 = scalar_lea.vmem %s812_s28, 16  ;;  %s7264_s6 = scalar_lea.vmem %s812_s28, 32 }
 0x1b0   : > { %p7258_p4 = scmp.ne.s32.totalorder %s812_s28, %s7257_s8  ;;  %p7265_p9 = scmp.lt.s32.totalorder %s812_s28, %s812_s28 }
 0x1b1   : > { %p7266_p10 = scmp.lt.s32.totalorder %s7264_s6, %s7257_s8 }
 0x1b2   : > { %p7260_p6 = pnand %p7258_p4, %p7573_p7 }
 0x1b3   : > { %p7267_p11 = por %p7266_p10, %p7265_p9 }
 0x1b4   : > { %p7261_p8 = pneg %p7260_p6 }
 0x1b6   : > { %p7268_p12 = pnand %p7267_p11, %p7261_p8 }
 0x1b8   : > { %7271 = shalt.err (!%p7268_p12)
}
 0x1b9   : > { %6386 = dma.hbm_to_vmem [thread:$0]  (!%p7557_p5), %s8544_s18, 16, %s812_s28, [#allocation32]  }
 0x1ba   : > { %s7398_s29 = smov [#allocation36]   ;;  %s7399_s2 = smov [#allocation37]  }
 0x1bb   : > { %s835_s7 = sshll.u32 %s7398_s29, 4  ;;  %s849_s11 = sshll.u32 %s7399_s2, 4  ;;  %s836_s7 = int_to_ptr.vmem [resolvable:$true] %s835_s7  ;;  %s850_s11 = int_to_ptr.vmem [resolvable:$true] %s849_s11 }
 0x1bc   : > { %s7272_s0 = scalar_lea.hbm %s8546_s20, 16 }
 0x1bd   : > { %p7273_p2 = scmp.ne.s32.totalorder %s8546_s20, %s7272_s0  ;;  %p7279_p0 = scmp.lt.u32.totalorder %s7272_s0, %s8546_s20 }
 0x1bf   : > { %p7275_p3 = pnand %p7273_p2, %p7573_p7 }
 0x1c1   : > { %p7276_p13 = pneg %p7275_p3 }
 0x1c3   : > { %p7281_p1 = pnand %p7279_p0, %p7276_p13 }
 0x1c5   : > { %7284 = shalt.err (!%p7281_p1)
}
 0x1c6   : > { %s7285_s28 = scalar_lea.vmem %s836_s7, 16  ;;  %s7292_s8 = scalar_lea.vmem %s836_s7, 32 }
 0x1c7   : > { %p7286_p4 = scmp.ne.s32.totalorder %s836_s7, %s7285_s28  ;;  %p7293_p9 = scmp.lt.s32.totalorder %s836_s7, %s836_s7 }
 0x1c8   : > { %p7294_p10 = scmp.lt.s32.totalorder %s7292_s8, %s7285_s28 }
 0x1c9   : > { %p7288_p6 = pnand %p7286_p4, %p7573_p7 }
 0x1ca   : > { %p7295_p11 = por %p7294_p10, %p7293_p9 }
 0x1cb   : > { %p7289_p8 = pneg %p7288_p6 }
 0x1cd   : > { %p7296_p12 = pnand %p7295_p11, %p7289_p8 }
 0x1cf   : > { %7299 = shalt.err (!%p7296_p12)
}
 0x1d0   : > { %6392 = dma.hbm_to_vmem [thread:$0]  (!%p7557_p5), %s8546_s20, 16, %s836_s7, [#allocation35]  }
 0x1d1   : > { %s7300_s2 = scalar_lea.hbm %s8548_s22, 16 }
 0x1d2   : > { %p7301_p2 = scmp.ne.s32.totalorder %s8548_s22, %s7300_s2  ;;  %p7307_p0 = scmp.lt.u32.totalorder %s7300_s2, %s8548_s22 }
 0x1d4   : > { %p7303_p3 = pnand %p7301_p2, %p7573_p7 }
 0x1d6   : > { %p7304_p13 = pneg %p7303_p3 }
 0x1d8   : > { %p7309_p1 = pnand %p7307_p0, %p7304_p13 }
 0x1da   : > { %7312 = shalt.err (!%p7309_p1)
}
 0x1db   : > { %s7313_s3 = scalar_lea.vmem %s850_s11, 16  ;;  %s7320_s7 = scalar_lea.vmem %s850_s11, 32 }
 0x1dc   : > { %p7314_p4 = scmp.ne.s32.totalorder %s850_s11, %s7313_s3  ;;  %p7321_p9 = scmp.lt.s32.totalorder %s850_s11, %s850_s11 }
 0x1dd   : > { %p7322_p10 = scmp.lt.s32.totalorder %s7320_s7, %s7313_s3 }
 0x1de   : > { %p7316_p6 = pnand %p7314_p4, %p7573_p7 }
 0x1df   : > { %p7323_p11 = por %p7322_p10, %p7321_p9 }
 0x1e0   : > { %p7317_p8 = pneg %p7316_p6 }
 0x1e2   : > { %p7324_p12 = pnand %p7323_p11, %p7317_p8 }
 0x1e4   : > { %7327 = shalt.err (!%p7324_p12)
}
 0x1e5   : > { %6395 = dma.hbm_to_vmem [thread:$0]  (!%p7557_p5), %s8548_s22, 16, %s850_s11, [#allocation38]  }
 0x1e6   : > { %s8607_s28 = sld [smem:[#allocation51_spill]] }
 0x1ec   : > { %p8608_p2 = scmp.ne.s32.totalorder %s8607_s28, 0 }
 0x1ed   : > { %s8609_s8 = sld [smem:[#allocation50_spill]] (!%p8608_p2) }
 0x1ee   : > { %870 = sbr.rel (%p8608_p2) target bundleno = 3707 (0xe7b), region = 112 }
 0x1f3   : > { %p8610_p3 = scmp.eq.s32.totalorder (!%p8608_p2), %s8609_s8, 0 }
 0x1f5   : > { %7333 = dma.done.wait (%p8610_p3), [#allocation12], 3072   ;;  %p8611_p7 = pmov %p8610_p3 }
 0x1f6   : > { %p8612_p13 = pmov %p8610_p3 }
 0x1f7   : > { %7335 = vsyncadd (%p8611_p7), [#allocation12], 4294964224 }
 0x1f8   : > { %7337 = dma.done.wait (%p8612_p13), [#allocation14], 3088   ;;  %p8613_p0 = pmov %p8610_p3 }
 0x1fa   : > { %7339 = vsyncadd (%p8613_p0), [#allocation14], 4294964208  ;;  %p8614_p1 = pmov %p8613_p0 }
 0x1fb   : > { %p8615_p5 = pmov %p8613_p0 }
 0x1fc   : > { %7341 = dma.done.wait (%p8614_p1), [#allocation17], 144  }
 0x1fd   : > { %7343 = vsyncadd (%p8615_p5), [#allocation17], 4294967152  ;;  %p8616_p4 = pmov %p8613_p0 }
 0x1fe   : > { %p8617_p6 = pmov %p8613_p0 }
 0x1ff   : > { %7345 = dma.done.wait (%p8616_p4), [#allocation20], 3088  }
 0x200   : > { %7347 = vsyncadd (%p8617_p6), [#allocation20], 4294964208  ;;  %p8618_p8 = pmov %p8613_p0 }
 0x201   : > { %p8619_p9 = pmov %p8613_p0 }
 0x202   : > { %7349 = dma.done.wait (%p8618_p8), [#allocation23], 3088  }
 0x203   : > { %7351 = vsyncadd (%p8619_p9), [#allocation23], 4294964208  ;;  %p8620_p10 = pmov %p8613_p0 }
 0x204   : > { %p8621_p11 = pmov %p8613_p0 }
 0x205   : > { %7353 = dma.done.wait (%p8620_p10), [#allocation26], 4160  }
 0x206   : > { %7355 = vsyncadd (%p8621_p11), [#allocation26], 4294963136  ;;  %p8622_p12 = pmov %p8613_p0 }
 0x207   : > { %p8623_p2 = pmov %p8613_p0 }
 0x208   : > { %7357 = dma.done.wait (%p8622_p12), [#allocation29], 6160  }
 0x209   : > { %7359 = vsyncadd (%p8623_p2), [#allocation29], 4294961136  ;;  %p8624_p3 = pmov %p8613_p0 }
 0x20a   : > { %p8625_p7 = pmov %p8613_p0 }
 0x20b   : > { %7361 = dma.done.wait (%p8624_p3), [#allocation32], 3088  }
 0x20c   : > { %7363 = vsyncadd (%p8625_p7), [#allocation32], 4294964208  ;;  %p8626_p13 = pmov %p8613_p0 }
 0x20e   : > { %7365 = dma.done.wait (%p8626_p13), [#allocation35], 3088  }
 0x20f   : > { %7367 = vsyncadd (%p8613_p0), [#allocation35], 4294964208  ;;  %p8627_p1 = pmov %p8613_p0 }
 0x210   : > { %p8628_p5 = pmov %p8613_p0 }
 0x211   : > { %7369 = dma.done.wait (%p8627_p1), [#allocation38], 16  }
 0x212   : > { %7371 = vsyncadd (%p8628_p5), [#allocation38], 4294967280  ;;  %v7400_v0 = vmov 0.0   ;;  %vm7401_vm0 = vmmov 0   ;;  %v6468_v1 = vld [vmem:[#allocation11 + $0x40] sm:$0xff]   ;;  %v6471_v4 = vld [vmem:[#allocation11 + $0x48] sm:$0xff]  }
 0x213   : > { %6097 = vmatprep.subr.bf16.mxu1 %v7400_v0  ;;  %6113 = vmatprep.mubr.msk.bf16.mxu1 %vm7401_vm0, %v7400_v0  ;;  %v6469_v2 = vld [vmem:[#allocation11] sm:$0xff]   ;;  %v6472_v5 = vld [vmem:[#allocation11 + $0x8] sm:$0xff]   ;;  %vm1036_vm1 = vsmask.f32 256  ;;  %v6474_v7 = vld [vmem:[#allocation11 + $0x50] sm:$0xff]   ;;  %p1014_p4 = scmp.lt.s32.totalorder %s8609_s8, 1 }
 0x214   : > { %5762 = vmatprep.subr.bf16.mxu0 %v6468_v1  ;;  %v6470_v3 = vld [vmem:[#allocation11 + $0x80] sm:$0xff]   ;;  %v6473_v6 = vld [vmem:[#allocation11 + $0x88] sm:$0xff]   ;;  %v6475_v8 = vld [vmem:[#allocation11 + $0x10] sm:$0xff]   ;;  %vm1035_vm2 = vcmask 1040384   ;;  %vm1063_vm3 = vsmask.f32 7966 }
 0x215   : > { %5763 = vmatpush3.bf16.msra.mxu0 %v6469_v2  ;;  %6098 = vmatpush3.bf16.msra.mxu1 %v6470_v3  ;;  %v6476_v9 = vld [vmem:[#allocation11 + $0x90] sm:$0xff]   ;;  %v6477_v10 = vld [vmem:[#allocation11 + $0x58] sm:$0xff]   ;;  %v6480_v13 = vld [vmem:[#allocation11 + $0x60] sm:$0xff]   ;;  %s8659_s8 = smov (!%p1014_p4, %s8609_s8), 1  ;;  %vm1062_vm4 = vcmask 1047559   ;;  %s8633_s6 = sld [smem:[#allocation52_spill]] }
 0x216   : > { %5764 = vmatprep.subr.bf16.mxu0 %v6471_v4  ;;  %6099 = vmatprep.subr.bf16.mxu1 %v7400_v0  ;;  %v6478_v11 = vld [vmem:[#allocation11 + $0x18] sm:$0xff]   ;;  %v6481_v14 = vld [vmem:[#allocation11 + $0x20] sm:$0xff]   ;;  %vm8018_vm5 = vmand %vm1035_vm2, %vm1036_vm1  ;;  %vm1055_vm6 = vsmask.f32 7938  ;;  %s5750_s25 = sshll.u32 %s8659_s8, 3  ;;  %vm1054_vm9 = vcmask 1047552  }
 0x217   : > { %v6479_v12 = vld [vmem:[#allocation11 + $0x98] sm:$0xff]   ;;  %v6482_v15 = vld [vmem:[#allocation11 + $0xa0] sm:$0xff]   ;;  %v6483_v17 = vld [vmem:[#allocation11 + $0x68] sm:$0xff]   ;;  %vm1071_vm8 = vsmask.f32 7424  ;;  %s8638_s2 = sld [smem:[#allocation54_spill]] }
 0x218   : > { %vm8024_vm7 = vmand %vm1062_vm4, %vm1063_vm3  ;;  %v6484_v19 = vld [vmem:[#allocation11 + $0x28] sm:$0xff]   ;;  %v6486_v21 = vld [vmem:[#allocation11 + $0x70] sm:$0xff]   ;;  %s8639_s0 = sld [smem:[#allocation58_spill]]  ;;  %vm1684_vm12 = vcmask 130048   ;;  %s8641_s11 = sld [smem:[#allocation59_spill]]  ;;  %vm2052_vm13 = vcmask 1044484  }
 0x219   : > { %5765 = vmatpush3.bf16.msra.mxu0 %v6472_v5  ;;  %6100 = vmatpush3.bf16.msra.mxu1 %v6473_v6  ;;  %v6485_v20 = vld [vmem:[#allocation11 + $0xa8] sm:$0xff]   ;;  %v6487_v22 = vld [vmem:[#allocation11 + $0x30] sm:$0xff]   ;;  %v6489_v25 = vld [vmem:[#allocation11 + $0x78] sm:$0xff]   ;;  %vm2053_vm14 = vsmask.f32 4352  ;;  %vm2083_vm2 = vcmask 1043459  }
 0x21a   : > { %5766 = vmatprep.subr.bf16.mxu0 %v6474_v7  ;;  %6101 = vmatprep.subr.bf16.mxu1 %v7400_v0  ;;  %v6488_v23 = vld [vmem:[#allocation11 + $0xb0] sm:$0xff]   ;;  %v6490_v26 = vld [vmem:[#allocation11 + $0x38] sm:$0xff]   ;;  %v1038_v29 = vld [vmem:[#allocation2] sm:$0x1]  ;;  %vm2084_vm3 = vsmask.f32 7950 }
 0x21b   : > { %s1018_s4 = scalar_lea.vmem %s8633_s6, %s5750_s25  ;;  %v1065_v30 = vld [vmem:[#allocation2 + $0x10] sm:$0x80]  ;;  %v1039_v31 = vsel %vm8018_vm5, 0, %v1038_v29  ;;  %vm8039_vm10 = vmand %vm1054_vm9, %vm1055_vm6  ;;  %v6493_v37 = vld [vmem:[#allocation13 + $0x40] sm:$0xff]   ;;  %s8648_s12 = sld [smem:[#allocation67_spill]] }
 0x21c   : > { %v6491_v24 = vld [vmem:[%s1018_s4] sm:$0xff]   ;;  %v1066_v33 = vsel %vm8024_vm7, 0, %v1065_v30  ;;  %v6492_v36 = vld [vmem:[#allocation11 + $0xb8] sm:$0xff]   ;;  %1040 = vst [vmem:[#allocation2] sm:$0x1] %v1039_v31  ;;  %vm8048_vm11 = vmand %vm1054_vm9, %vm1071_vm8  ;;  %s8640_s4 = sld [smem:[#allocation66_spill]] }
 0x21d   : > { %5767 = vmatpush3.bf16.msra.mxu0 %v6475_v8  ;;  %6102 = vmatpush3.bf16.msra.mxu1 %v6476_v9  ;;  %v1047_v27 = vshrl.u32 %v6491_v24, 16  ;;  %v1050_v28 = vshll.u32 %v6491_v24, 16  ;;  %1067 = vst [vmem:[#allocation2 + $0x10] sm:$0x80] %v1066_v33  ;;  %v6494_v41 = vld [vmem:[#allocation13] sm:$0xff]   ;;  %v6496_v47 = vld [vmem:[#allocation13 + $0x48] sm:$0xff]   ;;  %vm2054_vm15 = vmand %vm2052_vm13, %vm2053_vm14 }
 0x21e   : > { %5768 = vmatprep.subr.bf16.mxu0 %v6477_v10  ;;  %6103 = vmatprep.subr.bf16.mxu1 %v7400_v0  ;;  %v6495_v42 = vld [vmem:[#allocation13 + $0x80] sm:$0xff]   ;;  %v6497_v48 = vld [vmem:[#allocation13 + $0x8] sm:$0xff]   ;;  %v6499_v50 = vld [vmem:[#allocation13 + $0x50] sm:$0xff]   ;;  %s8655_s9 = sld [smem:[#allocation65_spill]]  ;;  %s8656_s6 = sld [smem:[#allocation68_spill]] }
 0x21f   : > { %1310 = vmatprep.mubr.bf16.mxu0 %v6491_v24  ;;  %v1049_v34 = vrot.slane %v1047_v27, 7  ;;  %v1068_v35 = vrot.slane %v1050_v28, 1  ;;  %v6498_v49 = vld [vmem:[#allocation13 + $0x88] sm:$0xff]   ;;  %v6500_v51 = vld [vmem:[#allocation13 + $0x10] sm:$0xff]   ;;  %v6502_v53 = vld [vmem:[#allocation13 + $0x58] sm:$0xff]  }
 0x220   : > { %v6501_v52 = vld [vmem:[#allocation13 + $0x90] sm:$0xff]   ;;  %v6503_v54 = vld [vmem:[#allocation13 + $0x18] sm:$0xff]   ;;  %v6505_v56 = vld [vmem:[#allocation13 + $0x60] sm:$0xff]  }
 0x221   : > { %5769 = vmatpush3.bf16.msra.mxu0 %v6478_v11  ;;  %6104 = vmatpush3.bf16.msra.mxu1 %v6479_v12  ;;  %v1052_v39 = vor.u32 %v1050_v28, %v1049_v34  ;;  %v1069_v40 = vor.u32 %v1068_v35, %v1047_v27  ;;  %v6504_v55 = vld [vmem:[#allocation13 + $0x98] sm:$0xff]   ;;  %v6506_v57 = vld [vmem:[#allocation13 + $0x20] sm:$0xff]   ;;  %v6508_v59 = vld [vmem:[#allocation13 + $0x68] sm:$0xff]  }
 0x222   : > { %5770 = vmatprep.subr.bf16.mxu0 %v6480_v13  ;;  %6105 = vmatprep.subr.bf16.mxu1 %v7400_v0  ;;  %v6507_v58 = vld [vmem:[#allocation13 + $0xa0] sm:$0xff]   ;;  %v6509_v60 = vld [vmem:[#allocation13 + $0x28] sm:$0xff]   ;;  %v1363_v62 = vld [vmem:[#allocation3] sm:$0x1]  ;;  %s1023_s27 = scalar_lea.vmem %s8640_s4, %s5750_s25 }
 0x223   : > { %v1057_v43 = vld [vmem:[#allocation2] sm:$0xff]  ;;  %v1378_v63 = vld [vmem:[#allocation3 + $0x10] sm:$0x80]  ;;  %v1364_v1 = vsel %vm8018_vm5, 0, %v1363_v62  ;;  %v6514_v6 = vld [vmem:[#allocation13 + $0x78] sm:$0xff]  }
 0x224   : > { %v1073_v44 = vld [vmem:[#allocation2 + $0x10] sm:$0xff]  ;;  %v1058_v45 = vsel %vm8039_vm10, %v1052_v39, %v1057_v43  ;;  %v6510_v61 = vld [vmem:[#allocation13 + $0xa8] sm:$0xff]   ;;  %v1379_v2 = vsel %vm8024_vm7, 0, %v1378_v63  ;;  %1365 = vst [vmem:[#allocation3] sm:$0x1] %v1364_v1  ;;  %vm2055_vm1 = vmor %vm2054_vm15, %vm8018_vm5 }
 0x225   : > { %5771 = vmatpush3.bf16.msra.mxu0 %v6481_v14  ;;  %6106 = vmatpush3.bf16.msra.mxu1 %v6482_v15  ;;  %v1074_v46 = vsel %vm8048_vm11, %v1069_v40, %v1073_v44  ;;  %1059 = vst [vmem:[#allocation2] sm:$0xff] %v1058_v45  ;;  %v6511_v3 = vld [vmem:[#allocation13 + $0x70] sm:$0xff]   ;;  %1380 = vst [vmem:[#allocation3 + $0x10] sm:$0x80] %v1379_v2  ;;  %v6515_v7 = vld [vmem:[#allocation13 + $0x38] sm:$0xff]  }
 0x226   : > { %5772 = vmatprep.subr.bf16.mxu0 %v6483_v17  ;;  %6107 = vmatprep.subr.bf16.mxu1 %v7400_v0  ;;  %1075 = vst [vmem:[#allocation2 + $0x10] sm:$0xff] %v1074_v46  ;;  %v6512_v4 = vld [vmem:[#allocation13 + $0x30] sm:$0xff]   ;;  %v6516_v8 = vld [vmem:[#allocation13 + $0xb8] sm:$0xff]   ;;  %v5387_v12 = vld [vmem:[%s8638_s2] ss:$0 sm:$0xff]  ;;  %s5384_s2 = sshll.u32 %s8659_s8, 2 }
 0x227   : > { %v6513_v5 = vld [vmem:[#allocation13 + $0xb0] sm:$0xff]   ;;  %v6522_v32 = vld [vmem:[%s8639_s0 + $0x94] ss:$8 sps:$4 sm:$0xff]   ;;  %vm8254_vm4 = vmand %vm2083_vm2, %vm2084_vm3  ;;  %s1027_s26 = scalar_lea.vmem %s8648_s12, %s5384_s2  ;;  %s1031_s4 = scalar_lea.vmem %s8656_s6, %s5384_s2 }
 0x228   : > { %v6520_v38 = vld [vmem:[%s8639_s0 + $0x90] ss:$8 sps:$4 sm:$0xff]   ;;  %v6525_v43 = vld [vmem:[%s8639_s0 + $0xa4] ss:$8 sps:$4 sm:$0xff]   ;;  %v6523_v44 = vld [vmem:[%s8639_s0 + $0xa0] ss:$8 sps:$4 sm:$0xff]  }
 0x229   : > { %5773 = vmatpush3.bf16.msra.mxu0 %v6484_v19  ;;  %6108 = vmatpush3.bf16.msra.mxu1 %v6485_v20  ;;  %vm2086_vm9 = vmor %vm8024_vm7, %vm8254_vm4  ;;  %v6590_v18 = vld [vmem:[%s8641_s11 + $0x30] sm:$0xff]   ;;  %vm2072_vm7 = vcmask 1043456  }
 0x22a   : > { %5774 = vmatprep.subr.bf16.mxu0 %v6486_v21  ;;  %6109 = vmatprep.subr.bf16.mxu1 %v7400_v0  ;;  %vm8301_vm13 = vmand %vm2072_vm7, %vm1055_vm6  ;;  %v6801_v16 = vld [vmem:[#allocation34 + $0x60] sm:$0xff]  }
 0x22b   : > { %v1374_v34 = vld [vmem:[#allocation3] sm:$0xff] }
 0x22c   : > { %v1384_v35 = vld [vmem:[#allocation3 + $0x10] sm:$0xff] }
 0x22d   : > { %5775 = vmatpush3.bf16.msra.mxu0 %v6487_v22  ;;  %6110 = vmatpush3.bf16.msra.mxu1 %v6488_v23 }
 0x22e   : > { %5776 = vmatprep.subr.bf16.mxu0 %v6489_v25  ;;  %6111 = vmatprep.subr.bf16.mxu1 %v7400_v0 }
 0x231   : > { %5777 = vmatpush3.bf16.msra.mxu0 %v6490_v26  ;;  %6112 = vmatpush3.bf16.msra.mxu1 %v6492_v36 }
 0x232   : > { %5793 = vmatprep.subr.bf16.mxu0 %v6493_v37  ;;  %6117 = vmatprep.subr.bf16.mxu1 %v7400_v0 }
 0x234   : > { %1311 = vmatmul.mubr.bf16.vlgmr.msra.gmra.mrb[0].mxu0 %v1058_v45  ;;  %6114 = vmatmul.mubr.bf16.vlgmr.msra.gmra.mrb[0].mxu1 %v1074_v46  ;;  %v6528_v45 = vld [vmem:[%s8639_s0 + $0xb4] ss:$8 sps:$4 sm:$0xff]   ;;  %v6526_v46 = vld [vmem:[%s8639_s0 + $0xb0] ss:$8 sps:$4 sm:$0xff]  }
 0x235   : > { %5794 = vmatpush3.bf16.msra.mxu0 %v6494_v41  ;;  %6118 = vmatpush3.bf16.msra.mxu1 %v6495_v42  ;;  %v6517_v41 = vld [vmem:[%s8639_s0 + $0x80] ss:$8 sps:$4 sm:$0xff]   ;;  %v6519_v42 = vld [vmem:[%s8639_s0 + $0x84] ss:$8 sps:$4 sm:$0xff]  }
 0x236   : > { %6119 = vmatprep.subr.bf16.mxu1 %v7400_v0  ;;  %6133 = vmatprep.mubr.msk.bf16.mxu1 %vm7401_vm0, %v7400_v0 }
 0x237   : > { %5795 = vmatprep.subr.bf16.mxu0 %v6496_v47  ;;  %v6531_v47 = vld [vmem:[%s8639_s0 + $0xc4] ss:$8 sps:$4 sm:$0xff]  }
 0x239   : > { %5796 = vmatpush3.bf16.msra.mxu0 %v6497_v48  ;;  %6120 = vmatpush3.bf16.msra.mxu1 %v6498_v49  ;;  %v6529_v48 = vld [vmem:[%s8639_s0 + $0xc0] ss:$8 sps:$4 sm:$0xff]   ;;  %v6534_v49 = vld [vmem:[%s8639_s0 + $0xd4] ss:$8 sps:$4 sm:$0xff]  }
 0x23a   : > { %6121 = vmatprep.subr.bf16.mxu1 %v7400_v0  ;;  %5797 = vmatprep.subr.bf16.mxu0 %v6499_v50  ;;  %v6532_v50 = vld [vmem:[%s8639_s0 + $0xd0] ss:$8 sps:$4 sm:$0xff]  }
 0x23d   : > { %5798 = vmatpush3.bf16.msra.mxu0 %v6500_v51  ;;  %6122 = vmatpush3.bf16.msra.mxu1 %v6501_v52 }
 0x23e   : > { %6123 = vmatprep.subr.bf16.mxu1 %v7400_v0  ;;  %5799 = vmatprep.subr.bf16.mxu0 %v6502_v53  ;;  %v5412_v53 = vld [vmem:[#allocation15] ss:$0 sm:$0xff] }
 0x241   : > { %5800 = vmatpush3.bf16.msra.mxu0 %v6503_v54  ;;  %6124 = vmatpush3.bf16.msra.mxu1 %v6504_v55 }
 0x242   : > { %6125 = vmatprep.subr.bf16.mxu1 %v7400_v0  ;;  %5801 = vmatprep.subr.bf16.mxu0 %v6505_v56 }
 0x245   : > { %5802 = vmatpush3.bf16.msra.mxu0 %v6506_v57  ;;  %6126 = vmatpush3.bf16.msra.mxu1 %v6507_v58 }
 0x246   : > { %6127 = vmatprep.subr.bf16.mxu1 %v7400_v0  ;;  %5803 = vmatprep.subr.bf16.mxu0 %v6508_v59 }
 0x249   : > { %5804 = vmatpush3.bf16.msra.mxu0 %v6509_v60  ;;  %6128 = vmatpush3.bf16.msra.mxu1 %v6510_v61 }
 0x24a   : > { %6129 = vmatprep.subr.bf16.mxu1 %v7400_v0  ;;  %5805 = vmatprep.subr.bf16.mxu0 %v6511_v3 }
 0x24d   : > { %5806 = vmatpush3.bf16.msra.mxu0 %v6512_v4  ;;  %6130 = vmatpush3.bf16.msra.mxu1 %v6513_v5 }
 0x24e   : > { %6131 = vmatprep.subr.bf16.mxu1 %v7400_v0  ;;  %5807 = vmatprep.subr.bf16.mxu0 %v6514_v6  ;;  %v1683_v6 = vld [vmem:[#allocation16] sm:$0xf] }
 0x251   : > { %5808 = vmatpush3.bf16.msra.mxu0 %v6515_v7  ;;  %6132 = vmatpush3.bf16.msra.mxu1 %v6516_v8  ;;  %v1730_v7 = vld [vmem:[#allocation16 + $0x4] sm:$0xf]  ;;  %v6537_v8 = vld [vmem:[%s8639_s0 + $0xe4] ss:$8 sps:$4 sm:$0xff]  }
 0x252   : > { %6137 = vmatprep.subr.bf16.mxu1 %v7400_v0  ;;  %1888 = vmatprep.subr.bf16.mxu0 %v6519_v42  ;;  %v6558_v42 = vld [vmem:[%s8639_s0 + $0x54] ss:$8 sps:$4 sm:$0xff]  }
 0x307   : > { %v5778_v9 = vpop.f32.mrb[0].mxu0  ;;  %v1353_v10 = vpop.f32.mrb[0].mxu1 }
 0x308   : > { %v5779_v11 = vpop.f32.mrb[1].mxu0  ;;  %v6115_v13 = vpop.f32.mrb[1].mxu1 }
 0x309   : > { %v5780_v14 = vadd.f32 %v5779_v11, %v5778_v9  ;;  %v5781_v15 = vpop.f32.mrb[2].mxu0  ;;  %v1356_v17 = vpop.f32.mrb[2].mxu1  ;;  %v6535_v9 = vld [vmem:[%s8639_s0 + $0xe0] ss:$8 sps:$4 sm:$0xff]   ;;  %v6540_v11 = vld [vmem:[%s8639_s0 + $0xf4] ss:$8 sps:$4 sm:$0xff]  }
 0x30a   : > { %v5782_v19 = vpop.f32.mrb[3].mxu0  ;;  %v6116_v20 = vpop.f32.mrb[3].mxu1  ;;  %v7402_v13 = vmov 0  }
 0x30b   : > { %v1313_v21 = vadd.f32 %v5780_v14, %v5387_v12  ;;  %v5783_v22 = vadd.f32 %v5782_v19, %v5781_v15  ;;  %v6565_v14 = vld [vmem:[%s8641_s11 + $0x40] sm:$0xff]   ;;  %v6570_v19 = vld [vmem:[%s8641_s11 + $0x8] sm:$0xff]   ;;  %v6572_v20 = vld [vmem:[%s8641_s11 + $0x50] sm:$0xff]  }
 0x30c   : > { %v6566_v15 = vld [vmem:[%s8641_s11] sm:$0xff]  }
 0x30d   : > { %v1354_v23 = vadd.f32 %v1353_v10, %v1313_v21  ;;  %v1316_v24 = vadd.f32 %v5783_v22, %v5387_v12  ;;  %v6538_v10 = vld [vmem:[%s8639_s0 + $0xf0] ss:$8 sps:$4 sm:$0xff]   ;;  %v6543_v12 = vld [vmem:[%s8639_s0 + $0x4] ss:$8 sps:$4 sm:$0xff]  }
 0x30e   : > { %v6574_v21 = vld [vmem:[%s8641_s11 + $0x10] sm:$0xff]  }
 0x30f   : > { %v1357_v25 = vadd.f32 %v1356_v17, %v1316_v24  ;;  %v1360_v26 = vmax.f32 %v1354_v23, 0.0  ;;  %v6568_v17 = vld [vmem:[%s8641_s11 + $0x48] sm:$0xff]  }
 0x311   : > { %v1361_v27 = vmax.f32 %v1357_v25, 0.0 }
 0x313   : > { %v1362_v28 = vpack.c.bf16 %v1361_v27, %v1360_v26  ;;  %v6541_v27 = vld [vmem:[%s8639_s0] ss:$8 sps:$4 sm:$0xff]  }
 0x315   : > { %v1367_v29 = vshrl.u32 %v1362_v28, 16  ;;  %v1370_v30 = vshll.u32 %v1362_v28, 16  ;;  %1621 = vmatprep.mubr.bf16.mxu0 %v1362_v28 }
 0x317   : > { %v1369_v31 = vrot.slane %v1367_v29, 7  ;;  %v1381_v33 = vrot.slane %v1370_v30, 1 }
 0x319   : > { %v1372_v36 = vor.u32 %v1370_v30, %v1369_v31  ;;  %v1382_v37 = vor.u32 %v1381_v33, %v1367_v29  ;;  %v6546_v30 = vld [vmem:[%s8639_s0 + $0x14] ss:$8 sps:$4 sm:$0xff]  }
 0x31b   : > { %v1375_v39 = vsel %vm8039_vm10, %v1372_v36, %v1374_v34  ;;  %v1385_v40 = vsel %vm8048_vm11, %v1382_v37, %v1384_v35  ;;  %v6544_v34 = vld [vmem:[%s8639_s0 + $0x10] ss:$8 sps:$4 sm:$0xff]   ;;  %v6549_v35 = vld [vmem:[%s8639_s0 + $0x24] ss:$8 sps:$4 sm:$0xff]   ;;  %v6547_v36 = vld [vmem:[%s8639_s0 + $0x20] ss:$8 sps:$4 sm:$0xff]  }
 0x31c   : > { %1376 = vst [vmem:[#allocation3] sm:$0xff] %v1375_v39  ;;  %1386 = vst [vmem:[#allocation3 + $0x10] sm:$0xff] %v1385_v40  ;;  %1622 = vmatmul.mubr.bf16.vlgmr.msra.gmra.mrb[4].mxu0 %v1375_v39  ;;  %6134 = vmatmul.mubr.bf16.vlgmr.msra.gmra.mrb[4].mxu1 %v1385_v40  ;;  %v6552_v37 = vld [vmem:[%s8639_s0 + $0x34] ss:$8 sps:$4 sm:$0xff]   ;;  %v6550_v39 = vld [vmem:[%s8639_s0 + $0x30] ss:$8 sps:$4 sm:$0xff]  }
 0x31d   : > { %6139 = vmatprep.mubr.msk.bf16.mxu1 %vm7401_vm0, %v7400_v0  ;;  %1889 = vmatpush1.bf16.msra.mxu0 %v6517_v41  ;;  %v6555_v40 = vld [vmem:[%s8639_s0 + $0x44] ss:$8 sps:$4 sm:$0xff]   ;;  %v6553_v41 = vld [vmem:[%s8639_s0 + $0x40] ss:$8 sps:$4 sm:$0xff]   ;;  %vm2074_vm10 = vcmask 1047556  }
 0x31e   : > { %1890 = vmatprep.subr.bf16.mxu0 %v6522_v32  ;;  %1920 = vmatprep.mubr.bf16.mxu0 %v7402_v13  ;;  %v6556_v32 = vld [vmem:[%s8639_s0 + $0x50] ss:$8 sps:$4 sm:$0xff]   ;;  %vm2075_vm11 = vsmask.f32 7954 }
 0x31f   : > { %vm2076_vm14 = vmand %vm2074_vm10, %vm2075_vm11 }
 0x320   : > { %vm2077_vm2 = vmor %vm2076_vm14, %vm8301_vm13  ;;  %vm3696_vm14 = vsmask.f32 7942 }
 0x321   : > { %1891 = vmatpush1.bf16.msra.mxu0 %v6520_v38  ;;  %v6561_v38 = vld [vmem:[%s8639_s0 + $0x64] ss:$8 sps:$4 sm:$0xff]  }
 0x322   : > { %1892 = vmatprep.subr.bf16.mxu0 %v6525_v43  ;;  %v6559_v43 = vld [vmem:[%s8639_s0 + $0x60] ss:$8 sps:$4 sm:$0xff]  }
 0x325   : > { %1893 = vmatpush1.bf16.msra.mxu0 %v6523_v44  ;;  %v6564_v44 = vld [vmem:[%s8639_s0 + $0x74] ss:$8 sps:$4 sm:$0xff]  }
 0x326   : > { %1894 = vmatprep.subr.bf16.mxu0 %v6528_v45  ;;  %v6562_v45 = vld [vmem:[%s8639_s0 + $0x70] ss:$8 sps:$4 sm:$0xff]  }
 0x329   : > { %1895 = vmatpush1.bf16.msra.mxu0 %v6526_v46  ;;  %v6567_v46 = vld [vmem:[%s8641_s11 + $0x140] sm:$0xff]  }
 0x32a   : > { %1896 = vmatprep.subr.bf16.mxu0 %v6531_v47  ;;  %v6569_v47 = vld [vmem:[%s8641_s11 + $0x100] sm:$0xff]  }
 0x32d   : > { %1897 = vmatpush1.bf16.msra.mxu0 %v6529_v48 }
 0x32e   : > { %1898 = vmatprep.subr.bf16.mxu0 %v6534_v49  ;;  %v6571_v49 = vld [vmem:[%s8641_s11 + $0x148] sm:$0xff]  }
 0x331   : > { %1899 = vmatpush1.bf16.msra.mxu0 %v6532_v50  ;;  %v6573_v50 = vld [vmem:[%s8641_s11 + $0x108] sm:$0xff]  }
 0x332   : > { %1900 = vmatprep.subr.bf16.mxu0 %v6537_v8  ;;  %v6591_v8 = vld [vmem:[%s8641_s11 + $0x170] sm:$0xff]  }
 0x335   : > { %1901 = vmatpush1.bf16.msra.mxu0 %v6535_v9  ;;  %v6592_v9 = vld [vmem:[%s8641_s11 + $0x78] sm:$0xff]  }
 0x336   : > { %1902 = vmatprep.subr.bf16.mxu0 %v6540_v11  ;;  %v6594_v11 = vld [vmem:[%s8641_s11 + $0x38] sm:$0xff]  }
 0x339   : > { %1903 = vmatpush1.bf16.msra.mxu0 %v6538_v10  ;;  %v6593_v10 = vld [vmem:[%s8641_s11 + $0x130] sm:$0xff]  }
 0x33a   : > { %2009 = vmatprep.subr.bf16.mxu0 %v6543_v12  ;;  %v6595_v12 = vld [vmem:[%s8641_s11 + $0x178] sm:$0xff]  }
 0x3ef   : > { %v5809_v51 = vpop.f32.mrb[4].mxu0  ;;  %v1664_v52 = vpop.f32.mrb[4].mxu1 }
 0x3f0   : > { %v5810_v54 = vpop.f32.mrb[5].mxu0  ;;  %v6135_v55 = vpop.f32.mrb[5].mxu1 }
 0x3f1   : > { %v5811_v56 = vadd.f32 %v5810_v54, %v5809_v51  ;;  %v5812_v57 = vpop.f32.mrb[6].mxu0  ;;  %v1667_v58 = vpop.f32.mrb[6].mxu1  ;;  %v6575_v51 = vld [vmem:[%s8641_s11 + $0x150] sm:$0xff]   ;;  %v6578_v54 = vld [vmem:[%s8641_s11 + $0x18] sm:$0xff]  }
 0x3f2   : > { %v5813_v59 = vpop.f32.mrb[7].mxu0  ;;  %v6136_v60 = vpop.f32.mrb[7].mxu1  ;;  %v6579_v55 = vld [vmem:[%s8641_s11 + $0x158] sm:$0xff]  }
 0x3f3   : > { %v1624_v61 = vadd.f32 %v5811_v56, %v5412_v53  ;;  %v5814_v62 = vadd.f32 %v5813_v59, %v5812_v57  ;;  %v6580_v56 = vld [vmem:[%s8641_s11 + $0x60] sm:$0xff]   ;;  %v6581_v57 = vld [vmem:[%s8641_s11 + $0x118] sm:$0xff]   ;;  %v6584_v60 = vld [vmem:[%s8641_s11 + $0x68] sm:$0xff]  }
 0x3f4   : > { %v6583_v59 = vld [vmem:[%s8641_s11 + $0x160] sm:$0xff]  }
 0x3f5   : > { %v1665_v63 = vadd.f32 %v1664_v52, %v1624_v61  ;;  %v1627_v1 = vadd.f32 %v5814_v62, %v5412_v53  ;;  %v6576_v52 = vld [vmem:[%s8641_s11 + $0x58] sm:$0xff]   ;;  %v6577_v53 = vld [vmem:[%s8641_s11 + $0x110] sm:$0xff]   ;;  %v6585_v61 = vld [vmem:[%s8641_s11 + $0x120] sm:$0xff]  }
 0x3f6   : > { %v2056_v62 = vld [vmem:[#allocation4] sm:$0x11] }
 0x3f7   : > { %v1668_v2 = vadd.f32 %v1667_v58, %v1627_v1  ;;  %v1671_v3 = vmax.f32 %v1665_v63, 0.0  ;;  %v6582_v58 = vld [vmem:[%s8641_s11 + $0x20] sm:$0xff]   ;;  %v6586_v63 = vld [vmem:[%s8641_s11 + $0x28] sm:$0xff]   ;;  %v2057_v1 = vsel %vm2055_vm1, 0, %v2056_v62  ;;  %vm2097_vm1 = vmand %vm2074_vm10, %vm1071_vm8  ;;  %vm3287_vm8 = vcmask 64512  }
 0x3f8   : > { %2058 = vst [vmem:[#allocation4] sm:$0x11] %v2057_v1  ;;  %v6617_v62 = vld [vmem:[#allocation19 + $0x8] sm:$0xff]   ;;  %v6619_v1 = vld [vmem:[#allocation19 + $0x50] sm:$0xff]  }
 0x3f9   : > { %v1672_v4 = vmax.f32 %v1668_v2, 0.0  ;;  %v6736_v2 = vld [vmem:[#allocation28 + $0x28] sm:$0xff]  }
 0x3fb   : > { %v1673_v5 = vpack.c.bf16 %v1672_v4, %v1671_v3  ;;  %v2087_v3 = vld [vmem:[#allocation4 + $0x10] sm:$0x88]  ;;  %v6587_v4 = vld [vmem:[%s8641_s11 + $0x168] sm:$0xff]  }
 0x3fd   : > { %5761 = vst [vmem:[%s1023_s27] sm:$0xff] %v1673_v5   ;;  %6138 = vmatpush3.bf16.msra.mxu1 %v1673_v5 }
 0x3fe   : > { %6143 = vmatprep.subr.bf16.mxu1 %v7400_v0 }
 0x400   : > { %6140 = vmatmul.mubr.msk.bf16.vlgmr.msra.gmra.mrb[8].mxu1 %vm1684_vm12, %v1683_v6  ;;  %v6588_v6 = vld [vmem:[%s8641_s11 + $0x70] sm:$0xff]  }
 0x401   : > { %6144 = vmatpush3.bf16.msra.mxu1 %v1673_v5  ;;  %6145 = vmatprep.mubr.msk.bf16.mxu1 %vm7401_vm0, %v7400_v0  ;;  %v2088_v5 = vsel %vm2086_vm9, 0, %v2087_v3  ;;  %v6620_v3 = vld [vmem:[#allocation19 + $0x10] sm:$0xff]   ;;  %vm3659_vm9 = vcmask 1042434  }
 0x402   : > { %5828 = vmatprep.subr.bf16.mxu1 %v6565_v14  ;;  %2089 = vst [vmem:[#allocation4 + $0x10] sm:$0x88] %v2088_v5  ;;  %v6596_v14 = vld [vmem:[%s8641_s11 + $0xc0] sm:$0xff]   ;;  %v2639_v5 = vld [vmem:[#allocation5] sm:$0x1] }
 0x408   : > { %6146 = vmatmul.mubr.msk.bf16.vlgmr.msra.gmra.mrb[12].mxu1 %vm1684_vm12, %v1730_v7  ;;  %v6589_v7 = vld [vmem:[%s8641_s11 + $0x128] sm:$0xff]   ;;  %vm2095_vm12 = vsmask.f32 3328 }
 0x409   : > { %5829 = vmatpush3.bf16.msra.mxu1 %v6566_v15  ;;  %v6597_v15 = vld [vmem:[%s8641_s11 + $0x138] sm:$0xff]   ;;  %vm8307_vm15 = vmand %vm2072_vm7, %vm2095_vm12 }
 0x40a   : > { %5830 = vmatprep.subr.bf16.mxu1 %v6568_v17  ;;  %vm2098_vm3 = vmor %vm2097_vm1, %vm8307_vm15 }
 0x40d   : > { %5831 = vmatpush3.bf16.msra.mxu1 %v6570_v19 }
 0x40e   : > { %5832 = vmatprep.subr.bf16.mxu1 %v6572_v20 }
 0x411   : > { %5833 = vmatpush3.bf16.msra.mxu1 %v6574_v21 }
 0x412   : > { %5834 = vmatprep.subr.bf16.mxu1 %v6576_v52  ;;  %v6608_v52 = vld [vmem:[%s8641_s11 + $0xa8] sm:$0xff]  }
 0x415   : > { %5835 = vmatpush3.bf16.msra.mxu1 %v6578_v54  ;;  %v6610_v54 = vld [vmem:[%s8641_s11 + $0xb0] sm:$0xff]  }
 0x416   : > { %5836 = vmatprep.subr.bf16.mxu1 %v6580_v56  ;;  %v6612_v56 = vld [vmem:[%s8641_s11 + $0xb8] sm:$0xff]  }
 0x419   : > { %5837 = vmatpush3.bf16.msra.mxu1 %v6582_v58  ;;  %v6613_v58 = vld [vmem:[#allocation19 + $0x40] sm:$0xff]  }
 0x41a   : > { %5838 = vmatprep.subr.bf16.mxu1 %v6584_v60  ;;  %v6615_v60 = vld [vmem:[#allocation19 + $0x80] sm:$0xff]  }
 0x41d   : > { %5839 = vmatpush3.bf16.msra.mxu1 %v6586_v63  ;;  %v6618_v63 = vld [vmem:[#allocation19 + $0x88] sm:$0xff]  }
 0x41e   : > { %5840 = vmatprep.subr.bf16.mxu1 %v6588_v6  ;;  %v6622_v6 = vld [vmem:[#allocation19 + $0x58] sm:$0xff]  }
 0x421   : > { %5841 = vmatpush3.bf16.msra.mxu1 %v6590_v18  ;;  %v6623_v18 = vld [vmem:[#allocation19 + $0x18] sm:$0xff]  }
 0x422   : > { %5842 = vmatprep.subr.bf16.mxu1 %v6592_v9  ;;  %v2657_v9 = vld [vmem:[#allocation5 + $0x8] sm:$0x8] }
 0x425   : > { %5843 = vmatpush3.bf16.msra.mxu1 %v6594_v11  ;;  %v6625_v11 = vld [vmem:[#allocation19 + $0x60] sm:$0xff]  }
 0x426   : > { %5850 = vmatprep.subr.bf16.mxu1 %v6596_v14  ;;  %v6627_v14 = vld [vmem:[#allocation19 + $0xa0] sm:$0xff]  }
 0x4d3   : > { %v1722_v22 = vpop.f32.mrb[8].mxu1 }
 0x4d4   : > { %v6141_v23 = vpop.f32.mrb[9].mxu1  ;;  %v1728_v48 = vpack.c.bf16 %v1722_v22, %v1722_v22 }
 0x4d5   : > { %v1725_v24 = vpop.f32.mrb[10].mxu1 }
 0x4d6   : > { %v6142_v25 = vpop.f32.mrb[11].mxu1 }
 0x4db   : > { %v1768_v26 = vpop.f32.mrb[12].mxu1 }
 0x4dc   : > { %v1774_v28 = vpack.c.bf16 %v1768_v26, %v1768_v26  ;;  %v6147_v29 = vpop.f32.mrb[13].mxu1 }
 0x4dd   : > { %v1771_v31 = vpop.f32.mrb[14].mxu1 }
 0x4de   : > { %v6148_v33 = vpop.f32.mrb[15].mxu1  ;;  %1921 = vmatmul.mubr.bf16.vlgmr.msra.gmra.mrb[8].mxu0 %v1774_v28 }
 0x4df   : > { %2010 = vmatpush1.bf16.msra.mxu0 %v6541_v27  ;;  %2041 = vmatprep.mubr.bf16.mxu0 %v7402_v13 }
 0x4e0   : > { %2011 = vmatprep.subr.bf16.mxu0 %v6546_v30  ;;  %v2078_v30 = vld [vmem:[#allocation4] sm:$0xff] }
 0x4e3   : > { %2012 = vmatpush1.bf16.msra.mxu0 %v6544_v34  ;;  %v2099_v34 = vld [vmem:[#allocation4 + $0x10] sm:$0xff] }
 0x4e4   : > { %2013 = vmatprep.subr.bf16.mxu0 %v6549_v35 }
 0x4e7   : > { %2014 = vmatpush1.bf16.msra.mxu0 %v6547_v36 }
 0x4e8   : > { %2015 = vmatprep.subr.bf16.mxu0 %v6552_v37 }
 0x4eb   : > { %2016 = vmatpush1.bf16.msra.mxu0 %v6550_v39 }
 0x4ec   : > { %2017 = vmatprep.subr.bf16.mxu0 %v6555_v40  ;;  %v6598_v40 = vld [vmem:[%s8641_s11 + $0x80] sm:$0xff]  }
 0x4ef   : > { %2018 = vmatpush1.bf16.msra.mxu0 %v6553_v41 }
 0x4f0   : > { %2019 = vmatprep.subr.bf16.mxu0 %v6558_v42  ;;  %v6599_v42 = vld [vmem:[%s8641_s11 + $0xc8] sm:$0xff]  }
 0x4f3   : > { %2020 = vmatpush1.bf16.msra.mxu0 %v6556_v32 }
 0x4f4   : > { %2021 = vmatprep.subr.bf16.mxu0 %v6561_v38 }
 0x4f7   : > { %2022 = vmatpush1.bf16.msra.mxu0 %v6559_v43 }
 0x4f8   : > { %2023 = vmatprep.subr.bf16.mxu0 %v6564_v44  ;;  %v6600_v44 = vld [vmem:[%s8641_s11 + $0x88] sm:$0xff]  }
 0x4fb   : > { %2024 = vmatpush1.bf16.msra.mxu0 %v6562_v45  ;;  %v6601_v45 = vld [vmem:[%s8641_s11 + $0xd0] sm:$0xff]  }
 0x4fc   : > { %5872 = vmatprep.subr.bf16.mxu0 %v6567_v46  ;;  %v6602_v46 = vld [vmem:[%s8641_s11 + $0x90] sm:$0xff]  }
 0x4fe   : > { %2042 = vmatmul.mubr.bf16.vlgmr.msra.gmra.mrb[8].mxu0 %v1728_v48  ;;  %v6604_v48 = vld [vmem:[%s8641_s11 + $0x98] sm:$0xff]  }
 0x4ff   : > { %5873 = vmatpush3.bf16.msra.mxu0 %v6569_v47  ;;  %v6603_v47 = vld [vmem:[%s8641_s11 + $0xd8] sm:$0xff]  }
 0x500   : > { %5874 = vmatprep.subr.bf16.mxu0 %v6571_v49  ;;  %v6605_v49 = vld [vmem:[%s8641_s11 + $0xe0] sm:$0xff]  }
 0x503   : > { %5875 = vmatpush3.bf16.msra.mxu0 %v6573_v50  ;;  %v6606_v50 = vld [vmem:[%s8641_s11 + $0xa0] sm:$0xff]  }
 0x504   : > { %5876 = vmatprep.subr.bf16.mxu0 %v6575_v51  ;;  %v6607_v51 = vld [vmem:[%s8641_s11 + $0xe8] sm:$0xff]  }
 0x507   : > { %5877 = vmatpush3.bf16.msra.mxu0 %v6577_v53  ;;  %v6609_v53 = vld [vmem:[%s8641_s11 + $0xf0] sm:$0xff]  }
 0x508   : > { %5878 = vmatprep.subr.bf16.mxu0 %v6579_v55  ;;  %v6611_v55 = vld [vmem:[%s8641_s11 + $0xf8] sm:$0xff]  }
 0x50b   : > { %5879 = vmatpush3.bf16.msra.mxu0 %v6581_v57 }
 0x50c   : > { %5880 = vmatprep.subr.bf16.mxu0 %v6583_v59  ;;  %v6614_v59 = vld [vmem:[#allocation19] sm:$0xff]  }
 0x50f   : > { %5881 = vmatpush3.bf16.msra.mxu0 %v6585_v61  ;;  %v6616_v61 = vld [vmem:[#allocation19 + $0x48] sm:$0xff]  }
 0x510   : > { %5882 = vmatprep.subr.bf16.mxu0 %v6587_v4  ;;  %v6621_v4 = vld [vmem:[#allocation19 + $0x90] sm:$0xff]  }
 0x513   : > { %5883 = vmatpush3.bf16.msra.mxu0 %v6589_v7  ;;  %v2640_v7 = vsel %vm8018_vm5, 0, %v2639_v5  ;;  %v6642_v5 = vld [vmem:[#allocation22 + $0x80] sm:$0xff]  }
 0x514   : > { %5884 = vmatprep.subr.bf16.mxu0 %v6591_v8  ;;  %v6624_v8 = vld [vmem:[#allocation19 + $0x98] sm:$0xff]   ;;  %2641 = vst [vmem:[#allocation5] sm:$0x1] %v2640_v7  ;;  %v6644_v7 = vld [vmem:[#allocation22 + $0x8] sm:$0xff]  }
 0x517   : > { %5885 = vmatpush3.bf16.msra.mxu0 %v6593_v10  ;;  %v2658_v10 = vsel %vm8254_vm4, 0, %v2657_v9  ;;  %v6647_v9 = vld [vmem:[#allocation22 + $0x10] sm:$0xff]  }
 0x518   : > { %5886 = vmatprep.subr.bf16.mxu0 %v6595_v12  ;;  %2659 = vst [vmem:[#allocation5 + $0x8] sm:$0x8] %v2658_v10  ;;  %v6626_v12 = vld [vmem:[#allocation19 + $0x20] sm:$0xff]   ;;  %v6648_v10 = vld [vmem:[#allocation22 + $0x90] sm:$0xff]  }
 0x51b   : > { %5887 = vmatpush3.bf16.msra.mxu0 %v6597_v15  ;;  %v6628_v15 = vld [vmem:[#allocation19 + $0x68] sm:$0xff]  }
 0x51c   : > { %6149 = vmatprep.subr.bf16.mxu0 %v7400_v0 }
 0x5d1   : > { %v8296_v17 = vpop.f32.mrb[8].mxu0 }
 0x5d2   : > { %v2045_v19 = vpop.f32.mrb[9].mxu0  ;;  %v6823_v57 = vpack.c.bf16 %v8296_v17, %v8296_v17 }
 0x5d3   : > { %v5754_v20 = vpack.c.bf16 %v2045_v19, %v8296_v17  ;;  %v2047_v21 = vpop.f32.mrb[10].mxu0  ;;  %v6822_v32 = vpack.c.bf16 %v2045_v19, %v2045_v19  ;;  %v6629_v17 = vld [vmem:[#allocation19 + $0x28] sm:$0xff]  }
 0x5d4   : > { %v2048_v23 = vpop.f32.mrb[11].mxu0  ;;  %v6630_v19 = vld [vmem:[#allocation19 + $0xa8] sm:$0xff]   ;;  %v6632_v21 = vld [vmem:[#allocation19 + $0x30] sm:$0xff]  }
 0x5d5   : > { %v2065_v24 = vshrl.u32 %v5754_v20, 16  ;;  %v2068_v25 = vshll.u32 %v5754_v20, 16  ;;  %v6631_v20 = vld [vmem:[#allocation19 + $0x70] sm:$0xff]  }
 0x5d6   : > { %v6633_v23 = vld [vmem:[#allocation19 + $0xb0] sm:$0xff]  }
 0x5d7   : > { %v2067_v27 = vrot.slane %v2065_v24, 7  ;;  %v2090_v28 = vrot.slane %v2065_v24, 4  ;;  %v2091_v29 = vrot.slane %v2068_v25, 5  ;;  %v6634_v24 = vld [vmem:[#allocation19 + $0x78] sm:$0xff]  }
 0x5d9   : > { %v2070_v31 = vor.u32 %v2068_v25, %v2067_v27  ;;  %v2092_v33 = vor.u32 %v2091_v29, %v2090_v28  ;;  %v6635_v25 = vld [vmem:[#allocation19 + $0x38] sm:$0xff]   ;;  %v6640_v28 = vld [vmem:[#allocation22 + $0x40] sm:$0xff]  }
 0x5da   : > { %v6636_v27 = vld [vmem:[#allocation19 + $0xb8] sm:$0xff]  }
 0x5db   : > { %v2079_v35 = vsel %vm2077_vm2, %v2070_v31, %v2078_v30  ;;  %v2093_v36 = vrot.slane %v2092_v33, 4  ;;  %vm3686_vm2 = vcmask 1043458  }
 0x5dc   : > { %2080 = vst [vmem:[#allocation4] sm:$0xff] %v2079_v35  ;;  %v5491_v37 = vcombine.low %v2079_v35, %v2079_v35  ;;  %v5492_v39 = vcombine.high %v2079_v35, %v2079_v35 }
 0x5dd   : > { %v2100_v41 = vsel %vm2098_vm3, %v2093_v36, %v2099_v34  ;;  %vm3687_vm3 = vsmask.f32 7946 }
 0x5de   : > { %2101 = vst [vmem:[#allocation4 + $0x10] sm:$0xff] %v2100_v41  ;;  %2549 = vmatprep.mubr.bf16.mxu1 %v5492_v39  ;;  %v5495_v38 = vcombine.low %v2100_v41, %v2100_v41  ;;  %v5496_v43 = vcombine.high %v2100_v41, %v2100_v41  ;;  %v5490_v41 = vld [vmem:[#allocation18] ss:$0 sm:$0xff] }
 0x5df   : > { %2550 = vmatmul.mubr.bf16.vlgmr.msra.gmra.mrb[16].mxu1 %v5491_v37 }
 0x5e0   : > { %5851 = vmatpush3.bf16.msra.mxu1 %v6598_v40  ;;  %2589 = vmatprep.mubr.bf16.mxu1 %v6822_v32 }
 0x5e1   : > { %2629 = vmatprep.mubr.bf16.mxu0 %v5496_v43  ;;  %5852 = vmatprep.subr.bf16.mxu1 %v6599_v42 }
 0x5e2   : > { %2630 = vmatmul.mubr.bf16.vlgmr.msra.gmra.mrb[12].mxu0 %v5495_v38 }
 0x5e3   : > { %6165 = vmatprep.mubr.msk.bf16.mxu0 %vm7401_vm0, %v7400_v0  ;;  %6150 = vmatpush3.bf16.msra.mxu0 %v6615_v60 }
 0x5e4   : > { %5853 = vmatpush3.bf16.msra.mxu1 %v6600_v44  ;;  %6151 = vmatprep.subr.bf16.mxu0 %v7400_v0 }
 0x5e5   : > { %5854 = vmatprep.subr.bf16.mxu1 %v6601_v45 }
 0x5e7   : > { %6152 = vmatpush3.bf16.msra.mxu0 %v6618_v63 }
 0x5e8   : > { %5855 = vmatpush3.bf16.msra.mxu1 %v6602_v46  ;;  %6153 = vmatprep.subr.bf16.mxu0 %v7400_v0 }
 0x5e9   : > { %5856 = vmatprep.subr.bf16.mxu1 %v6603_v47 }
 0x5eb   : > { %6154 = vmatpush3.bf16.msra.mxu0 %v6621_v4 }
 0x5ec   : > { %5857 = vmatpush3.bf16.msra.mxu1 %v6604_v48  ;;  %6155 = vmatprep.subr.bf16.mxu0 %v7400_v0 }
 0x5ed   : > { %5858 = vmatprep.subr.bf16.mxu1 %v6605_v49 }
 0x5ef   : > { %6156 = vmatpush3.bf16.msra.mxu0 %v6624_v8  ;;  %v6646_v8 = vld [vmem:[#allocation22 + $0x50] sm:$0xff]  }
 0x5f0   : > { %5859 = vmatpush3.bf16.msra.mxu1 %v6606_v50  ;;  %6157 = vmatprep.subr.bf16.mxu0 %v7400_v0 }
 0x5f1   : > { %5860 = vmatprep.subr.bf16.mxu1 %v6607_v51 }
 0x5f3   : > { %6158 = vmatpush3.bf16.msra.mxu0 %v6627_v14 }
 0x5f4   : > { %5861 = vmatpush3.bf16.msra.mxu1 %v6608_v52  ;;  %6159 = vmatprep.subr.bf16.mxu0 %v7400_v0 }
 0x5f5   : > { %5862 = vmatprep.subr.bf16.mxu1 %v6609_v53 }
 0x5f7   : > { %6160 = vmatpush3.bf16.msra.mxu0 %v6630_v19  ;;  %v2980_v19 = vld [vmem:[#allocation6 + $0x8] sm:$0x8] }
 0x5f8   : > { %5863 = vmatpush3.bf16.msra.mxu1 %v6610_v54  ;;  %6161 = vmatprep.subr.bf16.mxu0 %v7400_v0 }
 0x5f9   : > { %5864 = vmatprep.subr.bf16.mxu1 %v6611_v55  ;;  %v2653_v55 = vld [vmem:[#allocation5] sm:$0xf] }
 0x5fb   : > { %6162 = vmatpush3.bf16.msra.mxu0 %v6633_v23  ;;  %v6653_v23 = vld [vmem:[#allocation22 + $0x20] sm:$0xff]  }
 0x5fc   : > { %5865 = vmatpush3.bf16.msra.mxu1 %v6612_v56  ;;  %6163 = vmatprep.subr.bf16.mxu0 %v7400_v0 }
 0x5fd   : > { %5894 = vmatprep.subr.bf16.mxu1 %v6613_v58  ;;  %v2665_v58 = vld [vmem:[#allocation5 + $0x8] sm:$0xf] }
 0x5ff   : > { %2590 = vmatmul.mubr.bf16.vlgmr.msra.gmra.mrb[20].mxu1 %v6823_v57  ;;  %6164 = vmatpush3.bf16.msra.mxu0 %v6636_v27  ;;  %v6656_v27 = vld [vmem:[#allocation22 + $0x28] sm:$0xff]  }
 0x600   : > { %5895 = vmatpush3.bf16.msra.mxu1 %v6614_v59  ;;  %6169 = vmatprep.subr.bf16.mxu0 %v7400_v0 }
 0x601   : > { %5896 = vmatprep.subr.bf16.mxu1 %v6616_v61 }
 0x604   : > { %5897 = vmatpush3.bf16.msra.mxu1 %v6617_v62 }
 0x605   : > { %5898 = vmatprep.subr.bf16.mxu1 %v6619_v1 }
 0x608   : > { %5899 = vmatpush3.bf16.msra.mxu1 %v6620_v3  ;;  %v6641_v3 = vld [vmem:[#allocation22] sm:$0xff]  }
 0x609   : > { %5900 = vmatprep.subr.bf16.mxu1 %v6622_v6  ;;  %v6643_v6 = vld [vmem:[#allocation22 + $0x48] sm:$0xff]  }
 0x60c   : > { %5901 = vmatpush3.bf16.msra.mxu1 %v6623_v18  ;;  %v6645_v18 = vld [vmem:[#allocation22 + $0x88] sm:$0xff]  }
 0x60d   : > { %5902 = vmatprep.subr.bf16.mxu1 %v6625_v11  ;;  %v2962_v11 = vld [vmem:[#allocation6] sm:$0x1] }
 0x60e   : > { %v2963_v14 = vsel %vm8018_vm5, 0, %v2962_v11 }
 0x60f   : > { %2964 = vst [vmem:[#allocation6] sm:$0x1] %v2963_v14 }
 0x610   : > { %5903 = vmatpush3.bf16.msra.mxu1 %v6626_v12  ;;  %v6649_v12 = vld [vmem:[#allocation22 + $0x58] sm:$0xff]  }
 0x611   : > { %5904 = vmatprep.subr.bf16.mxu1 %v6628_v15  ;;  %v6650_v15 = vld [vmem:[#allocation22 + $0x18] sm:$0xff]  }
 0x614   : > { %5905 = vmatpush3.bf16.msra.mxu1 %v6629_v17  ;;  %v6651_v17 = vld [vmem:[#allocation22 + $0x98] sm:$0xff]  }
 0x615   : > { %5906 = vmatprep.subr.bf16.mxu1 %v6631_v20  ;;  %v2981_v20 = vsel %vm8254_vm4, 0, %v2980_v19  ;;  %v6669_v19 = vld [vmem:[#allocation27 + $0x84] ss:$8 sps:$4 sm:$0xff]  }
 0x616   : > { %2982 = vst [vmem:[#allocation6 + $0x8] sm:$0x8] %v2981_v20  ;;  %v3337_v20 = vld [vmem:[#allocation25 + $0x2] sm:$0x3] }
 0x618   : > { %5907 = vmatpush3.bf16.msra.mxu1 %v6632_v21  ;;  %v6652_v21 = vld [vmem:[#allocation22 + $0x60] sm:$0xff]  }
 0x619   : > { %5908 = vmatprep.subr.bf16.mxu1 %v6634_v24  ;;  %v6654_v24 = vld [vmem:[#allocation22 + $0xa0] sm:$0xff]  }
 0x61c   : > { %5909 = vmatpush3.bf16.msra.mxu1 %v6635_v25  ;;  %v6655_v25 = vld [vmem:[#allocation22 + $0x68] sm:$0xff]  }
 0x61d   : > { %5925 = vmatprep.subr.bf16.mxu1 %v6640_v28  ;;  %v6657_v28 = vld [vmem:[#allocation22 + $0xa8] sm:$0xff]  }
 0x6b2   : > { %v5844_v29 = vpop.f32.mrb[16].mxu1 }
 0x6b3   : > { %v5845_v30 = vpop.f32.mrb[17].mxu1 }
 0x6b4   : > { %v5846_v31 = vadd.f32 %v5845_v30, %v5844_v29  ;;  %v5847_v33 = vpop.f32.mrb[18].mxu1  ;;  %v6658_v29 = vld [vmem:[#allocation22 + $0x70] sm:$0xff]  }
 0x6b5   : > { %v5888_v34 = vpop.f32.mrb[12].mxu0  ;;  %v5848_v35 = vpop.f32.mrb[19].mxu1  ;;  %v6659_v30 = vld [vmem:[#allocation22 + $0x30] sm:$0xff]   ;;  %v6661_v33 = vld [vmem:[#allocation22 + $0x78] sm:$0xff]  }
 0x6b6   : > { %v5889_v36 = vpop.f32.mrb[13].mxu0  ;;  %v2552_v38 = vadd.f32 %v5846_v31, %v5490_v41  ;;  %v6660_v31 = vld [vmem:[#allocation22 + $0xb0] sm:$0xff]   ;;  %v6663_v35 = vld [vmem:[#allocation22 + $0xb8] sm:$0xff]  }
 0x6b7   : > { %v5890_v37 = vadd.f32 %v5889_v36, %v5888_v34  ;;  %v5891_v39 = vpop.f32.mrb[14].mxu0  ;;  %v6662_v34 = vld [vmem:[#allocation22 + $0x38] sm:$0xff]  }
 0x6b8   : > { %v5892_v40 = vpop.f32.mrb[15].mxu0 }
 0x6b9   : > { %v5546_v40 = vld [vmem:[#allocation21] ss:$0 sm:$0xff] }
 0x6d2   : > { %v5866_v42 = vpop.f32.mrb[20].mxu1 }
 0x6d3   : > { %v5867_v32 = vpop.f32.mrb[21].mxu1 }
 0x6d4   : > { %v5868_v43 = vadd.f32 %v5867_v32, %v5866_v42  ;;  %v5869_v44 = vpop.f32.mrb[22].mxu1 }
 0x6d5   : > { %v5870_v45 = vpop.f32.mrb[23].mxu1 }
 0x6d6   : > { %v2592_v46 = vadd.f32 %v5868_v43, %v2552_v38 }
 0x6d8   : > { %v2632_v47 = vadd.f32 %v5890_v37, %v2592_v46 }
 0x6da   : > { %v2637_v48 = vmax.f32 %v2632_v47, 0.0 }
 0x6dc   : > { %v2638_v49 = vpack.c.bf16 %v2637_v48, %v2637_v48 }
 0x6de   : > { %v2646_v50 = vshrl.u32 %v2638_v49, 16  ;;  %v2649_v51 = vshll.u32 %v2638_v49, 16  ;;  %2656 = vst [vmem:[#allocation5 + $0x4] sm:$0xf] %v2638_v49 }
 0x6e0   : > { %v2648_v52 = vrot.slane %v2646_v50, 7  ;;  %v2660_v53 = vrot.slane %v2646_v50, 4  ;;  %v2661_v54 = vrot.slane %v2649_v51, 5 }
 0x6e2   : > { %v2651_v56 = vor.u32 %v2649_v51, %v2648_v52  ;;  %v2662_v57 = vor.u32 %v2661_v54, %v2660_v53  ;;  %v2976_v54 = vld [vmem:[#allocation6] sm:$0xf] }
 0x6e4   : > { %v2654_v59 = vsel %vm8301_vm13, %v2651_v56, %v2653_v55  ;;  %v2663_v60 = vrot.slane %v2662_v57, 4  ;;  %v2988_v57 = vld [vmem:[#allocation6 + $0x8] sm:$0xf] }
 0x6e5   : > { %2655 = vst [vmem:[#allocation5] sm:$0xf] %v2654_v59 }
 0x6e6   : > { %v2666_v61 = vsel %vm8307_vm15, %v2663_v60, %v2665_v58 }
 0x6e7   : > { %2667 = vst [vmem:[#allocation5 + $0x8] sm:$0xf] %v2666_v61 }
 0x6ec   : > { %v2668_v62 = vld [vmem:[#allocation5] sm:$0xff] }
 0x6ed   : > { %v5547_v63 = vcombine.low %v2668_v62, %v2668_v62  ;;  %v5548_v1 = vcombine.high %v2668_v62, %v2668_v62 }
 0x6ee   : > { %v6639_v4 = vld [vmem:[#allocation5 + $0x8] ss:$0 sps:$4 sm:$0xff]  }
 0x6ef   : > { %2912 = vmatprep.mubr.bf16.mxu1 %v5548_v1  ;;  %6166 = vmatmul.mubr.bf16.vlgmr.msra.gmra.mrb[16].mxu0 %v6639_v4 }
 0x6f0   : > { %2913 = vmatmul.mubr.bf16.vlgmr.msra.gmra.mrb[24].mxu1 %v5547_v63  ;;  %6185 = vmatprep.mubr.msk.bf16.mxu0 %vm7401_vm0, %v7400_v0 }
 0x6f1   : > { %5926 = vmatpush3.bf16.msra.mxu1 %v6641_v3  ;;  %6170 = vmatpush3.bf16.msra.mxu0 %v6642_v5  ;;  %v5575_v5 = vld [vmem:[#allocation24] ss:$0 sm:$0xff] }
 0x6f2   : > { %6171 = vmatprep.subr.bf16.mxu0 %v7400_v0  ;;  %5927 = vmatprep.subr.bf16.mxu1 %v6643_v6 }
 0x6f5   : > { %5928 = vmatpush3.bf16.msra.mxu1 %v6644_v7  ;;  %6172 = vmatpush3.bf16.msra.mxu0 %v6645_v18 }
 0x6f6   : > { %6173 = vmatprep.subr.bf16.mxu0 %v7400_v0  ;;  %5929 = vmatprep.subr.bf16.mxu1 %v6646_v8 }
 0x6f9   : > { %5930 = vmatpush3.bf16.msra.mxu1 %v6647_v9  ;;  %6174 = vmatpush3.bf16.msra.mxu0 %v6648_v10 }
 0x6fa   : > { %6175 = vmatprep.subr.bf16.mxu0 %v7400_v0  ;;  %5931 = vmatprep.subr.bf16.mxu1 %v6649_v12 }
 0x6fd   : > { %5932 = vmatpush3.bf16.msra.mxu1 %v6650_v15  ;;  %6176 = vmatpush3.bf16.msra.mxu0 %v6651_v17  ;;  %v3286_v17 = vld [vmem:[#allocation25] sm:$0x3] }
 0x6fe   : > { %6177 = vmatprep.subr.bf16.mxu0 %v7400_v0  ;;  %5933 = vmatprep.subr.bf16.mxu1 %v6652_v21  ;;  %v6667_v21 = vld [vmem:[#allocation27 + $0x80] ss:$8 sps:$4 sm:$0xff]  }
 0x701   : > { %5934 = vmatpush3.bf16.msra.mxu1 %v6653_v23  ;;  %6178 = vmatpush3.bf16.msra.mxu0 %v6654_v24  ;;  %v6672_v23 = vld [vmem:[#allocation27 + $0x94] ss:$8 sps:$4 sm:$0xff]   ;;  %v6670_v24 = vld [vmem:[#allocation27 + $0x90] ss:$8 sps:$4 sm:$0xff]  }
 0x702   : > { %6179 = vmatprep.subr.bf16.mxu0 %v7400_v0  ;;  %5935 = vmatprep.subr.bf16.mxu1 %v6655_v25  ;;  %v6675_v25 = vld [vmem:[#allocation27 + $0xa4] ss:$8 sps:$4 sm:$0xff]  }
 0x705   : > { %5936 = vmatpush3.bf16.msra.mxu1 %v6656_v27  ;;  %6180 = vmatpush3.bf16.msra.mxu0 %v6657_v28  ;;  %v6673_v27 = vld [vmem:[#allocation27 + $0xa0] ss:$8 sps:$4 sm:$0xff]   ;;  %v6678_v28 = vld [vmem:[#allocation27 + $0xb4] ss:$8 sps:$4 sm:$0xff]  }
 0x706   : > { %6181 = vmatprep.subr.bf16.mxu0 %v7400_v0  ;;  %5937 = vmatprep.subr.bf16.mxu1 %v6658_v29  ;;  %v6676_v29 = vld [vmem:[#allocation27 + $0xb0] ss:$8 sps:$4 sm:$0xff]  }
 0x709   : > { %5938 = vmatpush3.bf16.msra.mxu1 %v6659_v30  ;;  %6182 = vmatpush3.bf16.msra.mxu0 %v6660_v31  ;;  %v6681_v30 = vld [vmem:[#allocation27 + $0xc4] ss:$8 sps:$4 sm:$0xff]   ;;  %v6679_v31 = vld [vmem:[#allocation27 + $0xc0] ss:$8 sps:$4 sm:$0xff]  }
 0x70a   : > { %5939 = vmatprep.subr.bf16.mxu1 %v6661_v33  ;;  %6183 = vmatprep.subr.bf16.mxu0 %v7400_v0  ;;  %v6684_v33 = vld [vmem:[#allocation27 + $0xd4] ss:$8 sps:$4 sm:$0xff]  }
 0x70d   : > { %5940 = vmatpush3.bf16.msra.mxu1 %v6662_v34  ;;  %6184 = vmatpush3.bf16.msra.mxu0 %v6663_v35  ;;  %v6682_v34 = vld [vmem:[#allocation27 + $0xd0] ss:$8 sps:$4 sm:$0xff]   ;;  %v6687_v35 = vld [vmem:[#allocation27 + $0xe4] ss:$8 sps:$4 sm:$0xff]  }
 0x70e   : > { %6189 = vmatprep.subr.bf16.mxu1 %v7400_v0 }
 0x7c2   : > { %v2954_v37 = vpop.f32.mrb[16].mxu0 }
 0x7c3   : > { %v5910_v36 = vpop.f32.mrb[24].mxu1  ;;  %v6167_v41 = vpop.f32.mrb[17].mxu0 }
 0x7c4   : > { %v5911_v39 = vpop.f32.mrb[25].mxu1  ;;  %v2957_v38 = vpop.f32.mrb[18].mxu0  ;;  %v6715_v41 = vld [vmem:[#allocation28 + $0x40] sm:$0xff]  }
 0x7c5   : > { %v5912_v42 = vadd.f32 %v5911_v39, %v5910_v36  ;;  %v5913_v32 = vpop.f32.mrb[26].mxu1  ;;  %v6168_v44 = vpop.f32.mrb[19].mxu0  ;;  %v6685_v36 = vld [vmem:[#allocation27 + $0xe0] ss:$8 sps:$4 sm:$0xff]   ;;  %v6690_v39 = vld [vmem:[#allocation27 + $0xf4] ss:$8 sps:$4 sm:$0xff]   ;;  %5960 = vmatprep.subr.bf16.mxu0 %v6715_v41 }
 0x7c6   : > { %v5914_v43 = vpop.f32.mrb[27].mxu1  ;;  %v6719_v32 = vld [vmem:[#allocation28 + $0x48] sm:$0xff]   ;;  %v6747_v41 = vld [vmem:[#allocation28 + $0xc0] sm:$0xff]  }
 0x7c7   : > { %v2915_v45 = vadd.f32 %v5912_v42, %v5546_v40  ;;  %v6693_v40 = vld [vmem:[#allocation27 + $0x4] ss:$8 sps:$4 sm:$0xff]  }
 0x7c8   : > { %v6716_v42 = vld [vmem:[#allocation28] sm:$0xff]   ;;  %v6720_v38 = vld [vmem:[#allocation28 + $0x8] sm:$0xff]  }
 0x7c9   : > { %v2955_v46 = vadd.f32 %v2954_v37, %v2915_v45  ;;  %v6688_v37 = vld [vmem:[#allocation27 + $0xf0] ss:$8 sps:$4 sm:$0xff]  }
 0x7cb   : > { %v2960_v47 = vmax.f32 %v2955_v46, 0.0 }
 0x7cd   : > { %v2961_v48 = vpack.c.bf16 %v2960_v47, %v2960_v47 }
 0x7cf   : > { %v2969_v49 = vshrl.u32 %v2961_v48, 16  ;;  %v2972_v50 = vshll.u32 %v2961_v48, 16  ;;  %2979 = vst [vmem:[#allocation6 + $0x4] sm:$0xf] %v2961_v48  ;;  %v6691_v48 = vld [vmem:[#allocation27] ss:$8 sps:$4 sm:$0xff]  }
 0x7d1   : > { %v2971_v51 = vrot.slane %v2969_v49, 7  ;;  %v2983_v52 = vrot.slane %v2969_v49, 4  ;;  %v2984_v53 = vrot.slane %v2972_v50, 5 }
 0x7d3   : > { %v2974_v55 = vor.u32 %v2972_v50, %v2971_v51  ;;  %v2985_v56 = vor.u32 %v2984_v53, %v2983_v52  ;;  %v6696_v51 = vld [vmem:[#allocation27 + $0x14] ss:$8 sps:$4 sm:$0xff]  }
 0x7d5   : > { %v2977_v58 = vsel %vm8301_vm13, %v2974_v55, %v2976_v54  ;;  %v2986_v59 = vrot.slane %v2985_v56, 4  ;;  %v6694_v54 = vld [vmem:[#allocation27 + $0x10] ss:$8 sps:$4 sm:$0xff]   ;;  %v6699_v55 = vld [vmem:[#allocation27 + $0x24] ss:$8 sps:$4 sm:$0xff]   ;;  %vm3695_vm13 = vcmask 1041409  }
 0x7d6   : > { %2978 = vst [vmem:[#allocation6] sm:$0xf] %v2977_v58  ;;  %v6697_v56 = vld [vmem:[#allocation27 + $0x20] ss:$8 sps:$4 sm:$0xff]   ;;  %v6700_v58 = vld [vmem:[#allocation27 + $0x30] ss:$8 sps:$4 sm:$0xff]  }
 0x7d7   : > { %v2989_v60 = vsel %vm8307_vm15, %v2986_v59, %v2988_v57  ;;  %v6702_v57 = vld [vmem:[#allocation27 + $0x34] ss:$8 sps:$4 sm:$0xff]   ;;  %v6705_v59 = vld [vmem:[#allocation27 + $0x44] ss:$8 sps:$4 sm:$0xff]   ;;  %vm8415_vm15 = vmand %vm3695_vm13, %vm3696_vm14 }
 0x7d8   : > { %2990 = vst [vmem:[#allocation6 + $0x8] sm:$0xf] %v2989_v60  ;;  %v6703_v60 = vld [vmem:[#allocation27 + $0x40] ss:$8 sps:$4 sm:$0xff]   ;;  %vm3698_vm1 = vmor %vm8254_vm4, %vm8415_vm15  ;;  %vm3684_vm4 = vcmask 1041408  }
 0x7dd   : > { %v2991_v61 = vld [vmem:[#allocation6] sm:$0xff] }
 0x7de   : > { %v5576_v62 = vcombine.low %v2991_v61, %v2991_v61  ;;  %v5577_v63 = vcombine.high %v2991_v61, %v2991_v61  ;;  %v6708_v61 = vld [vmem:[#allocation27 + $0x54] ss:$8 sps:$4 sm:$0xff]  }
 0x7df   : > { %v6666_v1 = vld [vmem:[#allocation6 + $0x8] ss:$0 sps:$4 sm:$0xff]  }
 0x7e0   : > { %3235 = vmatprep.mubr.bf16.mxu1 %v5577_v63  ;;  %6186 = vmatmul.mubr.bf16.vlgmr.msra.gmra.mrb[20].mxu0 %v6666_v1  ;;  %v6711_v63 = vld [vmem:[#allocation27 + $0x64] ss:$8 sps:$4 sm:$0xff]   ;;  %v6714_v1 = vld [vmem:[#allocation27 + $0x74] ss:$8 sps:$4 sm:$0xff]  }
 0x7e1   : > { %3236 = vmatmul.mubr.bf16.vlgmr.msra.gmra.mrb[28].mxu1 %v5576_v62  ;;  %5961 = vmatpush3.bf16.msra.mxu0 %v6716_v42  ;;  %v6706_v62 = vld [vmem:[#allocation27 + $0x50] ss:$8 sps:$4 sm:$0xff]   ;;  %v7403_v42 = vmov 1983009808  }
 0x7e2   : > { %6191 = vmatprep.mubr.msk.bf16.mxu1 %vm7401_vm0, %v7400_v0  ;;  %5962 = vmatprep.subr.bf16.mxu0 %v6719_v32  ;;  %v3670_v32 = vunpack.c.l.s4 %v7403_v42 }
 0x7e5   : > { %5963 = vmatpush3.bf16.msra.mxu0 %v6720_v38  ;;  %v3672_v38 = vlaneseq }
 0x8b3   : > { %v3277_v3 = vpop.f32.mrb[20].mxu0 }
 0x8b4   : > { %v5941_v22 = vpop.f32.mrb[28].mxu1  ;;  %v6187_v6 = vpop.f32.mrb[21].mxu0 }
 0x8b5   : > { %v5942_v4 = vpop.f32.mrb[29].mxu1  ;;  %v3280_v18 = vpop.f32.mrb[22].mxu0  ;;  %v6721_v6 = vld [vmem:[#allocation28 + $0x148] sm:$0xff]  }
 0x8b6   : > { %v5943_v26 = vadd.f32 %v5942_v4, %v5941_v22  ;;  %v5944_v7 = vpop.f32.mrb[30].mxu1  ;;  %v6188_v9 = vpop.f32.mrb[23].mxu0  ;;  %v6712_v22 = vld [vmem:[#allocation27 + $0x70] ss:$8 sps:$4 sm:$0xff]   ;;  %v6718_v4 = vld [vmem:[#allocation28 + $0x100] sm:$0xff]  }
 0x8b7   : > { %v5945_v8 = vpop.f32.mrb[31].mxu1  ;;  %v6723_v7 = vld [vmem:[#allocation28 + $0x50] sm:$0xff]  }
 0x8b8   : > { %v3238_v10 = vadd.f32 %v5943_v26, %v5575_v5  ;;  %v6722_v26 = vld [vmem:[#allocation28 + $0x108] sm:$0xff]   ;;  %v6724_v18 = vld [vmem:[#allocation28 + $0x10] sm:$0xff]   ;;  %5964 = vmatprep.subr.bf16.mxu0 %v6723_v7  ;;  %v6748_v7 = vld [vmem:[#allocation28 + $0x80] sm:$0xff]  }
 0x8b9   : > { %v6725_v8 = vld [vmem:[#allocation28 + $0x150] sm:$0xff]   ;;  %5965 = vmatpush3.bf16.msra.mxu0 %v6724_v18 }
 0x8ba   : > { %v3278_v11 = vadd.f32 %v3277_v3, %v3238_v10  ;;  %v6717_v3 = vld [vmem:[#allocation28 + $0x140] sm:$0xff]   ;;  %v3663_v9 = vld [vmem:[#allocation7] sm:$0x5] }
 0x8bb   : > { %v6726_v10 = vld [vmem:[#allocation28 + $0x110] sm:$0xff]  }
 0x8bc   : > { %v3283_v12 = vmax.f32 %v3278_v11, 0.0 }
 0x8be   : > { %v3284_v14 = vpack.c.bf16 %v3283_v12, %v3283_v12  ;;  %v6804_v12 = vld [vmem:[#allocation34 + $0x68] sm:$0xff]  }
 0x8c0   : > { %3285 = vst [vmem:[%s1027_s26] sm:$0xf] %v3284_v14  ;;  %v3293_v15 = vsel %vm2072_vm7, %v3284_v14, 0  ;;  %vm3660_vm7 = vsmask.f32 2304  ;;  %v6727_v14 = vld [vmem:[#allocation28 + $0x58] sm:$0xff]  }
 0x8c1   : > { %6190 = vmatpush3.bf16.msra.mxu1 %v3293_v15  ;;  %vm3661_vm10 = vmand %vm3659_vm9, %vm3660_vm7  ;;  %5966 = vmatprep.subr.bf16.mxu0 %v6727_v14  ;;  %v6753_v14 = vld [vmem:[#allocation28 + $0x90] sm:$0xff]  }
 0x8c2   : > { %6195 = vmatprep.subr.bf16.mxu1 %v7400_v0  ;;  %vm3662_vm11 = vmor %vm3661_vm10, %vm8018_vm5 }
 0x8c3   : > { %v3664_v11 = vsel %vm3662_vm11, 0, %v3663_v9  ;;  %vm8428_vm9 = vmand %vm3684_vm4, %vm1055_vm6 }
 0x8c4   : > { %6192 = vmatmul.mubr.msk.bf16.vlgmr.msra.gmra.mrb[32].mxu1 %vm3287_vm8, %v3286_v17  ;;  %3665 = vst [vmem:[#allocation7] sm:$0x5] %v3664_v11  ;;  %v6728_v17 = vld [vmem:[#allocation28 + $0x18] sm:$0xff]   ;;  %vm3688_vm7 = vmand %vm3686_vm2, %vm3687_vm3  ;;  %v6752_v11 = vld [vmem:[#allocation28 + $0xd0] sm:$0xff]  }
 0x8c5   : > { %6196 = vmatpush3.bf16.msra.mxu1 %v3293_v15  ;;  %6197 = vmatprep.mubr.msk.bf16.mxu1 %vm7401_vm0, %v7400_v0  ;;  %v3699_v15 = vld [vmem:[#allocation7 + $0x8] sm:$0xa]  ;;  %vm3709_vm11 = vmand %vm3686_vm2, %vm2095_vm12 }
 0x8c6   : > { %3495 = vmatprep.subr.bf16.mxu1 %v6669_v19  ;;  %v3700_v19 = vsel %vm3698_vm1, 0, %v3699_v15  ;;  %5967 = vmatpush3.bf16.msra.mxu0 %v6728_v17  ;;  %vm3689_vm13 = vmor %vm3688_vm7, %vm8428_vm9  ;;  %v6754_v15 = vld [vmem:[#allocation28 + $0xd8] sm:$0xff]  }
 0x8c7   : > { %3701 = vst [vmem:[#allocation7 + $0x8] sm:$0xa] %v3700_v19  ;;  %v6755_v17 = vld [vmem:[#allocation28 + $0x98] sm:$0xff]   ;;  %v6756_v19 = vld [vmem:[#allocation28 + $0xe0] sm:$0xff]  }
 0x8cc   : > { %6198 = vmatmul.mubr.msk.bf16.vlgmr.msra.gmra.mrb[36].mxu1 %vm3287_vm8, %v3337_v20  ;;  %v6729_v20 = vld [vmem:[#allocation28 + $0x158] sm:$0xff]   ;;  %vm3707_vm8 = vsmask.f32 1280 }
 0x8cd   : > { %3496 = vmatpush1.bf16.msra.mxu1 %v6667_v21  ;;  %3527 = vmatprep.mubr.bf16.mxu1 %v7402_v13  ;;  %v6730_v21 = vld [vmem:[#allocation28 + $0x118] sm:$0xff]   ;;  %vm8432_vm10 = vmand %vm3684_vm4, %vm3707_vm8 }
 0x8ce   : > { %3497 = vmatprep.subr.bf16.mxu1 %v6672_v23  ;;  %v6731_v23 = vld [vmem:[#allocation28 + $0x60] sm:$0xff]   ;;  %vm3710_vm6 = vmor %vm3709_vm11, %vm8432_vm10 }
 0x8cf   : > { %5968 = vmatprep.subr.bf16.mxu0 %v6731_v23  ;;  %v6759_v23 = vld [vmem:[#allocation28 + $0xa8] sm:$0xff]  }
 0x8d1   : > { %3498 = vmatpush1.bf16.msra.mxu1 %v6670_v24  ;;  %v6732_v24 = vld [vmem:[#allocation28 + $0x20] sm:$0xff]  }
 0x8d2   : > { %3499 = vmatprep.subr.bf16.mxu1 %v6675_v25  ;;  %v6733_v25 = vld [vmem:[#allocation28 + $0x160] sm:$0xff]   ;;  %5969 = vmatpush3.bf16.msra.mxu0 %v6732_v24  ;;  %v6760_v24 = vld [vmem:[#allocation28 + $0xf0] sm:$0xff]  }
 0x8d5   : > { %3500 = vmatpush1.bf16.msra.mxu1 %v6673_v27  ;;  %v6734_v27 = vld [vmem:[#allocation28 + $0x120] sm:$0xff]  }
 0x8d6   : > { %3501 = vmatprep.subr.bf16.mxu1 %v6678_v28  ;;  %v6735_v28 = vld [vmem:[#allocation28 + $0x68] sm:$0xff]  }
 0x8d7   : > { %5970 = vmatprep.subr.bf16.mxu0 %v6735_v28  ;;  %v6763_v28 = vld [vmem:[#allocation28 + $0xb8] sm:$0xff]  }
 0x8d8   : > { %5971 = vmatpush3.bf16.msra.mxu0 %v6736_v2  ;;  %v6764_v2 = vld [vmem:[#allocation31 + $0x40] sm:$0xff]  }
 0x8d9   : > { %3502 = vmatpush1.bf16.msra.mxu1 %v6676_v29  ;;  %v6737_v29 = vld [vmem:[#allocation28 + $0x168] sm:$0xff]  }
 0x8da   : > { %3503 = vmatprep.subr.bf16.mxu1 %v6681_v30  ;;  %v6738_v30 = vld [vmem:[#allocation28 + $0x128] sm:$0xff]  }
 0x8dd   : > { %3504 = vmatpush1.bf16.msra.mxu1 %v6679_v31  ;;  %v6739_v31 = vld [vmem:[#allocation28 + $0x70] sm:$0xff]  }
 0x8de   : > { %3505 = vmatprep.subr.bf16.mxu1 %v6684_v33  ;;  %v6740_v33 = vld [vmem:[#allocation28 + $0x30] sm:$0xff]   ;;  %5972 = vmatprep.subr.bf16.mxu0 %v6739_v31 }
 0x8df   : > { %5973 = vmatpush3.bf16.msra.mxu0 %v6740_v33  ;;  %v6767_v31 = vld [vmem:[#allocation31 + $0x48] sm:$0xff]  }
 0x8e0   : > { %v6768_v33 = vld [vmem:[#allocation31 + $0x88] sm:$0xff]  }
 0x8e1   : > { %3506 = vmatpush1.bf16.msra.mxu1 %v6682_v34  ;;  %v6741_v34 = vld [vmem:[#allocation28 + $0x170] sm:$0xff]  }
 0x8e2   : > { %3507 = vmatprep.subr.bf16.mxu1 %v6687_v35  ;;  %v6742_v35 = vld [vmem:[#allocation28 + $0x130] sm:$0xff]  }
 0x8e5   : > { %3508 = vmatpush1.bf16.msra.mxu1 %v6685_v36  ;;  %v6743_v36 = vld [vmem:[#allocation28 + $0x78] sm:$0xff]  }
 0x8e6   : > { %3509 = vmatprep.subr.bf16.mxu1 %v6690_v39  ;;  %v6744_v39 = vld [vmem:[#allocation28 + $0x38] sm:$0xff]   ;;  %5974 = vmatprep.subr.bf16.mxu0 %v6743_v36 }
 0x8e7   : > { %5975 = vmatpush3.bf16.msra.mxu0 %v6744_v39  ;;  %v6770_v36 = vld [vmem:[#allocation31 + $0x50] sm:$0xff]  }
 0x8e8   : > { %5982 = vmatprep.subr.bf16.mxu0 %v6747_v41  ;;  %v4285_v41 = vld [vmem:[#allocation8 + $0x4] sm:$0x2] }
 0x8e9   : > { %3510 = vmatpush1.bf16.msra.mxu1 %v6688_v37  ;;  %v6745_v37 = vld [vmem:[#allocation28 + $0x178] sm:$0xff]   ;;  %v4286_v42 = vsel %vm8415_vm15, 0, %v4285_v41  ;;  %v6791_v41 = vld [vmem:[#allocation34] sm:$0xff]  }
 0x8ea   : > { %3616 = vmatprep.subr.bf16.mxu1 %v6693_v40  ;;  %v6746_v40 = vld [vmem:[#allocation28 + $0x138] sm:$0xff]   ;;  %4287 = vst [vmem:[#allocation8 + $0x4] sm:$0x2] %v4286_v42  ;;  %v6792_v42 = vld [vmem:[#allocation34 + $0x48] sm:$0xff]  }
 0x997   : > { %v3329_v43 = vpop.f32.mrb[32].mxu1 }
 0x998   : > { %v6193_v44 = vpop.f32.mrb[33].mxu1  ;;  %v3335_v5 = vpack.c.bf16 %v3329_v43, %v3329_v43  ;;  %v3671_v43 = vunpack.c.0.s8 %v3670_v32  ;;  %v6773_v32 = vld [vmem:[#allocation31 + $0x58] sm:$0xff]  }
 0x999   : > { %v3332_v45 = vpop.f32.mrb[34].mxu1  ;;  %v3673_v44 = vshrl.u32 %v3672_v38, 7  ;;  %v6774_v38 = vld [vmem:[#allocation31 + $0x98] sm:$0xff]  }
 0x99a   : > { %v6194_v46 = vpop.f32.mrb[35].mxu1 }
 0x99b   : > { %v8424_v46 = vsub.s32 %v3671_v43, %v3673_v44  ;;  %v6775_v43 = vld [vmem:[#allocation31 + $0x18] sm:$0xff]   ;;  %v6776_v44 = vld [vmem:[#allocation31 + $0x60] sm:$0xff]  }
 0x99f   : > { %v3375_v47 = vpop.f32.mrb[36].mxu1 }
 0x9a0   : > { %v3381_v49 = vpack.c.bf16 %v3375_v47, %v3375_v47  ;;  %v6199_v50 = vpop.f32.mrb[37].mxu1 }
 0x9a1   : > { %v3378_v52 = vpop.f32.mrb[38].mxu1 }
 0x9a2   : > { %3528 = vmatmul.mubr.bf16.vlgmr.msra.gmra.mrb[40].mxu1 %v3381_v49  ;;  %v6200_v53 = vpop.f32.mrb[39].mxu1  ;;  %v6815_v52 = vld [vmem:[%s8655_s9 + $0x8] sm:$0xff]  }
 0x9a3   : > { %3617 = vmatpush1.bf16.msra.mxu1 %v6691_v48  ;;  %3648 = vmatprep.mubr.bf16.mxu1 %v7402_v13  ;;  %v6709_v13 = vld [vmem:[#allocation27 + $0x60] ss:$8 sps:$4 sm:$0xff]  }
 0x9a4   : > { %3618 = vmatprep.subr.bf16.mxu1 %v6696_v51 }
 0x9a7   : > { %3619 = vmatpush1.bf16.msra.mxu1 %v6694_v54 }
 0x9a8   : > { %3620 = vmatprep.subr.bf16.mxu1 %v6699_v55  ;;  %v6817_v55 = vld [vmem:[%s8655_s9 + $0x18] sm:$0xff]  }
 0x9ab   : > { %3621 = vmatpush1.bf16.msra.mxu1 %v6697_v56 }
 0x9ac   : > { %3622 = vmatprep.subr.bf16.mxu1 %v6702_v57 }
 0x9af   : > { %3623 = vmatpush1.bf16.msra.mxu1 %v6700_v58 }
 0x9b0   : > { %3624 = vmatprep.subr.bf16.mxu1 %v6705_v59  ;;  %v3690_v59 = vld [vmem:[#allocation7] sm:$0xf] }
 0x9b3   : > { %3625 = vmatpush1.bf16.msra.mxu1 %v6703_v60 }
 0x9b4   : > { %3626 = vmatprep.subr.bf16.mxu1 %v6708_v61 }
 0x9b7   : > { %3627 = vmatpush1.bf16.msra.mxu1 %v6706_v62  ;;  %v3711_v62 = vld [vmem:[#allocation7 + $0x8] sm:$0xf] }
 0x9b8   : > { %3628 = vmatprep.subr.bf16.mxu1 %v6711_v63 }
 0x9bb   : > { %3629 = vmatpush1.bf16.msra.mxu1 %v6709_v13 }
 0x9bc   : > { %3630 = vmatprep.subr.bf16.mxu1 %v6714_v1 }
 0x9bf   : > { %3631 = vmatpush1.bf16.msra.mxu1 %v6712_v22 }
 0x9c0   : > { %6004 = vmatprep.subr.bf16.mxu1 %v6717_v3 }
 0x9c2   : > { %3649 = vmatmul.mubr.bf16.vlgmr.msra.gmra.mrb[40].mxu1 %v3335_v5 }
 0x9c3   : > { %6005 = vmatpush3.bf16.msra.mxu1 %v6718_v4 }
 0x9c4   : > { %6006 = vmatprep.subr.bf16.mxu1 %v6721_v6 }
 0x9c7   : > { %6007 = vmatpush3.bf16.msra.mxu1 %v6722_v26 }
 0x9c8   : > { %6008 = vmatprep.subr.bf16.mxu1 %v6725_v8  ;;  %v6750_v8 = vld [vmem:[#allocation28 + $0xc8] sm:$0xff]  }
 0x9cb   : > { %6009 = vmatpush3.bf16.msra.mxu1 %v6726_v10  ;;  %v6751_v10 = vld [vmem:[#allocation28 + $0x88] sm:$0xff]  }
 0x9cc   : > { %6010 = vmatprep.subr.bf16.mxu1 %v6729_v20  ;;  %v6757_v20 = vld [vmem:[#allocation28 + $0xa0] sm:$0xff]  }
 0x9cf   : > { %6011 = vmatpush3.bf16.msra.mxu1 %v6730_v21  ;;  %v6758_v21 = vld [vmem:[#allocation28 + $0xe8] sm:$0xff]  }
 0x9d0   : > { %6012 = vmatprep.subr.bf16.mxu1 %v6733_v25  ;;  %v6761_v25 = vld [vmem:[#allocation28 + $0xb0] sm:$0xff]  }
 0x9d3   : > { %6013 = vmatpush3.bf16.msra.mxu1 %v6734_v27  ;;  %v6762_v27 = vld [vmem:[#allocation28 + $0xf8] sm:$0xff]  }
 0x9d4   : > { %6014 = vmatprep.subr.bf16.mxu1 %v6737_v29  ;;  %v6765_v29 = vld [vmem:[#allocation31 + $0x80] sm:$0xff]  }
 0x9d7   : > { %6015 = vmatpush3.bf16.msra.mxu1 %v6738_v30  ;;  %v6766_v30 = vld [vmem:[#allocation31] sm:$0xff]  }
 0x9d8   : > { %6016 = vmatprep.subr.bf16.mxu1 %v6741_v34  ;;  %v6769_v34 = vld [vmem:[#allocation31 + $0x8] sm:$0xff]  }
 0x9db   : > { %6017 = vmatpush3.bf16.msra.mxu1 %v6742_v35  ;;  %v4262_v35 = vld [vmem:[#allocation8] sm:$0x1] }
 0x9dc   : > { %6018 = vmatprep.subr.bf16.mxu1 %v6745_v37  ;;  %v6771_v37 = vld [vmem:[#allocation31 + $0x90] sm:$0xff]   ;;  %v4263_v39 = vsel %vm8018_vm5, 0, %v4262_v35 }
 0x9dd   : > { %4264 = vst [vmem:[#allocation8] sm:$0x1] %v4263_v39  ;;  %v6789_v39 = vld [vmem:[#allocation34 + $0x40] sm:$0xff]  }
 0x9df   : > { %6019 = vmatpush3.bf16.msra.mxu1 %v6746_v40  ;;  %v6772_v40 = vld [vmem:[#allocation31 + $0x10] sm:$0xff]  }
 0x9e0   : > { %6201 = vmatprep.subr.bf16.mxu1 %v7400_v0 }
 0xa95   : > { %v3650_v45 = vpop.f32.mrb[40].mxu1 }
 0xa96   : > { %v3652_v47 = vpop.f32.mrb[41].mxu1 }
 0xa97   : > { %v5637_v48 = vpack.c.bf16 %v3652_v47, %v3650_v45  ;;  %v3654_v49 = vpop.f32.mrb[42].mxu1  ;;  %v6777_v45 = vld [vmem:[#allocation31 + $0xa0] sm:$0xff]  }
 0xa98   : > { %v3655_v50 = vpop.f32.mrb[43].mxu1  ;;  %v6778_v47 = vld [vmem:[#allocation31 + $0x20] sm:$0xff]   ;;  %v6780_v49 = vld [vmem:[#allocation31 + $0xa8] sm:$0xff]  }
 0xa99   : > { %v3675_v51 = vrot.slane %v5637_v48, %v8424_v46  ;;  %5638 = vst.sshfl [vmem:[#allocation7 + $0x4] sm:$0x33 pattern:$0x76325410] %v5637_v48  ;;  %v6779_v48 = vld [vmem:[#allocation31 + $0x68] sm:$0xff]  }
 0xa9a   : > { %v6781_v50 = vld [vmem:[#allocation31 + $0x28] sm:$0xff]  }
 0xa9b   : > { %v3677_v53 = vshrl.u32 %v3675_v51, 16  ;;  %v3680_v54 = vshll.u32 %v3675_v51, 16  ;;  %v6782_v51 = vld [vmem:[#allocation31 + $0x70] sm:$0xff]  }
 0xa9d   : > { %v3679_v56 = vrot.slane %v3677_v53, 7  ;;  %v3702_v57 = vrot.slane %v3677_v53, 6  ;;  %v3703_v58 = vrot.slane %v3680_v54, 7  ;;  %v6783_v53 = vld [vmem:[#allocation31 + $0xb0] sm:$0xff]  }
 0xa9f   : > { %v3682_v60 = vor.u32 %v3680_v54, %v3679_v56  ;;  %v3704_v61 = vor.u32 %v3703_v58, %v3702_v57  ;;  %v6784_v54 = vld [vmem:[#allocation31 + $0x30] sm:$0xff]   ;;  %v6785_v56 = vld [vmem:[#allocation31 + $0x78] sm:$0xff]  }
 0xaa0   : > { %v6786_v57 = vld [vmem:[#allocation31 + $0xb8] sm:$0xff]  }
 0xaa1   : > { %v3691_v63 = vsel %vm3689_vm13, %v3682_v60, %v3690_v59  ;;  %v3705_v13 = vrot.slane %v3704_v61, 2  ;;  %v6787_v58 = vld [vmem:[#allocation31 + $0x38] sm:$0xff]  }
 0xaa2   : > { %3692 = vst [vmem:[#allocation7] sm:$0xf] %v3691_v63 }
 0xaa3   : > { %v3712_v1 = vsel %vm3710_vm6, %v3705_v13, %v3711_v62 }
 0xaa4   : > { %3713 = vst [vmem:[#allocation7 + $0x8] sm:$0xf] %v3712_v1 }
 0xaa9   : > { %v3714_v22 = vld [vmem:[#allocation7] sm:$0xff] }
 0xaaa   : > { %v3828_v3 = vrot.slane %v3714_v22, %v8424_v46  ;;  %v3821_v4 = vcombine.high %v3714_v22, %v3714_v22 }
 0xaab   : > { %v5640_v5 = vld.sshfl [vmem:[#allocation7 + $0x8] sm:$0x33 pattern:$0x76325410] }
 0xaac   : > { %v3836_v6 = vcombine.high %v3828_v3, %v3828_v3  ;;  %v3845_v26 = vcombine.high %v5640_v5, %v5640_v5  ;;  %v3835_v18 = vrot.slane %v3821_v4, %v8424_v46 }
 0xaae   : > { %4172 = vmatprep.mubr.bf16.mxu0 %v3836_v6  ;;  %4252 = vmatprep.mubr.bf16.mxu1 %v3845_v26  ;;  %v3837_v9 = vcombine.high %v3835_v18, %v3835_v18 }
 0xaaf   : > { %4173 = vmatmul.mubr.bf16.vlgmr.msra.gmra.mrb[24].mxu0 %v3828_v3  ;;  %4253 = vmatmul.mubr.bf16.vlgmr.msra.gmra.mrb[44].mxu1 %v5640_v5  ;;  %v5639_v5 = vld [vmem:[#allocation30] ss:$0 sm:$0xff] }
 0xab0   : > { %5983 = vmatpush3.bf16.msra.mxu0 %v6748_v7  ;;  %4212 = vmatprep.mubr.bf16.mxu0 %v3837_v9 }
 0xab1   : > { %5984 = vmatprep.subr.bf16.mxu0 %v6750_v8  ;;  %6217 = vmatprep.mubr.msk.bf16.mxu1 %vm7401_vm0, %v7400_v0 }
 0xab2   : > { %6202 = vmatpush3.bf16.msra.mxu1 %v6765_v29 }
 0xab3   : > { %6203 = vmatprep.subr.bf16.mxu1 %v7400_v0 }
 0xab4   : > { %5985 = vmatpush3.bf16.msra.mxu0 %v6751_v10 }
 0xab5   : > { %5986 = vmatprep.subr.bf16.mxu0 %v6752_v11 }
 0xab6   : > { %6204 = vmatpush3.bf16.msra.mxu1 %v6768_v33 }
 0xab7   : > { %6205 = vmatprep.subr.bf16.mxu1 %v7400_v0 }
 0xab8   : > { %5987 = vmatpush3.bf16.msra.mxu0 %v6753_v14 }
 0xab9   : > { %5988 = vmatprep.subr.bf16.mxu0 %v6754_v15 }
 0xaba   : > { %6206 = vmatpush3.bf16.msra.mxu1 %v6771_v37 }
 0xabb   : > { %6207 = vmatprep.subr.bf16.mxu1 %v7400_v0 }
 0xabc   : > { %5989 = vmatpush3.bf16.msra.mxu0 %v6755_v17 }
 0xabd   : > { %5990 = vmatprep.subr.bf16.mxu0 %v6756_v19 }
 0xabe   : > { %6208 = vmatpush3.bf16.msra.mxu1 %v6774_v38  ;;  %v6794_v38 = vld [vmem:[#allocation34 + $0x8] sm:$0xff]  }
 0xabf   : > { %6209 = vmatprep.subr.bf16.mxu1 %v7400_v0 }
 0xac0   : > { %5991 = vmatpush3.bf16.msra.mxu0 %v6757_v20 }
 0xac1   : > { %5992 = vmatprep.subr.bf16.mxu0 %v6758_v21 }
 0xac2   : > { %6210 = vmatpush3.bf16.msra.mxu1 %v6777_v45  ;;  %v6796_v45 = vld [vmem:[#allocation34 + $0x90] sm:$0xff]  }
 0xac3   : > { %6211 = vmatprep.subr.bf16.mxu1 %v7400_v0 }
 0xac4   : > { %5993 = vmatpush3.bf16.msra.mxu0 %v6759_v23 }
 0xac5   : > { %5994 = vmatprep.subr.bf16.mxu0 %v6760_v24 }
 0xac6   : > { %6212 = vmatpush3.bf16.msra.mxu1 %v6780_v49  ;;  %v4621_v49 = vld [vmem:[#allocation9 + $0x4] sm:$0x2] }
 0xac7   : > { %6213 = vmatprep.subr.bf16.mxu1 %v7400_v0 }
 0xac8   : > { %5995 = vmatpush3.bf16.msra.mxu0 %v6761_v25  ;;  %v4281_v25 = vld [vmem:[#allocation8] sm:$0x3] }
 0xac9   : > { %5996 = vmatprep.subr.bf16.mxu0 %v6762_v27 }
 0xaca   : > { %6214 = vmatpush3.bf16.msra.mxu1 %v6783_v53  ;;  %v6799_v53 = vld [vmem:[#allocation34 + $0x98] sm:$0xff]  }
 0xacb   : > { %6215 = vmatprep.subr.bf16.mxu1 %v7400_v0 }
 0xacc   : > { %5997 = vmatpush3.bf16.msra.mxu0 %v6763_v28 }
 0xacd   : > { %6026 = vmatprep.subr.bf16.mxu0 %v6764_v2  ;;  %v4293_v2 = vld [vmem:[#allocation8 + $0x4] sm:$0x3] }
 0xace   : > { %6216 = vmatpush3.bf16.msra.mxu1 %v6786_v57  ;;  %v6803_v57 = vld [vmem:[#allocation34 + $0x20] sm:$0xff]  }
 0xacf   : > { %4213 = vmatmul.mubr.bf16.vlgmr.msra.gmra.mrb[28].mxu0 %v3835_v18  ;;  %6221 = vmatprep.subr.bf16.mxu1 %v7400_v0 }
 0xad0   : > { %6027 = vmatpush3.bf16.msra.mxu0 %v6766_v30 }
 0xad1   : > { %6028 = vmatprep.subr.bf16.mxu0 %v6767_v31 }
 0xad4   : > { %6029 = vmatpush3.bf16.msra.mxu0 %v6769_v34 }
 0xad5   : > { %6030 = vmatprep.subr.bf16.mxu0 %v6770_v36 }
 0xad8   : > { %6031 = vmatpush3.bf16.msra.mxu0 %v6772_v40  ;;  %v6790_v40 = vld [vmem:[#allocation34 + $0x80] sm:$0xff]  }
 0xad9   : > { %6032 = vmatprep.subr.bf16.mxu0 %v6773_v32  ;;  %v6793_v32 = vld [vmem:[#allocation34 + $0x88] sm:$0xff]  }
 0xadc   : > { %6033 = vmatpush3.bf16.msra.mxu0 %v6775_v43  ;;  %v4598_v43 = vld [vmem:[#allocation9] sm:$0x1] }
 0xadd   : > { %6034 = vmatprep.subr.bf16.mxu0 %v6776_v44  ;;  %v6795_v44 = vld [vmem:[#allocation34 + $0x50] sm:$0xff]  }
 0xae0   : > { %6035 = vmatpush3.bf16.msra.mxu0 %v6778_v47  ;;  %v4599_v47 = vsel %vm8018_vm5, 0, %v4598_v43 }
 0xae1   : > { %6036 = vmatprep.subr.bf16.mxu0 %v6779_v48  ;;  %v6797_v48 = vld [vmem:[#allocation34 + $0x10] sm:$0xff]   ;;  %4600 = vst [vmem:[#allocation9] sm:$0x1] %v4599_v47 }
 0xae4   : > { %6037 = vmatpush3.bf16.msra.mxu0 %v6781_v50  ;;  %v4622_v50 = vsel %vm8415_vm15, 0, %v4621_v49 }
 0xae5   : > { %6038 = vmatprep.subr.bf16.mxu0 %v6782_v51  ;;  %4623 = vst [vmem:[#allocation9 + $0x4] sm:$0x2] %v4622_v50  ;;  %v6798_v51 = vld [vmem:[#allocation34 + $0x58] sm:$0xff]  }
 0xae8   : > { %6039 = vmatpush3.bf16.msra.mxu0 %v6784_v54  ;;  %v6800_v54 = vld [vmem:[#allocation34 + $0x18] sm:$0xff]  }
 0xae9   : > { %6040 = vmatprep.subr.bf16.mxu0 %v6785_v56  ;;  %v6802_v56 = vld [vmem:[#allocation34 + $0xa0] sm:$0xff]  }
 0xaec   : > { %6041 = vmatpush3.bf16.msra.mxu0 %v6787_v58  ;;  %v6805_v58 = vld [vmem:[#allocation34 + $0xa8] sm:$0xff]  }
 0xaed   : > { %6057 = vmatprep.subr.bf16.mxu0 %v6789_v39  ;;  %v6814_v39 = vld [vmem:[%s8655_s9] sm:$0xff]  }
 0xb82   : > { %v5976_v59 = vpop.f32.mrb[24].mxu0  ;;  %v6020_v60 = vpop.f32.mrb[44].mxu1 }
 0xb83   : > { %v5977_v61 = vpop.f32.mrb[25].mxu0  ;;  %v6021_v62 = vpop.f32.mrb[45].mxu1 }
 0xb84   : > { %v5978_v63 = vadd.f32 %v5977_v61, %v5976_v59  ;;  %v6022_v13 = vadd.f32 %v6021_v62, %v6020_v60  ;;  %v5979_v1 = vpop.f32.mrb[26].mxu0  ;;  %v6023_v22 = vpop.f32.mrb[46].mxu1  ;;  %v6806_v59 = vld [vmem:[#allocation34 + $0x28] sm:$0xff]   ;;  %v6807_v60 = vld [vmem:[#allocation34 + $0x70] sm:$0xff]  }
 0xb85   : > { %v5980_v3 = vpop.f32.mrb[27].mxu0  ;;  %v6024_v4 = vpop.f32.mrb[47].mxu1  ;;  %v6808_v61 = vld [vmem:[#allocation34 + $0xb0] sm:$0xff]   ;;  %v6812_v1 = vld [vmem:[#allocation34 + $0x38] sm:$0xff]  }
 0xb86   : > { %v4175_v7 = vadd.f32 %v5978_v63, %v5639_v5  ;;  %v6809_v62 = vld [vmem:[#allocation34 + $0x30] sm:$0xff]   ;;  %v6810_v63 = vld [vmem:[#allocation34 + $0x78] sm:$0xff]  }
 0xb87   : > { %v5689_v5 = vld [vmem:[#allocation33] ss:$0 sm:$0xff] }
 0xba2   : > { %v5998_v6 = vpop.f32.mrb[28].mxu0 }
 0xba3   : > { %v5999_v26 = vpop.f32.mrb[29].mxu0 }
 0xba4   : > { %v6000_v18 = vadd.f32 %v5999_v26, %v5998_v6  ;;  %v6001_v8 = vpop.f32.mrb[30].mxu0 }
 0xba5   : > { %v6002_v9 = vpop.f32.mrb[31].mxu0 }
 0xba6   : > { %v4215_v10 = vadd.f32 %v6000_v18, %v4175_v7 }
 0xba8   : > { %v4255_v11 = vadd.f32 %v6022_v13, %v4215_v10  ;;  %v6811_v13 = vld [vmem:[#allocation34 + $0xb8] sm:$0xff]  }
 0xbaa   : > { %v4260_v14 = vmax.f32 %v4255_v11, 0.0 }
 0xbac   : > { %v4261_v15 = vpack.c.bf16 %v4260_v14, %v4260_v14 }
 0xbae   : > { %v4272_v17 = vrot.slane %v4261_v15, %v8424_v46  ;;  %4284 = vst [vmem:[#allocation8 + $0x2] sm:$0x3] %v4261_v15 }
 0xbb0   : > { %v4274_v19 = vshrl.u32 %v4272_v17, 16  ;;  %v4277_v20 = vshll.u32 %v4272_v17, 16 }
 0xbb2   : > { %v4276_v21 = vrot.slane %v4274_v19, 7  ;;  %v4288_v23 = vrot.slane %v4274_v19, 6  ;;  %v4289_v24 = vrot.slane %v4277_v20, 7 }
 0xbb4   : > { %v4279_v27 = vor.u32 %v4277_v20, %v4276_v21  ;;  %v4290_v28 = vor.u32 %v4289_v24, %v4288_v23 }
 0xbb6   : > { %v4282_v29 = vsel %vm8428_vm9, %v4279_v27, %v4281_v25  ;;  %v4291_v30 = vrot.slane %v4290_v28, 2  ;;  %v4617_v25 = vld [vmem:[#allocation9] sm:$0x3] }
 0xbb7   : > { %4283 = vst [vmem:[#allocation8] sm:$0x3] %v4282_v29 }
 0xbb8   : > { %v4294_v31 = vsel %vm8432_vm10, %v4291_v30, %v4293_v2  ;;  %v4629_v2 = vld [vmem:[#allocation9 + $0x4] sm:$0x3] }
 0xbb9   : > { %4295 = vst [vmem:[#allocation8 + $0x4] sm:$0x3] %v4294_v31 }
 0xbc0   : > { %v4296_v33 = vld [vmem:[#allocation8] sm:$0x3f] }
 0xbc1   : > { %v4353_v34 = vcombine.high %v4296_v33, %v4296_v33  ;;  %v4360_v35 = vrot.slane %v4296_v33, %v8424_v46 }
 0xbc3   : > { %v4368_v36 = vcombine.high %v4360_v35, %v4360_v35  ;;  %v4367_v37 = vrot.slane %v4353_v34, %v8424_v46 }
 0xbc5   : > { %4548 = vmatprep.mubr.bf16.mxu0 %v4368_v36  ;;  %6218 = vmatmul.mubr.bf16.vlgmr.msra.gmra.mrb[48].mxu1 %v4367_v37 }
 0xbc6   : > { %4549 = vmatmul.mubr.bf16.vlgmr.msra.gmra.mrb[32].mxu0 %v4360_v35  ;;  %6237 = vmatprep.mubr.msk.bf16.mxu1 %vm7401_vm0, %v7400_v0 }
 0xbc7   : > { %6222 = vmatpush3.bf16.msra.mxu1 %v6790_v40  ;;  %6058 = vmatpush3.bf16.msra.mxu0 %v6791_v41  ;;  %v6818_v40 = vld [vmem:[%s8655_s9 + $0x20] sm:$0xff]   ;;  %v6819_v41 = vld [vmem:[%s8655_s9 + $0x28] sm:$0xff]  }
 0xbc8   : > { %6223 = vmatprep.subr.bf16.mxu1 %v7400_v0  ;;  %6059 = vmatprep.subr.bf16.mxu0 %v6792_v42  ;;  %v6820_v42 = vld [vmem:[%s8655_s9 + $0x30] sm:$0xff]  }
 0xbcb   : > { %6224 = vmatpush3.bf16.msra.mxu1 %v6793_v32  ;;  %6060 = vmatpush3.bf16.msra.mxu0 %v6794_v38  ;;  %v6821_v32 = vld [vmem:[%s8655_s9 + $0x38] sm:$0xff]  }
 0xbcc   : > { %6225 = vmatprep.subr.bf16.mxu1 %v7400_v0  ;;  %6061 = vmatprep.subr.bf16.mxu0 %v6795_v44 }
 0xbcf   : > { %6226 = vmatpush3.bf16.msra.mxu1 %v6796_v45  ;;  %6062 = vmatpush3.bf16.msra.mxu0 %v6797_v48  ;;  %v5714_v45 = vld [vmem:[#allocation36] ss:$0 sm:$0xff] }
 0xbd0   : > { %6227 = vmatprep.subr.bf16.mxu1 %v7400_v0  ;;  %6063 = vmatprep.subr.bf16.mxu0 %v6798_v51 }
 0xbd3   : > { %6228 = vmatpush3.bf16.msra.mxu1 %v6799_v53  ;;  %6064 = vmatpush3.bf16.msra.mxu0 %v6800_v54 }
 0xbd4   : > { %6229 = vmatprep.subr.bf16.mxu1 %v7400_v0  ;;  %6065 = vmatprep.subr.bf16.mxu0 %v6801_v16 }
 0xbd7   : > { %6230 = vmatpush3.bf16.msra.mxu1 %v6802_v56  ;;  %6066 = vmatpush3.bf16.msra.mxu0 %v6803_v57 }
 0xbd8   : > { %6231 = vmatprep.subr.bf16.mxu1 %v7400_v0  ;;  %6067 = vmatprep.subr.bf16.mxu0 %v6804_v12 }
 0xbdb   : > { %6232 = vmatpush3.bf16.msra.mxu1 %v6805_v58  ;;  %6068 = vmatpush3.bf16.msra.mxu0 %v6806_v59 }
 0xbdc   : > { %6233 = vmatprep.subr.bf16.mxu1 %v7400_v0  ;;  %6069 = vmatprep.subr.bf16.mxu0 %v6807_v60 }
 0xbdf   : > { %6234 = vmatpush3.bf16.msra.mxu1 %v6808_v61  ;;  %6070 = vmatpush3.bf16.msra.mxu0 %v6809_v62 }
 0xbe0   : > { %6235 = vmatprep.subr.bf16.mxu1 %v7400_v0  ;;  %6071 = vmatprep.subr.bf16.mxu0 %v6810_v63 }
 0xbe3   : > { %6236 = vmatpush3.bf16.msra.mxu1 %v6811_v13  ;;  %6072 = vmatpush3.bf16.msra.mxu0 %v6812_v1 }
 0xbe4   : > { %6241 = vmatprep.subr.bf16.mxu0 %v7400_v0 }
 0xc98   : > { %v4590_v22 = vpop.f32.mrb[48].mxu1 }
 0xc99   : > { %v6042_v3 = vpop.f32.mrb[32].mxu0  ;;  %v6219_v4 = vpop.f32.mrb[49].mxu1 }
 0xc9a   : > { %v6043_v6 = vpop.f32.mrb[33].mxu0  ;;  %v4593_v26 = vpop.f32.mrb[50].mxu1 }
 0xc9b   : > { %v6044_v7 = vadd.f32 %v6043_v6, %v6042_v3  ;;  %v6045_v18 = vpop.f32.mrb[34].mxu0  ;;  %v6220_v8 = vpop.f32.mrb[51].mxu1 }
 0xc9c   : > { %v6046_v9 = vpop.f32.mrb[35].mxu0 }
 0xc9d   : > { %v4551_v10 = vadd.f32 %v6044_v7, %v5689_v5 }
 0xc9f   : > { %v4591_v11 = vadd.f32 %v4590_v22, %v4551_v10 }
 0xca1   : > { %v4596_v14 = vmax.f32 %v4591_v11, 0.0 }
 0xca3   : > { %v4597_v15 = vpack.c.bf16 %v4596_v14, %v4596_v14 }
 0xca5   : > { %v4608_v17 = vrot.slane %v4597_v15, %v8424_v46  ;;  %4620 = vst [vmem:[#allocation9 + $0x2] sm:$0x3] %v4597_v15 }
 0xca7   : > { %v4610_v19 = vshrl.u32 %v4608_v17, 16  ;;  %v4613_v20 = vshll.u32 %v4608_v17, 16 }
 0xca9   : > { %v4612_v21 = vrot.slane %v4610_v19, 7  ;;  %v4624_v23 = vrot.slane %v4610_v19, 6  ;;  %v4625_v24 = vrot.slane %v4613_v20, 7 }
 0xcab   : > { %v4615_v27 = vor.u32 %v4613_v20, %v4612_v21  ;;  %v4626_v28 = vor.u32 %v4625_v24, %v4624_v23 }
 0xcad   : > { %v4618_v29 = vsel %vm8428_vm9, %v4615_v27, %v4617_v25  ;;  %v4627_v30 = vrot.slane %v4626_v28, 2 }
 0xcae   : > { %4619 = vst [vmem:[#allocation9] sm:$0x3] %v4618_v29 }
 0xcaf   : > { %v4630_v31 = vsel %vm8432_vm10, %v4627_v30, %v4629_v2 }
 0xcb0   : > { %4631 = vst [vmem:[#allocation9 + $0x4] sm:$0x3] %v4630_v31 }
 0xcb7   : > { %v4632_v33 = vld [vmem:[#allocation9] sm:$0x3f] }
 0xcb8   : > { %v4689_v34 = vcombine.high %v4632_v33, %v4632_v33  ;;  %v4696_v35 = vrot.slane %v4632_v33, %v8424_v46 }
 0xcba   : > { %v4704_v36 = vcombine.high %v4696_v35, %v4696_v35  ;;  %v4703_v37 = vrot.slane %v4689_v34, %v8424_v46  ;;  %v6816_v46 = vld [vmem:[%s8655_s9 + $0x10] sm:$0xff]  }
 0xcbc   : > { %4884 = vmatprep.mubr.bf16.mxu0 %v4704_v36  ;;  %6238 = vmatmul.mubr.bf16.vlgmr.msra.gmra.mrb[52].mxu1 %v4703_v37 }
 0xcbd   : > { %4885 = vmatmul.mubr.bf16.vlgmr.msra.gmra.mrb[36].mxu0 %v4696_v35 }
 0xcbe   : > { %6242 = vmatpush3.bf16.msra.mxu0 %v6814_v39  ;;  %6257 = vmatprep.mubr.msk.bf16.mxu0 %vm7401_vm0, %v7400_v0 }
 0xcbf   : > { %6243 = vmatprep.subr.bf16.mxu0 %v7400_v0 }
 0xcc2   : > { %6244 = vmatpush3.bf16.msra.mxu0 %v6815_v52 }
 0xcc3   : > { %6245 = vmatprep.subr.bf16.mxu0 %v7400_v0 }
 0xcc6   : > { %6246 = vmatpush3.bf16.msra.mxu0 %v6816_v46 }
 0xcc7   : > { %6247 = vmatprep.subr.bf16.mxu0 %v7400_v0 }
 0xcca   : > { %6248 = vmatpush3.bf16.msra.mxu0 %v6817_v55 }
 0xccb   : > { %6249 = vmatprep.subr.bf16.mxu0 %v7400_v0 }
 0xcce   : > { %6250 = vmatpush3.bf16.msra.mxu0 %v6818_v40 }
 0xccf   : > { %6251 = vmatprep.subr.bf16.mxu0 %v7400_v0 }
 0xcd2   : > { %6252 = vmatpush3.bf16.msra.mxu0 %v6819_v41 }
 0xcd3   : > { %6253 = vmatprep.subr.bf16.mxu0 %v7400_v0 }
 0xcd6   : > { %6254 = vmatpush3.bf16.msra.mxu0 %v6820_v42 }
 0xcd7   : > { %6255 = vmatprep.subr.bf16.mxu0 %v7400_v0  ;;  %v5739_v0 = vld [vmem:[#allocation37] ss:$0 sm:$0xff] }
 0xcda   : > { %6256 = vmatpush3.bf16.msra.mxu0 %v6821_v32 }
 0xd8f   : > { %v4926_v38 = vpop.f32.mrb[52].mxu1 }
 0xd90   : > { %v6073_v43 = vpop.f32.mrb[36].mxu0  ;;  %v6239_v44 = vpop.f32.mrb[53].mxu1 }
 0xd91   : > { %v6074_v47 = vpop.f32.mrb[37].mxu0  ;;  %v4929_v48 = vpop.f32.mrb[54].mxu1 }
 0xd92   : > { %v6075_v49 = vadd.f32 %v6074_v47, %v6073_v43  ;;  %v6076_v50 = vpop.f32.mrb[38].mxu0  ;;  %v6240_v51 = vpop.f32.mrb[55].mxu1 }
 0xd93   : > { %v6077_v53 = vpop.f32.mrb[39].mxu0 }
 0xd94   : > { %v4887_v54 = vadd.f32 %v6075_v49, %v5714_v45 }
 0xd96   : > { %v4927_v16 = vadd.f32 %v4926_v38, %v4887_v54 }
 0xd98   : > { %v4932_v56 = vmax.f32 %v4927_v16, 0.0 }
 0xd9a   : > { %v4933_v57 = vpack.c.bf16 %v4932_v56, %v4932_v56 }
 0xd9c   : > { %4934 = vst [vmem:[#allocation10] sm:$0x3] %v4933_v57 }
 0xda3   : > { %v4935_v12 = vld [vmem:[#allocation10] sm:$0x3] }
 0xda4   : > { %6258 = vmatmul.mubr.bf16.vlgmr.msra.gmra.mrb[40].mxu0 %v4935_v12 }
 0xe77   : > { %v5041_v58 = vpop.f32.mrb[40].mxu0 }
 0xe78   : > { %v5042_v59 = vadd.f32 %v5739_v0, %v5041_v58  ;;  %v6259_v60 = vpop.f32.mrb[41].mxu0 }
 0xe79   : > { %v5044_v61 = vpop.f32.mrb[42].mxu0 }
 0xe7a   : > { %5047 = vst [vmem:[%s1031_s4] sm:$0xf] %v5042_v59  ;;  %v6260_v62 = vpop.f32.mrb[43].mxu0 }
 0xe7b PF: > { %s8657_s27 = sld [smem:[#allocation49_spill]] }
 0xe81   : > { %s46_s29 = sadd.s32 1, %s8657_s27  }
 0xe82   : > { %p43_p6 = scmp.ge.s32.totalorder %s46_s29, 4  }
 0xe84   :  { %45 = sbr.rel (!%p43_p6) target bundleno = 28 (0x1c), region = 243 }
 0xe8b   :  { %5097 = vsyncpa [#allocation12], 1 }
 0xe8c   :  { %5099 = vsyncpa [#allocation12 + $0x1], 1 }
 0xe8d   :  { %5100 = vsyncpa [#allocation14], 1 }
 0xe8e   :  { %5101 = vsyncpa [#allocation17], 1 }
 0xe8f   :  { %5102 = vsyncpa [#allocation20], 1 }
 0xe90   :  { %5103 = vsyncpa [#allocation23], 1 }
 0xe91   :  { %5104 = vsyncpa [#allocation26], 1 }
 0xe92   :  { %5105 = vsyncpa [#allocation29], 1 }
 0xe93   :  { %5106 = vsyncpa [#allocation32], 1 }
 0xe94   :  { %5107 = vsyncpa [#allocation35], 1 }
 0xe95   :  { %5108 = vsyncpa [#allocation38], 1 }

</bundles_post_ra>
